<compile_context>
chip_gen: v5e
topology: v5e:2x2
jax: 0.10.0
libtpu: 0.0.40
codegen_flags: <defaults>
</compile_context>

<pallas_src>
import functools

import jax
import jax.numpy as jnp
from jax.experimental import pallas as pl
from jax.experimental.pallas import tpu as pltpu


def _vmem_spec():
    return pl.BlockSpec(memory_space=pltpu.MemorySpace.VMEM)


# --------------------------- fused MPNN forward kernel ---------------------------

def _mpnn_fused_kernel(x_ref, eattr_ref, src_ref, agg_ref, mask_ref,
                       rsel_ref, ssum_ref,
                       in_w_ref, in_b_ref,
                       e1w_ref, e1b_ref, e2w_ref, e2b_ref, conv_b_ref,
                       gwi_ref, gwh_ref, gbi_ref, gbh_ref,
                       lw_ref, lb_ref,
                       o1w_ref, o1b_ref, o2w_ref, o2b_ref,
                       y_ref, *, D, num_conv, processing_steps):
    f32 = jnp.float32

    # --- graph operands, resident for the whole kernel ---
    src = src_ref[...]            # [E, N]  one-hot gather of source nodes
    agg = agg_ref[...]            # [N, E]  mean-scatter (rows scaled by 1/in-degree)
    mask = mask_ref[...]          # [B, N]  graph-membership mask
    rsel = rsel_ref[...]          # [D, D*D]  lane-repeat selector
    ssum = ssum_ref[...]          # [D*D, D]  strided-sum selector
    conv_b = conv_b_ref[...]      # [1, D]

    # --- edge network (fused): per-edge conv weights, lane-dense [E, D*D] ---
    eh = jnp.dot(eattr_ref[...], e1w_ref[...], preferred_element_type=f32) + e1b_ref[...]
    eh = jnp.maximum(eh, 0.0)
    w_flat = jnp.dot(eh, e2w_ref[...], preferred_element_type=f32) + e2b_ref[...]  # [E, D*D]

    # --- in_linear + ReLU ---
    h = jnp.dot(x_ref[...], in_w_ref[...], preferred_element_type=f32) + in_b_ref[...]
    h = jnp.maximum(h, 0.0)                                              # [N, D]

    gwi = gwi_ref[...]            # [D, 3D]   GRU W_ih (gates r, z, n)
    gwh = gwh_ref[...]            # [D, 3D]   GRU W_hh
    gbi = gbi_ref[...]            # [1, 3D]
    gbh = gbh_ref[...]            # [1, 3D]

    # --- conv loop (static trip count -> fully unrolled at trace time) ---
    for _ in range(num_conv):
        # gather source node features: [E, N] @ [N, D] -> [E, D]   (MXU)
        x_src = jnp.dot(src, h, preferred_element_type=f32)
        # per-edge message, contracting directly from the lane-dense [E, D*D] layout:
        #   xrep[e, k*D+j] = x_src[e, k];  msgs[e, j] = sum_k x_src[e,k] * W_e[k, j]
        xrep = jnp.dot(x_src, rsel, preferred_element_type=f32)          # [E, D*D]
        prod = xrep * w_flat                                             # [E, D*D]  (VPU)
        msgs = jnp.dot(prod, ssum, preferred_element_type=f32)           # [E, D]
        # mean-scatter to destination nodes + bias + ReLU
        m = jnp.dot(agg, msgs, preferred_element_type=f32) + conv_b      # [N, D]
        m = jnp.maximum(m, 0.0)

        # GRU cell: 2 fused gate matmuls (96-lane results), static lane slices per gate.
        gi = jnp.dot(m, gwi, preferred_element_type=f32) + gbi           # [N, 3D]
        gh = jnp.dot(h, gwh, preferred_element_type=f32) + gbh           # [N, 3D]
        r = jax.nn.sigmoid(gi[:, :D] + gh[:, :D])
        z = jax.nn.sigmoid(gi[:, D:2 * D] + gh[:, D:2 * D])
        n = jnp.tanh(gi[:, 2 * D:] + r * gh[:, 2 * D:])                  # b_hn inside r*(.)
        h = (1.0 - z) * n + z * h                                        # [N, D]

    out_nodes = h                                                        # [N, D]
    out_t = out_nodes.T                                                  # [D, N], hoisted once

    # --- Set2Set pooling ---
    B = mask.shape[0]
    lw = lw_ref[...]              # [3D, 4D]  stacked LSTM [W_ih; W_hh] (gates i, f, g, o)
    lb = lb_ref[...]              # [1, 4D]   b_ih + b_hh
    q_star = jnp.zeros((B, 2 * D), f32)
    hh = jnp.zeros((B, D), f32)
    cc = jnp.zeros((B, D), f32)
    for _ in range(processing_steps):
        # one fused 128-lane gate matmul per step
        gates = jnp.dot(jnp.concatenate([q_star, hh], axis=-1), lw,
                        preferred_element_type=f32) + lb                 # [B, 4D]
        i_g = jax.nn.sigmoid(gates[:, :D])
        f_g = jax.nn.sigmoid(gates[:, D:2 * D])
        g_g = jnp.tanh(gates[:, 2 * D:3 * D])
        o_g = jax.nn.sigmoid(gates[:, 3 * D:])
        cc = f_g * cc + i_g * g_g
        hh = o_g * jnp.tanh(cc)                                          # [B, D]

        # masked per-graph softmax attention: scores[b, n] = <hh_b, out_n>
        scores = jnp.dot(hh, out_t, preferred_element_type=f32)          # [B, N]
        scores = jnp.where(mask > 0.5, scores, -1e30)
        mmax = jnp.max(scores, axis=-1, keepdims=True)
        e = jnp.exp(scores - mmax)                                       # masked entries -> 0
        denom = jnp.maximum(jnp.sum(e, axis=-1, keepdims=True), 1e-20)   # empty-graph guard
        a = e * pl.reciprocal(denom, approx=True)                        # EUP slot (free-ish)
        r_att = jnp.dot(a, out_nodes, preferred_element_type=f32)        # [B, D]
        q_star = jnp.concatenate([hh, r_att], axis=-1)                   # [B, 2D]

    # --- out_linear: Linear + ReLU + Linear ---
    y1 = jnp.dot(q_star, o1w_ref[...], preferred_element_type=f32) + o1b_ref[...]
    y1 = jnp.maximum(y1, 0.0)
    y_ref[...] = jnp.dot(y1, o2w_ref[...], preferred_element_type=f32) + o2b_ref[...]


def mpnn_fused(x, edge_attr, src_onehot, agg_mean, batch_mask, rsel, ssum,
               in_w, in_b, e1_w, e1_b, e2_w, e2_b, conv_b,
               gru_wih, gru_whh, gru_bih, gru_bhh,
               lstm_w, lstm_b, o1_w, o1_b, o2_w, o2_b,
               *, num_conv, processing_steps):
    B = batch_mask.shape[0]
    D = in_w.shape[1]
    out_dim = o2_w.shape[1]
    args = (x, edge_attr, src_onehot, agg_mean, batch_mask, rsel, ssum,
            in_w, in_b, e1_w, e1_b, e2_w, e2_b, conv_b,
            gru_wih, gru_whh, gru_bih, gru_bhh,
            lstm_w, lstm_b, o1_w, o1_b, o2_w, o2_b)
    return pl.pallas_call(
        functools.partial(_mpnn_fused_kernel, D=D, num_conv=num_conv,
                          processing_steps=processing_steps),
        out_shape=jax.ShapeDtypeStruct((B, out_dim), jnp.float32),
        in_specs=[_vmem_spec() for _ in args],
        out_specs=_vmem_spec(),
    )(*args)


# ------------------------------- full forward --------------------------------

def mpnn_forward(x, edge_attr, src_onehot, agg_mean, batch_onehot, p,
                 num_conv=3, processing_steps=3):
    D = p["in_w"].shape[1]

    # Constant selection matrices (built once in XLA, constant-folded under jit):
    #   rsel[k, k'*D + j] = d(k, k')  -> x_src @ rsel repeats each feature D times (lane-dense)
    #   ssum[k*D + j, j'] = d(j, j')  -> prod @ ssum sums the strided lane groups
    eye = jnp.eye(D, dtype=jnp.float32)
    rsel = jnp.repeat(eye, D, axis=1)             # [D, D*D]
    ssum = jnp.tile(eye, (D, 1))                  # [D*D, D]

    # Fuse LSTM input/hidden gate weights into one stacked matrix (gate order i, f, g, o).
    lstm_w = jnp.concatenate([p["lstm_wih"], p["lstm_whh"]], axis=0)   # [3D, 4D]
    lstm_b = p["lstm_bih"] + p["lstm_bhh"]                              # [1, 4D]

    return mpnn_fused(x, edge_attr, src_onehot, agg_mean, batch_onehot, rsel, ssum,
                      p["in_w"], p["in_b"],
                      p["e1_w"], p["e1_b"], p["e2_w"], p["e2_b"], p["conv_b"],
                      p["gru_wih"], p["gru_whh"], p["gru_bih"], p["gru_bhh"],
                      lstm_w, lstm_b,
                      p["o1_w"], p["o1_b"], p["o2_w"], p["o2_b"],
                      num_conv=num_conv, processing_steps=processing_steps)


# ------------------------------- parameter init -------------------------------

def init_linear_params(key, fan_in, fan_out):
    kw, kb = jax.random.split(key)
    lim = 1.0 / jnp.sqrt(jnp.float32(fan_in))
    w = jax.random.uniform(kw, (fan_in, fan_out), jnp.float32, -lim, lim)
    b = jax.random.uniform(kb, (1, fan_out), jnp.float32, -lim, lim)
    return w, b


if __name__ == "__main__":
    node_attr_dim, edge_attr_dim = 4, 3
    state_dim, num_conv, out_dim = 32, 3, 1
    N, E, B = 12, 20, 2

    key = jax.random.PRNGKey(0)
    keys = iter(jax.random.split(key, 32))

    # ----- synthetic graph data -----
    x = jax.random.normal(next(keys), (N, node_attr_dim), jnp.float32)
    edge_attr = jax.random.normal(next(keys), (E, edge_attr_dim), jnp.float32)
    src0 = jax.random.randint(next(keys), (E // 2,), 0, N // 2)
    dst0 = jax.random.randint(next(keys), (E // 2,), 0, N // 2)
    src1 = jax.random.randint(next(keys), (E // 2,), N // 2, N)
    dst1 = jax.random.randint(next(keys), (E // 2,), N // 2, N)
    src = jnp.concatenate([src0, src1])                     # edge_index[0]
    dst = jnp.concatenate([dst0, dst1])                     # edge_index[1]
    batch = jnp.concatenate([jnp.zeros(N // 2, jnp.int32), jnp.ones(N // 2, jnp.int32)])

    src_onehot = jax.nn.one_hot(src, N, dtype=jnp.float32)              # [E, N]
    dst_onehot = jax.nn.one_hot(dst, N, dtype=jnp.float32)              # [E, N]
    in_deg = jnp.sum(dst_onehot, axis=0)                                # [N]
    agg_mean = dst_onehot.T / jnp.maximum(in_deg, 1.0)[:, None]         # [N, E] mean-scatter
    batch_onehot = jax.nn.one_hot(batch, B, dtype=jnp.float32).T        # [B, N]

    # ----- deterministic parameters -----
    p = {}
    p["in_w"], p["in_b"] = init_linear_params(next(keys), node_attr_dim, state_dim)
    p["e1_w"], p["e1_b"] = init_linear_params(next(keys), edge_attr_dim, state_dim)
    p["e2_w"], p["e2_b"] = init_linear_params(next(keys), state_dim, state_dim * state_dim)
    _, p["conv_b"] = init_linear_params(next(keys), state_dim, state_dim)   # NNConv bias
    # GRU (PyTorch layout [3D, D] pre-transposed to [D, 3D]; gate order r, z, n)
    p["gru_wih"], _ = init_linear_params(next(keys), state_dim, 3 * state_dim)
    p["gru_whh"], _ = init_linear_params(next(keys), state_dim, 3 * state_dim)
    _, p["gru_bih"] = init_linear_params(next(keys), state_dim, 3 * state_dim)
    _, p["gru_bhh"] = init_linear_params(next(keys), state_dim, 3 * state_dim)
    # Set2Set LSTM (input 2D, hidden D; gate order i, f, g, o)
    p["lstm_wih"], _ = init_linear_params(next(keys), 2 * state_dim, 4 * state_dim)
    p["lstm_whh"], _ = init_linear_params(next(keys), state_dim, 4 * state_dim)
    _, p["lstm_bih"] = init_linear_params(next(keys), state_dim, 4 * state_dim)
    _, p["lstm_bhh"] = init_linear_params(next(keys), state_dim, 4 * state_dim)
    p["o1_w"], p["o1_b"] = init_linear_params(next(keys), 2 * state_dim, 2 * state_dim)
    p["o2_w"], p["o2_b"] = init_linear_params(next(keys), 2 * state_dim, out_dim)

    fwd = jax.jit(functools.partial(mpnn_forward, num_conv=num_conv, processing_steps=3))
    y = fwd(x, edge_attr, src_onehot, agg_mean, batch_onehot, p)
    y = jax.block_until_ready(y)

    assert y.shape == (B, out_dim), y.shape
    assert bool(jnp.all(jnp.isfinite(y)))
    print("KERNEL_OK")
</pallas_src>

<mosaic_0001>
module attributes {stable_mosaic.version = 11 : i64} {
  func.func @_mpnn_fused_kernel(%arg0: memref<12x4xf32, #tpu.memory_space<vmem>>, %arg1: memref<20x3xf32, #tpu.memory_space<vmem>>, %arg2: memref<20x12xf32, #tpu.memory_space<vmem>>, %arg3: memref<12x20xf32, #tpu.memory_space<vmem>>, %arg4: memref<2x12xf32, #tpu.memory_space<vmem>>, %arg5: memref<32x1024xf32, #tpu.memory_space<vmem>>, %arg6: memref<1024x32xf32, #tpu.memory_space<vmem>>, %arg7: memref<4x32xf32, #tpu.memory_space<vmem>>, %arg8: memref<1x32xf32, #tpu.memory_space<vmem>>, %arg9: memref<3x32xf32, #tpu.memory_space<vmem>>, %arg10: memref<1x32xf32, #tpu.memory_space<vmem>>, %arg11: memref<32x1024xf32, #tpu.memory_space<vmem>>, %arg12: memref<1x1024xf32, #tpu.memory_space<vmem>>, %arg13: memref<1x32xf32, #tpu.memory_space<vmem>>, %arg14: memref<32x96xf32, #tpu.memory_space<vmem>>, %arg15: memref<32x96xf32, #tpu.memory_space<vmem>>, %arg16: memref<1x96xf32, #tpu.memory_space<vmem>>, %arg17: memref<1x96xf32, #tpu.memory_space<vmem>>, %arg18: memref<96x128xf32, #tpu.memory_space<vmem>>, %arg19: memref<1x128xf32, #tpu.memory_space<vmem>>, %arg20: memref<64x64xf32, #tpu.memory_space<vmem>>, %arg21: memref<1x64xf32, #tpu.memory_space<vmem>>, %arg22: memref<64x1xf32, #tpu.memory_space<vmem>>, %arg23: memref<1x1xf32, #tpu.memory_space<vmem>>, %arg24: memref<2x1xf32, #tpu.memory_space<vmem>>) attributes {dimension_semantics = [], scalar_prefetch = 0 : i64, scratch_operands = 0 : i64, tpu.core_type = #tpu.core_type<tc>} {
    %c0 = arith.constant 0 : index
    %c0_0 = arith.constant 0 : index
    %0 = vector.load %arg2[%c0, %c0_0] : memref<20x12xf32, #tpu.memory_space<vmem>>, vector<20x12xf32>
    %c0_1 = arith.constant 0 : index
    %c0_2 = arith.constant 0 : index
    %1 = vector.load %arg3[%c0_1, %c0_2] : memref<12x20xf32, #tpu.memory_space<vmem>>, vector<12x20xf32>
    %c0_3 = arith.constant 0 : index
    %c0_4 = arith.constant 0 : index
    %2 = vector.load %arg4[%c0_3, %c0_4] : memref<2x12xf32, #tpu.memory_space<vmem>>, vector<2x12xf32>
    %c0_5 = arith.constant 0 : index
    %c0_6 = arith.constant 0 : index
    %3 = vector.load %arg5[%c0_5, %c0_6] : memref<32x1024xf32, #tpu.memory_space<vmem>>, vector<32x1024xf32>
    %c0_7 = arith.constant 0 : index
    %c0_8 = arith.constant 0 : index
    %4 = vector.load %arg6[%c0_7, %c0_8] : memref<1024x32xf32, #tpu.memory_space<vmem>>, vector<1024x32xf32>
    %c0_9 = arith.constant 0 : index
    %c0_10 = arith.constant 0 : index
    %5 = vector.load %arg13[%c0_9, %c0_10] : memref<1x32xf32, #tpu.memory_space<vmem>>, vector<1x32xf32>
    %c0_11 = arith.constant 0 : index
    %c0_12 = arith.constant 0 : index
    %6 = vector.load %arg1[%c0_11, %c0_12] : memref<20x3xf32, #tpu.memory_space<vmem>>, vector<20x3xf32>
    %c0_13 = arith.constant 0 : index
    %c0_14 = arith.constant 0 : index
    %7 = vector.load %arg9[%c0_13, %c0_14] : memref<3x32xf32, #tpu.memory_space<vmem>>, vector<3x32xf32>
    %cst = arith.constant dense<0.000000e+00> : vector<20x32xf32>
    %8 = tpu.matmul %6, %7, %cst {dimension_numbers = #tpu.dot_dimension_numbers<[1], [0], [0], [1], [0, 0, 1, 1], [], []>} : vector<20x3xf32>, vector<3x32xf32>, vector<20x32xf32> -> vector<20x32xf32>
    %c0_15 = arith.constant 0 : index
    %c0_16 = arith.constant 0 : index
    %9 = vector.load %arg10[%c0_15, %c0_16] : memref<1x32xf32, #tpu.memory_space<vmem>>, vector<1x32xf32>
    %10 = vector.broadcast %9 : vector<1x32xf32> to vector<20x32xf32>
    %11 = arith.addf %8, %10 : vector<20x32xf32>
    %cst_17 = arith.constant 0.000000e+00 : f32
    %12 = vector.broadcast %cst_17 : f32 to vector<20x32xf32>
    %13 = arith.maximumf %11, %12 : vector<20x32xf32>
    %c0_18 = arith.constant 0 : index
    %c0_19 = arith.constant 0 : index
    %14 = vector.load %arg11[%c0_18, %c0_19] : memref<32x1024xf32, #tpu.memory_space<vmem>>, vector<32x1024xf32>
    %cst_20 = arith.constant dense<0.000000e+00> : vector<20x1024xf32>
    %15 = tpu.matmul %13, %14, %cst_20 {dimension_numbers = #tpu.dot_dimension_numbers<[1], [0], [0], [1], [0, 0, 1, 1], [], []>} : vector<20x32xf32>, vector<32x1024xf32>, vector<20x1024xf32> -> vector<20x1024xf32>
    %c0_21 = arith.constant 0 : index
    %c0_22 = arith.constant 0 : index
    %16 = vector.load %arg12[%c0_21, %c0_22] : memref<1x1024xf32, #tpu.memory_space<vmem>>, vector<1x1024xf32>
    %17 = vector.broadcast %16 : vector<1x1024xf32> to vector<20x1024xf32>
    %18 = arith.addf %15, %17 : vector<20x1024xf32>
    %c0_23 = arith.constant 0 : index
    %c0_24 = arith.constant 0 : index
    %19 = vector.load %arg0[%c0_23, %c0_24] : memref<12x4xf32, #tpu.memory_space<vmem>>, vector<12x4xf32>
    %c0_25 = arith.constant 0 : index
    %c0_26 = arith.constant 0 : index
    %20 = vector.load %arg7[%c0_25, %c0_26] : memref<4x32xf32, #tpu.memory_space<vmem>>, vector<4x32xf32>
    %cst_27 = arith.constant dense<0.000000e+00> : vector<12x32xf32>
    %21 = tpu.matmul %19, %20, %cst_27 {dimension_numbers = #tpu.dot_dimension_numbers<[1], [0], [0], [1], [0, 0, 1, 1], [], []>} : vector<12x4xf32>, vector<4x32xf32>, vector<12x32xf32> -> vector<12x32xf32>
    %c0_28 = arith.constant 0 : index
    %c0_29 = arith.constant 0 : index
    %22 = vector.load %arg8[%c0_28, %c0_29] : memref<1x32xf32, #tpu.memory_space<vmem>>, vector<1x32xf32>
    %23 = vector.broadcast %22 : vector<1x32xf32> to vector<12x32xf32>
    %24 = arith.addf %21, %23 : vector<12x32xf32>
    %cst_30 = arith.constant 0.000000e+00 : f32
    %25 = vector.broadcast %cst_30 : f32 to vector<12x32xf32>
    %26 = arith.maximumf %24, %25 : vector<12x32xf32>
    %c0_31 = arith.constant 0 : index
    %c0_32 = arith.constant 0 : index
    %27 = vector.load %arg14[%c0_31, %c0_32] : memref<32x96xf32, #tpu.memory_space<vmem>>, vector<32x96xf32>
    %c0_33 = arith.constant 0 : index
    %c0_34 = arith.constant 0 : index
    %28 = vector.load %arg15[%c0_33, %c0_34] : memref<32x96xf32, #tpu.memory_space<vmem>>, vector<32x96xf32>
    %c0_35 = arith.constant 0 : index
    %c0_36 = arith.constant 0 : index
    %29 = vector.load %arg16[%c0_35, %c0_36] : memref<1x96xf32, #tpu.memory_space<vmem>>, vector<1x96xf32>
    %c0_37 = arith.constant 0 : index
    %c0_38 = arith.constant 0 : index
    %30 = vector.load %arg17[%c0_37, %c0_38] : memref<1x96xf32, #tpu.memory_space<vmem>>, vector<1x96xf32>
    %cst_39 = arith.constant dense<0.000000e+00> : vector<20x32xf32>
    %31 = tpu.matmul %0, %26, %cst_39 {dimension_numbers = #tpu.dot_dimension_numbers<[1], [0], [0], [1], [0, 0, 1, 1], [], []>} : vector<20x12xf32>, vector<12x32xf32>, vector<20x32xf32> -> vector<20x32xf32>
    %cst_40 = arith.constant dense<0.000000e+00> : vector<20x1024xf32>
    %32 = tpu.matmul %31, %3, %cst_40 {dimension_numbers = #tpu.dot_dimension_numbers<[1], [0], [0], [1], [0, 0, 1, 1], [], []>} : vector<20x32xf32>, vector<32x1024xf32>, vector<20x1024xf32> -> vector<20x1024xf32>
    %33 = arith.mulf %32, %18 : vector<20x1024xf32>
    %cst_41 = arith.constant dense<0.000000e+00> : vector<20x32xf32>
    %34 = tpu.matmul %33, %4, %cst_41 {dimension_numbers = #tpu.dot_dimension_numbers<[1], [0], [0], [1], [0, 0, 1, 1], [], []>} : vector<20x1024xf32>, vector<1024x32xf32>, vector<20x32xf32> -> vector<20x32xf32>
    %cst_42 = arith.constant dense<0.000000e+00> : vector<12x32xf32>
    %35 = tpu.matmul %1, %34, %cst_42 {dimension_numbers = #tpu.dot_dimension_numbers<[1], [0], [0], [1], [0, 0, 1, 1], [], []>} : vector<12x20xf32>, vector<20x32xf32>, vector<12x32xf32> -> vector<12x32xf32>
    %36 = vector.broadcast %5 : vector<1x32xf32> to vector<12x32xf32>
    %37 = arith.addf %35, %36 : vector<12x32xf32>
    %cst_43 = arith.constant 0.000000e+00 : f32
    %38 = vector.broadcast %cst_43 : f32 to vector<12x32xf32>
    %39 = arith.maximumf %37, %38 : vector<12x32xf32>
    %cst_44 = arith.constant dense<0.000000e+00> : vector<12x96xf32>
    %40 = tpu.matmul %39, %27, %cst_44 {dimension_numbers = #tpu.dot_dimension_numbers<[1], [0], [0], [1], [0, 0, 1, 1], [], []>} : vector<12x32xf32>, vector<32x96xf32>, vector<12x96xf32> -> vector<12x96xf32>
    %41 = vector.broadcast %29 : vector<1x96xf32> to vector<12x96xf32>
    %42 = arith.addf %40, %41 : vector<12x96xf32>
    %cst_45 = arith.constant dense<0.000000e+00> : vector<12x96xf32>
    %43 = tpu.matmul %26, %28, %cst_45 {dimension_numbers = #tpu.dot_dimension_numbers<[1], [0], [0], [1], [0, 0, 1, 1], [], []>} : vector<12x32xf32>, vector<32x96xf32>, vector<12x96xf32> -> vector<12x96xf32>
    %44 = vector.broadcast %30 : vector<1x96xf32> to vector<12x96xf32>
    %45 = arith.addf %43, %44 : vector<12x96xf32>
    %46 = vector.extract_strided_slice %42 {offsets = [0, 0], sizes = [12, 32], strides = [1, 1]} : vector<12x96xf32> to vector<12x32xf32>
    %47 = vector.extract_strided_slice %45 {offsets = [0, 0], sizes = [12, 32], strides = [1, 1]} : vector<12x96xf32> to vector<12x32xf32>
    %48 = arith.addf %46, %47 : vector<12x32xf32>
    %49 = arith.negf %48 : vector<12x32xf32>
    %50 = math.exp %49 : vector<12x32xf32>
    %cst_46 = arith.constant 1.000000e+00 : f32
    %51 = vector.broadcast %cst_46 : f32 to vector<12x32xf32>
    %52 = arith.addf %51, %50 : vector<12x32xf32>
    %53 = arith.divf %51, %52 : vector<12x32xf32>
    %54 = vector.extract_strided_slice %42 {offsets = [0, 32], sizes = [12, 32], strides = [1, 1]} : vector<12x96xf32> to vector<12x32xf32>
    %55 = vector.extract_strided_slice %45 {offsets = [0, 32], sizes = [12, 32], strides = [1, 1]} : vector<12x96xf32> to vector<12x32xf32>
    %56 = arith.addf %54, %55 : vector<12x32xf32>
    %57 = arith.negf %56 : vector<12x32xf32>
    %58 = math.exp %57 : vector<12x32xf32>
    %cst_47 = arith.constant 1.000000e+00 : f32
    %59 = vector.broadcast %cst_47 : f32 to vector<12x32xf32>
    %60 = arith.addf %59, %58 : vector<12x32xf32>
    %61 = arith.divf %59, %60 : vector<12x32xf32>
    %62 = vector.extract_strided_slice %42 {offsets = [0, 64], sizes = [12, 32], strides = [1, 1]} : vector<12x96xf32> to vector<12x32xf32>
    %63 = vector.extract_strided_slice %45 {offsets = [0, 64], sizes = [12, 32], strides = [1, 1]} : vector<12x96xf32> to vector<12x32xf32>
    %64 = arith.mulf %53, %63 : vector<12x32xf32>
    %65 = arith.addf %62, %64 : vector<12x32xf32>
    %66 = math.tanh %65 : vector<12x32xf32>
    %cst_48 = arith.constant 1.000000e+00 : f32
    %67 = vector.broadcast %cst_48 : f32 to vector<12x32xf32>
    %68 = arith.subf %67, %61 : vector<12x32xf32>
    %69 = arith.mulf %68, %66 : vector<12x32xf32>
    %70 = arith.mulf %61, %26 : vector<12x32xf32>
    %71 = arith.addf %69, %70 : vector<12x32xf32>
    %cst_49 = arith.constant dense<0.000000e+00> : vector<20x32xf32>
    %72 = tpu.matmul %0, %71, %cst_49 {dimension_numbers = #tpu.dot_dimension_numbers<[1], [0], [0], [1], [0, 0, 1, 1], [], []>} : vector<20x12xf32>, vector<12x32xf32>, vector<20x32xf32> -> vector<20x32xf32>
    %cst_50 = arith.constant dense<0.000000e+00> : vector<20x1024xf32>
    %73 = tpu.matmul %72, %3, %cst_50 {dimension_numbers = #tpu.dot_dimension_numbers<[1], [0], [0], [1], [0, 0, 1, 1], [], []>} : vector<20x32xf32>, vector<32x1024xf32>, vector<20x1024xf32> -> vector<20x1024xf32>
    %74 = arith.mulf %73, %18 : vector<20x1024xf32>
    %cst_51 = arith.constant dense<0.000000e+00> : vector<20x32xf32>
    %75 = tpu.matmul %74, %4, %cst_51 {dimension_numbers = #tpu.dot_dimension_numbers<[1], [0], [0], [1], [0, 0, 1, 1], [], []>} : vector<20x1024xf32>, vector<1024x32xf32>, vector<20x32xf32> -> vector<20x32xf32>
    %cst_52 = arith.constant dense<0.000000e+00> : vector<12x32xf32>
    %76 = tpu.matmul %1, %75, %cst_52 {dimension_numbers = #tpu.dot_dimension_numbers<[1], [0], [0], [1], [0, 0, 1, 1], [], []>} : vector<12x20xf32>, vector<20x32xf32>, vector<12x32xf32> -> vector<12x32xf32>
    %77 = vector.broadcast %5 : vector<1x32xf32> to vector<12x32xf32>
    %78 = arith.addf %76, %77 : vector<12x32xf32>
    %cst_53 = arith.constant 0.000000e+00 : f32
    %79 = vector.broadcast %cst_53 : f32 to vector<12x32xf32>
    %80 = arith.maximumf %78, %79 : vector<12x32xf32>
    %cst_54 = arith.constant dense<0.000000e+00> : vector<12x96xf32>
    %81 = tpu.matmul %80, %27, %cst_54 {dimension_numbers = #tpu.dot_dimension_numbers<[1], [0], [0], [1], [0, 0, 1, 1], [], []>} : vector<12x32xf32>, vector<32x96xf32>, vector<12x96xf32> -> vector<12x96xf32>
    %82 = vector.broadcast %29 : vector<1x96xf32> to vector<12x96xf32>
    %83 = arith.addf %81, %82 : vector<12x96xf32>
    %cst_55 = arith.constant dense<0.000000e+00> : vector<12x96xf32>
    %84 = tpu.matmul %71, %28, %cst_55 {dimension_numbers = #tpu.dot_dimension_numbers<[1], [0], [0], [1], [0, 0, 1, 1], [], []>} : vector<12x32xf32>, vector<32x96xf32>, vector<12x96xf32> -> vector<12x96xf32>
    %85 = vector.broadcast %30 : vector<1x96xf32> to vector<12x96xf32>
    %86 = arith.addf %84, %85 : vector<12x96xf32>
    %87 = vector.extract_strided_slice %83 {offsets = [0, 0], sizes = [12, 32], strides = [1, 1]} : vector<12x96xf32> to vector<12x32xf32>
    %88 = vector.extract_strided_slice %86 {offsets = [0, 0], sizes = [12, 32], strides = [1, 1]} : vector<12x96xf32> to vector<12x32xf32>
    %89 = arith.addf %87, %88 : vector<12x32xf32>
    %90 = arith.negf %89 : vector<12x32xf32>
    %91 = math.exp %90 : vector<12x32xf32>
    %cst_56 = arith.constant 1.000000e+00 : f32
    %92 = vector.broadcast %cst_56 : f32 to vector<12x32xf32>
    %93 = arith.addf %92, %91 : vector<12x32xf32>
    %94 = arith.divf %92, %93 : vector<12x32xf32>
    %95 = vector.extract_strided_slice %83 {offsets = [0, 32], sizes = [12, 32], strides = [1, 1]} : vector<12x96xf32> to vector<12x32xf32>
    %96 = vector.extract_strided_slice %86 {offsets = [0, 32], sizes = [12, 32], strides = [1, 1]} : vector<12x96xf32> to vector<12x32xf32>
    %97 = arith.addf %95, %96 : vector<12x32xf32>
    %98 = arith.negf %97 : vector<12x32xf32>
    %99 = math.exp %98 : vector<12x32xf32>
    %cst_57 = arith.constant 1.000000e+00 : f32
    %100 = vector.broadcast %cst_57 : f32 to vector<12x32xf32>
    %101 = arith.addf %100, %99 : vector<12x32xf32>
    %102 = arith.divf %100, %101 : vector<12x32xf32>
    %103 = vector.extract_strided_slice %83 {offsets = [0, 64], sizes = [12, 32], strides = [1, 1]} : vector<12x96xf32> to vector<12x32xf32>
    %104 = vector.extract_strided_slice %86 {offsets = [0, 64], sizes = [12, 32], strides = [1, 1]} : vector<12x96xf32> to vector<12x32xf32>
    %105 = arith.mulf %94, %104 : vector<12x32xf32>
    %106 = arith.addf %103, %105 : vector<12x32xf32>
    %107 = math.tanh %106 : vector<12x32xf32>
    %cst_58 = arith.constant 1.000000e+00 : f32
    %108 = vector.broadcast %cst_58 : f32 to vector<12x32xf32>
    %109 = arith.subf %108, %102 : vector<12x32xf32>
    %110 = arith.mulf %109, %107 : vector<12x32xf32>
    %111 = arith.mulf %102, %71 : vector<12x32xf32>
    %112 = arith.addf %110, %111 : vector<12x32xf32>
    %cst_59 = arith.constant dense<0.000000e+00> : vector<20x32xf32>
    %113 = tpu.matmul %0, %112, %cst_59 {dimension_numbers = #tpu.dot_dimension_numbers<[1], [0], [0], [1], [0, 0, 1, 1], [], []>} : vector<20x12xf32>, vector<12x32xf32>, vector<20x32xf32> -> vector<20x32xf32>
    %cst_60 = arith.constant dense<0.000000e+00> : vector<20x1024xf32>
    %114 = tpu.matmul %113, %3, %cst_60 {dimension_numbers = #tpu.dot_dimension_numbers<[1], [0], [0], [1], [0, 0, 1, 1], [], []>} : vector<20x32xf32>, vector<32x1024xf32>, vector<20x1024xf32> -> vector<20x1024xf32>
    %115 = arith.mulf %114, %18 : vector<20x1024xf32>
    %cst_61 = arith.constant dense<0.000000e+00> : vector<20x32xf32>
    %116 = tpu.matmul %115, %4, %cst_61 {dimension_numbers = #tpu.dot_dimension_numbers<[1], [0], [0], [1], [0, 0, 1, 1], [], []>} : vector<20x1024xf32>, vector<1024x32xf32>, vector<20x32xf32> -> vector<20x32xf32>
    %cst_62 = arith.constant dense<0.000000e+00> : vector<12x32xf32>
    %117 = tpu.matmul %1, %116, %cst_62 {dimension_numbers = #tpu.dot_dimension_numbers<[1], [0], [0], [1], [0, 0, 1, 1], [], []>} : vector<12x20xf32>, vector<20x32xf32>, vector<12x32xf32> -> vector<12x32xf32>
    %118 = vector.broadcast %5 : vector<1x32xf32> to vector<12x32xf32>
    %119 = arith.addf %117, %118 : vector<12x32xf32>
    %cst_63 = arith.constant 0.000000e+00 : f32
    %120 = vector.broadcast %cst_63 : f32 to vector<12x32xf32>
    %121 = arith.maximumf %119, %120 : vector<12x32xf32>
    %cst_64 = arith.constant dense<0.000000e+00> : vector<12x96xf32>
    %122 = tpu.matmul %121, %27, %cst_64 {dimension_numbers = #tpu.dot_dimension_numbers<[1], [0], [0], [1], [0, 0, 1, 1], [], []>} : vector<12x32xf32>, vector<32x96xf32>, vector<12x96xf32> -> vector<12x96xf32>
    %123 = vector.broadcast %29 : vector<1x96xf32> to vector<12x96xf32>
    %124 = arith.addf %122, %123 : vector<12x96xf32>
    %cst_65 = arith.constant dense<0.000000e+00> : vector<12x96xf32>
    %125 = tpu.matmul %112, %28, %cst_65 {dimension_numbers = #tpu.dot_dimension_numbers<[1], [0], [0], [1], [0, 0, 1, 1], [], []>} : vector<12x32xf32>, vector<32x96xf32>, vector<12x96xf32> -> vector<12x96xf32>
    %126 = vector.broadcast %30 : vector<1x96xf32> to vector<12x96xf32>
    %127 = arith.addf %125, %126 : vector<12x96xf32>
    %128 = vector.extract_strided_slice %124 {offsets = [0, 0], sizes = [12, 32], strides = [1, 1]} : vector<12x96xf32> to vector<12x32xf32>
    %129 = vector.extract_strided_slice %127 {offsets = [0, 0], sizes = [12, 32], strides = [1, 1]} : vector<12x96xf32> to vector<12x32xf32>
    %130 = arith.addf %128, %129 : vector<12x32xf32>
    %131 = arith.negf %130 : vector<12x32xf32>
    %132 = math.exp %131 : vector<12x32xf32>
    %cst_66 = arith.constant 1.000000e+00 : f32
    %133 = vector.broadcast %cst_66 : f32 to vector<12x32xf32>
    %134 = arith.addf %133, %132 : vector<12x32xf32>
    %135 = arith.divf %133, %134 : vector<12x32xf32>
    %136 = vector.extract_strided_slice %124 {offsets = [0, 32], sizes = [12, 32], strides = [1, 1]} : vector<12x96xf32> to vector<12x32xf32>
    %137 = vector.extract_strided_slice %127 {offsets = [0, 32], sizes = [12, 32], strides = [1, 1]} : vector<12x96xf32> to vector<12x32xf32>
    %138 = arith.addf %136, %137 : vector<12x32xf32>
    %139 = arith.negf %138 : vector<12x32xf32>
    %140 = math.exp %139 : vector<12x32xf32>
    %cst_67 = arith.constant 1.000000e+00 : f32
    %141 = vector.broadcast %cst_67 : f32 to vector<12x32xf32>
    %142 = arith.addf %141, %140 : vector<12x32xf32>
    %143 = arith.divf %141, %142 : vector<12x32xf32>
    %144 = vector.extract_strided_slice %124 {offsets = [0, 64], sizes = [12, 32], strides = [1, 1]} : vector<12x96xf32> to vector<12x32xf32>
    %145 = vector.extract_strided_slice %127 {offsets = [0, 64], sizes = [12, 32], strides = [1, 1]} : vector<12x96xf32> to vector<12x32xf32>
    %146 = arith.mulf %135, %145 : vector<12x32xf32>
    %147 = arith.addf %144, %146 : vector<12x32xf32>
    %148 = math.tanh %147 : vector<12x32xf32>
    %cst_68 = arith.constant 1.000000e+00 : f32
    %149 = vector.broadcast %cst_68 : f32 to vector<12x32xf32>
    %150 = arith.subf %149, %143 : vector<12x32xf32>
    %151 = arith.mulf %150, %148 : vector<12x32xf32>
    %152 = arith.mulf %143, %112 : vector<12x32xf32>
    %153 = arith.addf %151, %152 : vector<12x32xf32>
    %154 = tpu.transpose %153, [1, 0] : vector<12x32xf32> -> vector<32x12xf32>
    %c0_69 = arith.constant 0 : index
    %c0_70 = arith.constant 0 : index
    %155 = vector.load %arg18[%c0_69, %c0_70] : memref<96x128xf32, #tpu.memory_space<vmem>>, vector<96x128xf32>
    %c0_71 = arith.constant 0 : index
    %c0_72 = arith.constant 0 : index
    %156 = vector.load %arg19[%c0_71, %c0_72] : memref<1x128xf32, #tpu.memory_space<vmem>>, vector<1x128xf32>
    %cst_73 = arith.constant 0.000000e+00 : f32
    %157 = vector.broadcast %cst_73 : f32 to vector<2x64xf32>
    %cst_74 = arith.constant 0.000000e+00 : f32
    %158 = vector.broadcast %cst_74 : f32 to vector<2x32xf32>
    %cst_75 = arith.constant 0.000000e+00 : f32
    %159 = vector.broadcast %cst_75 : f32 to vector<2x32xf32>
    %160 = tpu.concatenate %157, %158 in 1 : vector<2x64xf32>, vector<2x32xf32> -> vector<2x96xf32>
    %cst_76 = arith.constant dense<0.000000e+00> : vector<2x128xf32>
    %161 = tpu.matmul %160, %155, %cst_76 {dimension_numbers = #tpu.dot_dimension_numbers<[1], [0], [0], [1], [0, 0, 1, 1], [], []>} : vector<2x96xf32>, vector<96x128xf32>, vector<2x128xf32> -> vector<2x128xf32>
    %162 = vector.broadcast %156 : vector<1x128xf32> to vector<2x128xf32>
    %163 = arith.addf %161, %162 : vector<2x128xf32>
    %164 = vector.extract_strided_slice %163 {offsets = [0, 0], sizes = [2, 32], strides = [1, 1]} : vector<2x128xf32> to vector<2x32xf32>
    %165 = arith.negf %164 : vector<2x32xf32>
    %166 = math.exp %165 : vector<2x32xf32>
    %cst_77 = arith.constant 1.000000e+00 : f32
    %167 = vector.broadcast %cst_77 : f32 to vector<2x32xf32>
    %168 = arith.addf %167, %166 : vector<2x32xf32>
    %169 = arith.divf %167, %168 : vector<2x32xf32>
    %170 = vector.extract_strided_slice %163 {offsets = [0, 32], sizes = [2, 32], strides = [1, 1]} : vector<2x128xf32> to vector<2x32xf32>
    %171 = arith.negf %170 : vector<2x32xf32>
    %172 = math.exp %171 : vector<2x32xf32>
    %cst_78 = arith.constant 1.000000e+00 : f32
    %173 = vector.broadcast %cst_78 : f32 to vector<2x32xf32>
    %174 = arith.addf %173, %172 : vector<2x32xf32>
    %175 = arith.divf %173, %174 : vector<2x32xf32>
    %176 = vector.extract_strided_slice %163 {offsets = [0, 64], sizes = [2, 32], strides = [1, 1]} : vector<2x128xf32> to vector<2x32xf32>
    %177 = math.tanh %176 : vector<2x32xf32>
    %178 = vector.extract_strided_slice %163 {offsets = [0, 96], sizes = [2, 32], strides = [1, 1]} : vector<2x128xf32> to vector<2x32xf32>
    %179 = arith.negf %178 : vector<2x32xf32>
    %180 = math.exp %179 : vector<2x32xf32>
    %cst_79 = arith.constant 1.000000e+00 : f32
    %181 = vector.broadcast %cst_79 : f32 to vector<2x32xf32>
    %182 = arith.addf %181, %180 : vector<2x32xf32>
    %183 = arith.divf %181, %182 : vector<2x32xf32>
    %184 = arith.mulf %175, %159 : vector<2x32xf32>
    %185 = arith.mulf %169, %177 : vector<2x32xf32>
    %186 = arith.addf %184, %185 : vector<2x32xf32>
    %187 = math.tanh %186 : vector<2x32xf32>
    %188 = arith.mulf %183, %187 : vector<2x32xf32>
    %cst_80 = arith.constant dense<0.000000e+00> : vector<2x12xf32>
    %189 = tpu.matmul %188, %154, %cst_80 {dimension_numbers = #tpu.dot_dimension_numbers<[1], [0], [0], [1], [0, 0, 1, 1], [], []>} : vector<2x32xf32>, vector<32x12xf32>, vector<2x12xf32> -> vector<2x12xf32>
    %cst_81 = arith.constant 5.000000e-01 : f32
    %190 = vector.broadcast %cst_81 : f32 to vector<2x12xf32>
    %191 = arith.cmpf ogt, %2, %190 : vector<2x12xf32>
    %cst_82 = arith.constant -1.000000e+30 : f32
    %192 = vector.broadcast %cst_82 : f32 to vector<2x12xf32>
    %193 = arith.select %191, %189, %192 : vector<2x12xi1>, vector<2x12xf32>
    %cst_83 = arith.constant dense<0xFF800000> : vector<2xf32>
    %194 = vector.multi_reduction <maximumf>, %193, %cst_83 [1] : vector<2x12xf32> to vector<2xf32>
    %195 = vector.shape_cast %194 : vector<2xf32> to vector<2x1xf32>
    %196 = vector.broadcast %195 : vector<2x1xf32> to vector<2x12xf32>
    %197 = arith.subf %193, %196 : vector<2x12xf32>
    %198 = math.exp %197 : vector<2x12xf32>
    %cst_84 = arith.constant dense<0.000000e+00> : vector<2xf32>
    %199 = vector.multi_reduction <add>, %198, %cst_84 [1] : vector<2x12xf32> to vector<2xf32>
    %200 = vector.shape_cast %199 : vector<2xf32> to vector<2x1xf32>
    %cst_85 = arith.constant 9.99999968E-21 : f32
    %201 = vector.broadcast %cst_85 : f32 to vector<2x1xf32>
    %202 = arith.maximumf %200, %201 : vector<2x1xf32>
    %203 = tpu.reciprocal %202 {approx = true} : vector<2x1xf32> -> vector<2x1xf32>
    %204 = vector.broadcast %203 : vector<2x1xf32> to vector<2x12xf32>
    %205 = arith.mulf %198, %204 : vector<2x12xf32>
    %cst_86 = arith.constant dense<0.000000e+00> : vector<2x32xf32>
    %206 = tpu.matmul %205, %153, %cst_86 {dimension_numbers = #tpu.dot_dimension_numbers<[1], [0], [0], [1], [0, 0, 1, 1], [], []>} : vector<2x12xf32>, vector<12x32xf32>, vector<2x32xf32> -> vector<2x32xf32>
    %207 = tpu.concatenate %188, %206 in 1 : vector<2x32xf32>, vector<2x32xf32> -> vector<2x64xf32>
    %208 = tpu.concatenate %207, %188 in 1 : vector<2x64xf32>, vector<2x32xf32> -> vector<2x96xf32>
    %cst_87 = arith.constant dense<0.000000e+00> : vector<2x128xf32>
    %209 = tpu.matmul %208, %155, %cst_87 {dimension_numbers = #tpu.dot_dimension_numbers<[1], [0], [0], [1], [0, 0, 1, 1], [], []>} : vector<2x96xf32>, vector<96x128xf32>, vector<2x128xf32> -> vector<2x128xf32>
    %210 = vector.broadcast %156 : vector<1x128xf32> to vector<2x128xf32>
    %211 = arith.addf %209, %210 : vector<2x128xf32>
    %212 = vector.extract_strided_slice %211 {offsets = [0, 0], sizes = [2, 32], strides = [1, 1]} : vector<2x128xf32> to vector<2x32xf32>
    %213 = arith.negf %212 : vector<2x32xf32>
    %214 = math.exp %213 : vector<2x32xf32>
    %cst_88 = arith.constant 1.000000e+00 : f32
    %215 = vector.broadcast %cst_88 : f32 to vector<2x32xf32>
    %216 = arith.addf %215, %214 : vector<2x32xf32>
    %217 = arith.divf %215, %216 : vector<2x32xf32>
    %218 = vector.extract_strided_slice %211 {offsets = [0, 32], sizes = [2, 32], strides = [1, 1]} : vector<2x128xf32> to vector<2x32xf32>
    %219 = arith.negf %218 : vector<2x32xf32>
    %220 = math.exp %219 : vector<2x32xf32>
    %cst_89 = arith.constant 1.000000e+00 : f32
    %221 = vector.broadcast %cst_89 : f32 to vector<2x32xf32>
    %222 = arith.addf %221, %220 : vector<2x32xf32>
    %223 = arith.divf %221, %222 : vector<2x32xf32>
    %224 = vector.extract_strided_slice %211 {offsets = [0, 64], sizes = [2, 32], strides = [1, 1]} : vector<2x128xf32> to vector<2x32xf32>
    %225 = math.tanh %224 : vector<2x32xf32>
    %226 = vector.extract_strided_slice %211 {offsets = [0, 96], sizes = [2, 32], strides = [1, 1]} : vector<2x128xf32> to vector<2x32xf32>
    %227 = arith.negf %226 : vector<2x32xf32>
    %228 = math.exp %227 : vector<2x32xf32>
    %cst_90 = arith.constant 1.000000e+00 : f32
    %229 = vector.broadcast %cst_90 : f32 to vector<2x32xf32>
    %230 = arith.addf %229, %228 : vector<2x32xf32>
    %231 = arith.divf %229, %230 : vector<2x32xf32>
    %232 = arith.mulf %223, %186 : vector<2x32xf32>
    %233 = arith.mulf %217, %225 : vector<2x32xf32>
    %234 = arith.addf %232, %233 : vector<2x32xf32>
    %235 = math.tanh %234 : vector<2x32xf32>
    %236 = arith.mulf %231, %235 : vector<2x32xf32>
    %cst_91 = arith.constant dense<0.000000e+00> : vector<2x12xf32>
    %237 = tpu.matmul %236, %154, %cst_91 {dimension_numbers = #tpu.dot_dimension_numbers<[1], [0], [0], [1], [0, 0, 1, 1], [], []>} : vector<2x32xf32>, vector<32x12xf32>, vector<2x12xf32> -> vector<2x12xf32>
    %cst_92 = arith.constant 5.000000e-01 : f32
    %238 = vector.broadcast %cst_92 : f32 to vector<2x12xf32>
    %239 = arith.cmpf ogt, %2, %238 : vector<2x12xf32>
    %cst_93 = arith.constant -1.000000e+30 : f32
    %240 = vector.broadcast %cst_93 : f32 to vector<2x12xf32>
    %241 = arith.select %239, %237, %240 : vector<2x12xi1>, vector<2x12xf32>
    %cst_94 = arith.constant dense<0xFF800000> : vector<2xf32>
    %242 = vector.multi_reduction <maximumf>, %241, %cst_94 [1] : vector<2x12xf32> to vector<2xf32>
    %243 = vector.shape_cast %242 : vector<2xf32> to vector<2x1xf32>
    %244 = vector.broadcast %243 : vector<2x1xf32> to vector<2x12xf32>
    %245 = arith.subf %241, %244 : vector<2x12xf32>
    %246 = math.exp %245 : vector<2x12xf32>
    %cst_95 = arith.constant dense<0.000000e+00> : vector<2xf32>
    %247 = vector.multi_reduction <add>, %246, %cst_95 [1] : vector<2x12xf32> to vector<2xf32>
    %248 = vector.shape_cast %247 : vector<2xf32> to vector<2x1xf32>
    %cst_96 = arith.constant 9.99999968E-21 : f32
    %249 = vector.broadcast %cst_96 : f32 to vector<2x1xf32>
    %250 = arith.maximumf %248, %249 : vector<2x1xf32>
    %251 = tpu.reciprocal %250 {approx = true} : vector<2x1xf32> -> vector<2x1xf32>
    %252 = vector.broadcast %251 : vector<2x1xf32> to vector<2x12xf32>
    %253 = arith.mulf %246, %252 : vector<2x12xf32>
    %cst_97 = arith.constant dense<0.000000e+00> : vector<2x32xf32>
    %254 = tpu.matmul %253, %153, %cst_97 {dimension_numbers = #tpu.dot_dimension_numbers<[1], [0], [0], [1], [0, 0, 1, 1], [], []>} : vector<2x12xf32>, vector<12x32xf32>, vector<2x32xf32> -> vector<2x32xf32>
    %255 = tpu.concatenate %236, %254 in 1 : vector<2x32xf32>, vector<2x32xf32> -> vector<2x64xf32>
    %256 = tpu.concatenate %255, %236 in 1 : vector<2x64xf32>, vector<2x32xf32> -> vector<2x96xf32>
    %cst_98 = arith.constant dense<0.000000e+00> : vector<2x128xf32>
    %257 = tpu.matmul %256, %155, %cst_98 {dimension_numbers = #tpu.dot_dimension_numbers<[1], [0], [0], [1], [0, 0, 1, 1], [], []>} : vector<2x96xf32>, vector<96x128xf32>, vector<2x128xf32> -> vector<2x128xf32>
    %258 = vector.broadcast %156 : vector<1x128xf32> to vector<2x128xf32>
    %259 = arith.addf %257, %258 : vector<2x128xf32>
    %260 = vector.extract_strided_slice %259 {offsets = [0, 0], sizes = [2, 32], strides = [1, 1]} : vector<2x128xf32> to vector<2x32xf32>
    %261 = arith.negf %260 : vector<2x32xf32>
    %262 = math.exp %261 : vector<2x32xf32>
    %cst_99 = arith.constant 1.000000e+00 : f32
    %263 = vector.broadcast %cst_99 : f32 to vector<2x32xf32>
    %264 = arith.addf %263, %262 : vector<2x32xf32>
    %265 = arith.divf %263, %264 : vector<2x32xf32>
    %266 = vector.extract_strided_slice %259 {offsets = [0, 32], sizes = [2, 32], strides = [1, 1]} : vector<2x128xf32> to vector<2x32xf32>
    %267 = arith.negf %266 : vector<2x32xf32>
    %268 = math.exp %267 : vector<2x32xf32>
    %cst_100 = arith.constant 1.000000e+00 : f32
    %269 = vector.broadcast %cst_100 : f32 to vector<2x32xf32>
    %270 = arith.addf %269, %268 : vector<2x32xf32>
    %271 = arith.divf %269, %270 : vector<2x32xf32>
    %272 = vector.extract_strided_slice %259 {offsets = [0, 64], sizes = [2, 32], strides = [1, 1]} : vector<2x128xf32> to vector<2x32xf32>
    %273 = math.tanh %272 : vector<2x32xf32>
    %274 = vector.extract_strided_slice %259 {offsets = [0, 96], sizes = [2, 32], strides = [1, 1]} : vector<2x128xf32> to vector<2x32xf32>
    %275 = arith.negf %274 : vector<2x32xf32>
    %276 = math.exp %275 : vector<2x32xf32>
    %cst_101 = arith.constant 1.000000e+00 : f32
    %277 = vector.broadcast %cst_101 : f32 to vector<2x32xf32>
    %278 = arith.addf %277, %276 : vector<2x32xf32>
    %279 = arith.divf %277, %278 : vector<2x32xf32>
    %280 = arith.mulf %271, %234 : vector<2x32xf32>
    %281 = arith.mulf %265, %273 : vector<2x32xf32>
    %282 = arith.addf %280, %281 : vector<2x32xf32>
    %283 = math.tanh %282 : vector<2x32xf32>
    %284 = arith.mulf %279, %283 : vector<2x32xf32>
    %cst_102 = arith.constant dense<0.000000e+00> : vector<2x12xf32>
    %285 = tpu.matmul %284, %154, %cst_102 {dimension_numbers = #tpu.dot_dimension_numbers<[1], [0], [0], [1], [0, 0, 1, 1], [], []>} : vector<2x32xf32>, vector<32x12xf32>, vector<2x12xf32> -> vector<2x12xf32>
    %cst_103 = arith.constant 5.000000e-01 : f32
    %286 = vector.broadcast %cst_103 : f32 to vector<2x12xf32>
    %287 = arith.cmpf ogt, %2, %286 : vector<2x12xf32>
    %cst_104 = arith.constant -1.000000e+30 : f32
    %288 = vector.broadcast %cst_104 : f32 to vector<2x12xf32>
    %289 = arith.select %287, %285, %288 : vector<2x12xi1>, vector<2x12xf32>
    %cst_105 = arith.constant dense<0xFF800000> : vector<2xf32>
    %290 = vector.multi_reduction <maximumf>, %289, %cst_105 [1] : vector<2x12xf32> to vector<2xf32>
    %291 = vector.shape_cast %290 : vector<2xf32> to vector<2x1xf32>
    %292 = vector.broadcast %291 : vector<2x1xf32> to vector<2x12xf32>
    %293 = arith.subf %289, %292 : vector<2x12xf32>
    %294 = math.exp %293 : vector<2x12xf32>
    %cst_106 = arith.constant dense<0.000000e+00> : vector<2xf32>
    %295 = vector.multi_reduction <add>, %294, %cst_106 [1] : vector<2x12xf32> to vector<2xf32>
    %296 = vector.shape_cast %295 : vector<2xf32> to vector<2x1xf32>
    %cst_107 = arith.constant 9.99999968E-21 : f32
    %297 = vector.broadcast %cst_107 : f32 to vector<2x1xf32>
    %298 = arith.maximumf %296, %297 : vector<2x1xf32>
    %299 = tpu.reciprocal %298 {approx = true} : vector<2x1xf32> -> vector<2x1xf32>
    %300 = vector.broadcast %299 : vector<2x1xf32> to vector<2x12xf32>
    %301 = arith.mulf %294, %300 : vector<2x12xf32>
    %cst_108 = arith.constant dense<0.000000e+00> : vector<2x32xf32>
    %302 = tpu.matmul %301, %153, %cst_108 {dimension_numbers = #tpu.dot_dimension_numbers<[1], [0], [0], [1], [0, 0, 1, 1], [], []>} : vector<2x12xf32>, vector<12x32xf32>, vector<2x32xf32> -> vector<2x32xf32>
    %303 = tpu.concatenate %284, %302 in 1 : vector<2x32xf32>, vector<2x32xf32> -> vector<2x64xf32>
    %c0_109 = arith.constant 0 : index
    %c0_110 = arith.constant 0 : index
    %304 = vector.load %arg20[%c0_109, %c0_110] : memref<64x64xf32, #tpu.memory_space<vmem>>, vector<64x64xf32>
    %cst_111 = arith.constant dense<0.000000e+00> : vector<2x64xf32>
    %305 = tpu.matmul %303, %304, %cst_111 {dimension_numbers = #tpu.dot_dimension_numbers<[1], [0], [0], [1], [0, 0, 1, 1], [], []>} : vector<2x64xf32>, vector<64x64xf32>, vector<2x64xf32> -> vector<2x64xf32>
    %c0_112 = arith.constant 0 : index
    %c0_113 = arith.constant 0 : index
    %306 = vector.load %arg21[%c0_112, %c0_113] : memref<1x64xf32, #tpu.memory_space<vmem>>, vector<1x64xf32>
    %307 = vector.broadcast %306 : vector<1x64xf32> to vector<2x64xf32>
    %308 = arith.addf %305, %307 : vector<2x64xf32>
    %cst_114 = arith.constant 0.000000e+00 : f32
    %309 = vector.broadcast %cst_114 : f32 to vector<2x64xf32>
    %310 = arith.maximumf %308, %309 : vector<2x64xf32>
    %c0_115 = arith.constant 0 : index
    %c0_116 = arith.constant 0 : index
    %311 = vector.load %arg22[%c0_115, %c0_116] : memref<64x1xf32, #tpu.memory_space<vmem>>, vector<64x1xf32>
    %cst_117 = arith.constant dense<0.000000e+00> : vector<2x1xf32>
    %312 = tpu.matmul %310, %311, %cst_117 {dimension_numbers = #tpu.dot_dimension_numbers<[1], [0], [0], [1], [0, 0, 1, 1], [], []>} : vector<2x64xf32>, vector<64x1xf32>, vector<2x1xf32> -> vector<2x1xf32>
    %c0_118 = arith.constant 0 : index
    %c0_119 = arith.constant 0 : index
    %313 = vector.load %arg23[%c0_118, %c0_119] : memref<1x1xf32, #tpu.memory_space<vmem>>, vector<1x1xf32>
    %314 = vector.broadcast %313 : vector<1x1xf32> to vector<2x1xf32>
    %315 = arith.addf %312, %314 : vector<2x1xf32>
    %c0_120 = arith.constant 0 : index
    %c0_121 = arith.constant 0 : index
    %316 = vector.load %arg24[%c0_120, %c0_121] : memref<2x1xf32, #tpu.memory_space<vmem>>, vector<2x1xf32>
    tpu.vector_store %arg24[%c0_120, %c0_121], %315 {strides = array<i32>} : memref<2x1xf32, #tpu.memory_space<vmem>>, vector<2x1xf32>,
    return
  }
}

</mosaic_0001>

<bundles_post_ra>
// kernel: mpnn_forward.1
= control target key start
LH: loop header
LB: loop body
LE: loop exit
PB: predicated region body
PF: predicated region fallthrough
CT: control target
= control target key end

     0   :  { %vm264_vm0 = vcmask 1042432   ;;  %vm254_vm1 = vcmask 23552   ;;  %vm347_vm2 = vcmask 261120   ;;  %vm579_vm3 = vcmask 1043456   ;;  %s3511_s26 = smov 96   ;;  %s6201_s9 = inlined_call_operand.vmem [shape: f32[3,32], index: 9, kind: input, shape index: {}]   ;;  %s6202_s1 = inlined_call_operand.vmem [shape: f32[20,3], index: 1, kind: input, shape index: {}]   ;;  %s6203_s11 = inlined_call_operand.vmem [shape: f32[32,1024], index: 11, kind: input, shape index: {}]   ;;  %s6204_s10 = inlined_call_operand.vmem [shape: f32[1,32], index: 10, kind: input, shape index: {}]   ;;  %s6205_s7 = inlined_call_operand.vmem [shape: f32[4,32], index: 7, kind: input, shape index: {}]   ;;  %s6206_s0 = inlined_call_operand.vmem [shape: f32[12,4], index: 0, kind: input, shape index: {}]   ;;  %s6207_s8 = inlined_call_operand.vmem [shape: f32[1,32], index: 8, kind: input, shape index: {}]   ;;  %s6208_s5 = inlined_call_operand.vmem [shape: f32[32,1024], index: 5, kind: input, shape index: {}]   ;;  %s6209_s2 = inlined_call_operand.vmem [shape: f32[20,12], index: 2, kind: input, shape index: {}]   ;;  %s6210_s6 = inlined_call_operand.vmem [shape: f32[1024,32], index: 6, kind: input, shape index: {}]   ;;  %s6211_s12 = inlined_call_operand.vmem [shape: f32[1,1024], index: 12, kind: input, shape index: {}]   ;;  %s6212_s13 = inlined_call_operand.vmem [shape: f32[1,32], index: 13, kind: input, shape index: {}]   ;;  %s6213_s14 = inlined_call_operand.vmem [shape: f32[32,96], index: 14, kind: input, shape index: {}]   ;;  %s6214_s3 = inlined_call_operand.vmem [shape: f32[12,20], index: 3, kind: input, shape index: {}]   ;;  %s6215_s15 = inlined_call_operand.vmem [shape: f32[32,96], index: 15, kind: input, shape index: {}]   ;;  %s6216_s17 = inlined_call_operand.vmem [shape: f32[1,96], index: 17, kind: input, shape index: {}]   ;;  %s6217_s16 = inlined_call_operand.vmem [shape: f32[1,96], index: 16, kind: input, shape index: {}]   ;;  %s6218_s18 = inlined_call_operand.vmem [shape: f32[96,128], index: 18, kind: input, shape index: {}]   ;;  %s6219_s19 = inlined_call_operand.vmem [shape: f32[1,128], index: 19, kind: input, shape index: {}]   ;;  %s6220_s4 = inlined_call_operand.vmem [shape: f32[2,12], index: 4, kind: input, shape index: {}]   ;;  %s6221_s20 = inlined_call_operand.vmem [shape: f32[64,64], index: 20, kind: input, shape index: {}]   ;;  %s6222_s21 = inlined_call_operand.vmem [shape: f32[1,64], index: 21, kind: input, shape index: {}]   ;;  %s6223_s22 = inlined_call_operand.vmem [shape: f32[64,1], index: 22, kind: input, shape index: {}]   ;;  %s6224_s23 = inlined_call_operand.<no memory space> [shape: f32[1,1], index: 23, kind: input, shape index: {}]   ;;  %s6225_s24 = inlined_call_operand.vmem [shape: f32[2,1], index: 24, kind: output, shape index: {}]  }
   0x1   :  { %6382 = sst [smem:[#allocation135_spill]] %s6201_s9  ;;  %vm572_vm4 = vcmask 31744   ;;  %vm618_vm5 = vcmask 97280   ;;  %vm1109_vm6 = vcmask 162816  }
   0x2   :  { %6383 = sst [smem:[#allocation136_spill]] %s6202_s1 }
   0x3   :  { %6384 = sst [smem:[#allocation137_spill]] %s6203_s11 }
   0x4   :  { %6385 = sst [smem:[#allocation138_spill]] %s6204_s10 }
   0x5   :  { %6386 = sst [smem:[#allocation139_spill]] %s6205_s7 }
   0x6   :  { %6387 = sst [smem:[#allocation140_spill]] %s6206_s0  ;;  %s3510_s0 = smov 32  }
   0x7   :  { %6388 = sst [smem:[#allocation141_spill]] %s6207_s8 }
   0x8   :  { %6389 = sst [smem:[#allocation142_spill]] %s6208_s5 }
   0x9   :  { %6390 = sst [smem:[#allocation143_spill]] %s6209_s2 }
   0xa   :  { %s6391_s27 = sld [smem:[#allocation135_spill]] }
   0xb   :  { %s6392_s11 = sld [smem:[#allocation136_spill]] }
   0xc   :  { %s6393_s9 = sld [smem:[#allocation137_spill]] }
   0xd   :  { %s6394_s29 = sld [smem:[#allocation138_spill]] }
   0xe   :  { %s6395_s2 = sld [smem:[#allocation139_spill]] }
   0xf   :  { %s6396_s7 = sld [smem:[#allocation140_spill]] }
  0x10   :  { %v249_v0 = vld [vmem:[%s6391_s27] sm:$0x7]  ;;  %s6397_s27 = sld [smem:[#allocation142_spill]] }
  0x11   :  { %v246_v1 = vld [vmem:[%s6392_s11] sm:$0xff]  ;;  %3082 = vmatpush.msk.msra.mxu0 %vm264_vm0, %v249_v0  ;;  %v247_v6 = vld [vmem:[%s6392_s11 + $0x8] sm:$0xff]  ;;  %v248_v7 = vld [vmem:[%s6392_s11 + $0x10] sm:$0xf]  ;;  %s6399_s10 = sld [smem:[#allocation143_spill]]  ;;  %s3509_s11 = smov 64  }
  0x12   :  { %v321_v2 = vld [vmem:[%s6393_s9 + $0xc0] sm:$0xff]  ;;  %v322_v3 = vld [vmem:[%s6393_s9 + $0xc8] sm:$0xff]  ;;  %3083 = vmatmul.msk.f32.vlgmr.msra.gmra.mxu0 %vm254_vm1, %v246_v1  ;;  %v323_v4 = vld [vmem:[%s6393_s9 + $0xd0] sm:$0xff] }
  0x13   :  { %369 = vmatpush.msra.mxu1 %v321_v2  ;;  %v324_v5 = vld [vmem:[%s6393_s9 + $0xd8] sm:$0xff]  ;;  %395 = vmatpush.msra.mxu2 %v322_v3  ;;  %v313_v8 = vld [vmem:[%s6393_s9 + $0x80] sm:$0xff]  ;;  %v314_v9 = vld [vmem:[%s6393_s9 + $0x88] sm:$0xff] }
  0x14   :  { %421 = vmatpush.msra.mxu3 %v323_v4  ;;  %447 = vmatpush.msrb.mxu0 %v324_v5  ;;  %v315_v10 = vld [vmem:[%s6393_s9 + $0x90] sm:$0xff]  ;;  %v316_v11 = vld [vmem:[%s6393_s9 + $0x98] sm:$0xff]  ;;  %v305_v12 = vld [vmem:[%s6393_s9 + $0x40] sm:$0xff] }
  0x15   :  { %370 = vmatpush.msra.mxu1 %v313_v8  ;;  %396 = vmatpush.msra.mxu2 %v314_v9  ;;  %v306_v13 = vld [vmem:[%s6393_s9 + $0x48] sm:$0xff]  ;;  %v307_v14 = vld [vmem:[%s6393_s9 + $0x50] sm:$0xff]  ;;  %v308_v15 = vld [vmem:[%s6393_s9 + $0x58] sm:$0xff] }
  0x16   :  { %422 = vmatpush.msra.mxu3 %v315_v10  ;;  %448 = vmatpush.msrb.mxu0 %v316_v11  ;;  %v297_v16 = vld [vmem:[%s6393_s9] sm:$0xff]  ;;  %v298_v17 = vld [vmem:[%s6393_s9 + $0x8] sm:$0xff]  ;;  %v299_v18 = vld [vmem:[%s6393_s9 + $0x10] sm:$0xff] }
  0x17   :  { %371 = vmatpush.msra.mxu1 %v305_v12  ;;  %397 = vmatpush.msra.mxu2 %v306_v13  ;;  %v300_v19 = vld [vmem:[%s6393_s9 + $0x18] sm:$0xff]  ;;  %v325_v20 = vld [vmem:[%s6393_s9 + $0xe0] sm:$0xff]  ;;  %v326_v21 = vld [vmem:[%s6393_s9 + $0xe8] sm:$0xff] }
  0x18   :  { %423 = vmatpush.msra.mxu3 %v307_v14  ;;  %449 = vmatpush.msrb.mxu0 %v308_v15  ;;  %v327_v22 = vld [vmem:[%s6393_s9 + $0xf0] sm:$0xff]  ;;  %v328_v23 = vld [vmem:[%s6393_s9 + $0xf8] sm:$0xff]  ;;  %v317_v24 = vld [vmem:[%s6393_s9 + $0xa0] sm:$0xff] }
  0x19   :  { %372 = vmatpush.msra.mxu1 %v297_v16  ;;  %398 = vmatpush.msra.mxu2 %v298_v17  ;;  %v318_v25 = vld [vmem:[%s6393_s9 + $0xa8] sm:$0xff]  ;;  %v319_v26 = vld [vmem:[%s6393_s9 + $0xb0] sm:$0xff]  ;;  %v320_v27 = vld [vmem:[%s6393_s9 + $0xb8] sm:$0xff] }
  0x1a   :  { %3084 = vmatmul.msk.f32.gmra.mxu0 %vm254_vm1, %v247_v6  ;;  %424 = vmatpush.msra.mxu3 %v299_v18  ;;  %v309_v28 = vld [vmem:[%s6393_s9 + $0x60] sm:$0xff]  ;;  %v310_v29 = vld [vmem:[%s6393_s9 + $0x68] sm:$0xff]  ;;  %v311_v30 = vld [vmem:[%s6393_s9 + $0x70] sm:$0xff] }
  0x1b   :  { %450 = vmatpush.msrb.mxu0 %v300_v19  ;;  %473 = vmatpush.msrb.mxu1 %v325_v20  ;;  %v312_v31 = vld [vmem:[%s6393_s9 + $0x78] sm:$0xff]  ;;  %v301_v32 = vld [vmem:[%s6393_s9 + $0x20] sm:$0xff]  ;;  %v302_v33 = vld [vmem:[%s6393_s9 + $0x28] sm:$0xff] }
  0x1c   :  { %499 = vmatpush.msrb.mxu2 %v326_v21  ;;  %525 = vmatpush.msrb.mxu3 %v327_v22  ;;  %v303_v34 = vld [vmem:[%s6393_s9 + $0x30] sm:$0xff]  ;;  %v304_v35 = vld [vmem:[%s6393_s9 + $0x38] sm:$0xff]  ;;  %v3253_v36 = vld [vmem:[%s6394_s29] ss:$0 sm:$0xff]  ;;  %s6398_s9 = sld [smem:[#allocation141_spill]] }
  0x1d   :  { %551 = vmatpush.msra.mxu0 %v328_v23  ;;  %474 = vmatpush.msrb.mxu1 %v317_v24  ;;  %v567_v43 = vld [vmem:[%s6395_s2] sm:$0xf]  ;;  %v566_v48 = vld [vmem:[%s6396_s7 + $0x8] sm:$0xf]  ;;  %v111_v58 = vld [vmem:[%s6397_s27 + $0xd0] sm:$0xff] }
  0x1e   :  { %500 = vmatpush.msrb.mxu2 %v318_v25  ;;  %526 = vmatpush.msrb.mxu3 %v319_v26  ;;  %v565_v47 = vld [vmem:[%s6396_s7] sm:$0xff]  ;;  %v110_v57 = vld [vmem:[%s6397_s27 + $0xc8] sm:$0xff]  ;;  %v103_v61 = vld [vmem:[%s6397_s27 + $0x90] sm:$0xff] }
  0x1f   :  { %552 = vmatpush.msra.mxu0 %v320_v27  ;;  %475 = vmatpush.msrb.mxu1 %v309_v28  ;;  %v3801_v56 = vld [vmem:[%s6397_s27 + $0xc0] sm:$0xff]  ;;  %v102_v60 = vld [vmem:[%s6397_s27 + $0x88] sm:$0xff]  ;;  %v95_v0 = vld [vmem:[%s6397_s27 + $0x50] sm:$0xff] }
  0x20   :  { %501 = vmatpush.msrb.mxu2 %v310_v29  ;;  %527 = vmatpush.msrb.mxu3 %v311_v30  ;;  %v3813_v59 = vld [vmem:[%s6397_s27 + $0x80] sm:$0xff]  ;;  %v94_v63 = vld [vmem:[%s6397_s27 + $0x48] sm:$0xff]  ;;  %v112_v8 = vld [vmem:[%s6397_s27 + $0xd8] sm:$0xff] }
  0x21   :  { %553 = vmatpush.msra.mxu0 %v312_v31  ;;  %476 = vmatpush.msrb.mxu1 %v301_v32  ;;  %v3824_v62 = vld [vmem:[%s6397_s27 + $0x40] sm:$0xff]  ;;  %v104_v9 = vld [vmem:[%s6397_s27 + $0x98] sm:$0xff]  ;;  %v80_v11 = vld [vmem:[%s6399_s10 + $0x8] sm:$0xff] }
  0x22   :  { %3085 = vmatmul.msk.f32.gmra.mxu0 %vm254_vm1, %v248_v7  ;;  %502 = vmatpush.msrb.mxu2 %v302_v33  ;;  %v3254_v1 = vld [vmem:[%s6398_s9] ss:$0 sm:$0xff]  ;;  %v96_v10 = vld [vmem:[%s6397_s27 + $0x58] sm:$0xff]  ;;  %v81_v12 = vld [vmem:[%s6399_s10 + $0x10] sm:$0xf] }
  0x23   :  { %528 = vmatpush.msrb.mxu3 %v303_v34  ;;  %554 = vmatpush.msra.mxu0 %v304_v35  ;;  %v79_v7 = vld [vmem:[%s6399_s10] sm:$0xff]  ;;  %v86_v17 = vld [vmem:[%s6397_s27 + $0x8] sm:$0xff]  ;;  %v87_v18 = vld [vmem:[%s6397_s27 + $0x10] sm:$0xff] }
  0x24   :  { %v3874_v16 = vld [vmem:[%s6397_s27] sm:$0xff]  ;;  %v88_v19 = vld [vmem:[%s6397_s27 + $0x18] sm:$0xff]  ;;  %v114_v23 = vld [vmem:[%s6397_s27 + $0xe8] sm:$0xff] }
  0x25   :  { %v3893_v22 = vld [vmem:[%s6397_s27 + $0xe0] sm:$0xff]  ;;  %v115_v24 = vld [vmem:[%s6397_s27 + $0xf0] sm:$0xff]  ;;  %v116_v25 = vld [vmem:[%s6397_s27 + $0xf8] sm:$0xff] }
  0x26   :  { %v3908_v26 = vld [vmem:[%s6397_s27 + $0xa0] sm:$0xff]  ;;  %v106_v27 = vld [vmem:[%s6397_s27 + $0xa8] sm:$0xff]  ;;  %v3916_v28 = vld [vmem:[%s6397_s27 + $0xb0] sm:$0xff] }
  0x27   :  { %v108_v29 = vld [vmem:[%s6397_s27 + $0xb8] sm:$0xff]  ;;  %v3924_v30 = vld [vmem:[%s6397_s27 + $0x60] sm:$0xff]  ;;  %v98_v31 = vld [vmem:[%s6397_s27 + $0x68] sm:$0xff] }
  0x28   :  { %v3933_v32 = vld [vmem:[%s6397_s27 + $0x70] sm:$0xff]  ;;  %v100_v33 = vld [vmem:[%s6397_s27 + $0x78] sm:$0xff]  ;;  %v3942_v34 = vld [vmem:[%s6397_s27 + $0x20] sm:$0xff] }
  0x29   :  { %v90_v35 = vld [vmem:[%s6397_s27 + $0x28] sm:$0xff] }
  0x8f   :  { %v285_v37 = vpop.f32.mrf.mxu0 }
  0x90   :  { %v286_v38 = vadd.f32 %v3253_v36, %v285_v37  ;;  %v92_v37 = vld [vmem:[%s6397_s27 + $0x38] sm:$0xff] }
  0x92   :  { %v294_v39 = vmax.f32 %v286_v38, 0.0 }
  0x94   :  { %3086 = vmatmul.msk.f32.vlgmr.msra.gmra.mxu1 %vm347_vm2, %v294_v39  ;;  %3089 = vmatmul.msk.f32.vlgmr.msra.gmra.mxu2 %vm347_vm2, %v294_v39 }
  0x95   :  { %3092 = vmatmul.msk.f32.vlgmr.msra.gmra.mxu3 %vm347_vm2, %v294_v39  ;;  %3095 = vmatmul.msk.f32.vlgmr.msrb.gmra.mxu0 %vm347_vm2, %v294_v39 }
  0x96   :  { %3110 = vmatpush.msk.msra.mxu1 %vm579_vm3, %v567_v43  ;;  %678 = vmatpush.msra.mxu3 %v3801_v56  ;;  %v147_v43 = vld [vmem:[%s6210_s6 + $0xf0] sm:$0xff] }
  0x97   :  { %v288_v40 = vpop.f32.mrf.mxu0  ;;  %730 = vmatpush.msrb.mxu0 %v111_v58 }
  0x98   :  { %v289_v41 = vadd.f32 %v3253_v36, %v288_v40  ;;  %679 = vmatpush.msra.mxu3 %v3813_v59 }
  0x99   :  { %731 = vmatpush.msrb.mxu0 %v103_v61  ;;  %v161_v61 = vld [vmem:[%s6210_s6 + $0x160] sm:$0xff] }
  0x9a   :  { %v295_v42 = vmax.f32 %v289_v41, 0.0  ;;  %680 = vmatpush.msra.mxu3 %v3824_v62  ;;  %v148_v41 = vld [vmem:[%s6210_s6 + $0xf8] sm:$0xff] }
  0x9b   :  { %732 = vmatpush.msrb.mxu0 %v95_v0  ;;  %v178_v0 = vld [vmem:[%s6210_s6 + $0x1e8] sm:$0xff] }
  0x9c   :  { %3087 = vmatmul.msk.f32.gmra.mxu1 %vm347_vm2, %v295_v42  ;;  %3090 = vmatmul.msk.f32.gmra.mxu2 %vm347_vm2, %v295_v42 }
  0x9d   :  { %3093 = vmatmul.msk.f32.gmra.mxu3 %vm347_vm2, %v295_v42  ;;  %3096 = vmatmul.msk.f32.gmra.mxu0 %vm347_vm2, %v295_v42 }
  0x9e   :  { %681 = vmatpush.msra.mxu3 %v3874_v16  ;;  %733 = vmatpush.msrb.mxu0 %v87_v18  ;;  %v175_v18 = vld [vmem:[%s6210_s6 + $0x1d0] sm:$0xff] }
  0x9f   :  { %v291_v44 = vpop.f32.mrf.mxu0 }
  0xa0   :  { %v292_v45 = vadd.f32 %v3253_v36, %v291_v44  ;;  %v3951_v36 = vld [vmem:[%s6397_s27 + $0x30] sm:$0xff] }
  0xa1   :  { %v163_v44 = vld [vmem:[%s6210_s6 + $0x170] sm:$0xff] }
  0xa2   :  { %v296_v46 = vmax.f32 %v292_v45, 0.0  ;;  %v146_v45 = vld [vmem:[%s6210_s6 + $0xe8] sm:$0xff] }
  0xa4   :  { %3088 = vmatmul.msk.f32.gmra.mxu1 %vm347_vm2, %v296_v46  ;;  %3091 = vmatmul.msk.f32.gmra.mxu2 %vm347_vm2, %v296_v46 }
  0xa5   :  { %3094 = vmatmul.msk.f32.gmra.mxu3 %vm347_vm2, %v296_v46  ;;  %3097 = vmatmul.msk.f32.gmra.mxu0 %vm347_vm2, %v296_v46 }
  0xac   :  { %3098 = vmatmul.msk.f32.vlgmr.msrb.gmra.mxu1 %vm347_vm2, %v294_v39  ;;  %3101 = vmatmul.msk.f32.vlgmr.msrb.gmra.mxu2 %vm347_vm2, %v294_v39 }
  0xad   :  { %3104 = vmatmul.msk.f32.vlgmr.msrb.gmra.mxu3 %vm347_vm2, %v294_v39  ;;  %3107 = vmatmul.msk.f32.vlgmr.msra.gmra.mxu0 %vm347_vm2, %v294_v39 }
  0xae   :  { %704 = vmatpush.msrb.mxu1 %v110_v57  ;;  %782 = vmatpush.msrb.mxu3 %v3893_v22  ;;  %v179_v57 = vld [vmem:[%s6210_s6 + $0x1f0] sm:$0xff] }
  0xaf   :  { %834 = vmatpush.msra.mxu0 %v115_v24  ;;  %v126_v24 = vld [vmem:[%s6210_s6 + $0x48] sm:$0xff] }
  0xb0   :  { %705 = vmatpush.msrb.mxu1 %v102_v60  ;;  %783 = vmatpush.msrb.mxu3 %v3908_v26  ;;  %v145_v60 = vld [vmem:[%s6210_s6 + $0xe0] sm:$0xff] }
  0xb1   :  { %835 = vmatpush.msra.mxu0 %v3916_v28 }
  0xb2   :  { %706 = vmatpush.msrb.mxu1 %v94_v63  ;;  %784 = vmatpush.msrb.mxu3 %v3924_v30  ;;  %v130_v63 = vld [vmem:[%s6210_s6 + $0x68] sm:$0xff] }
  0xb3   :  { %836 = vmatpush.msra.mxu0 %v3933_v32 }
  0xb4   :  { %3099 = vmatmul.msk.f32.gmra.mxu1 %vm347_vm2, %v295_v42  ;;  %3102 = vmatmul.msk.f32.gmra.mxu2 %vm347_vm2, %v295_v42 }
  0xb5   :  { %3105 = vmatmul.msk.f32.gmra.mxu3 %vm347_vm2, %v295_v42  ;;  %3108 = vmatmul.msk.f32.gmra.mxu0 %vm347_vm2, %v295_v42  ;;  %v164_v42 = vld [vmem:[%s6210_s6 + $0x178] sm:$0xff] }
  0xb6   :  { %707 = vmatpush.msrb.mxu1 %v86_v17  ;;  %785 = vmatpush.msrb.mxu3 %v3942_v34  ;;  %v127_v17 = vld [vmem:[%s6210_s6 + $0x50] sm:$0xff] }
  0xb7   :  { %837 = vmatpush.msra.mxu0 %v3951_v36 }
  0xbc   :  { %3100 = vmatmul.msk.f32.gmra.mxu1 %vm347_vm2, %v296_v46  ;;  %3103 = vmatmul.msk.f32.gmra.mxu2 %vm347_vm2, %v296_v46 }
  0xbd   :  { %3106 = vmatmul.msk.f32.gmra.mxu3 %vm347_vm2, %v296_v46  ;;  %3109 = vmatmul.msk.f32.gmra.mxu0 %vm347_vm2, %v296_v46  ;;  %v162_v46 = vld [vmem:[%s6210_s6 + $0x168] sm:$0xff] }
  0xc4   :  { %3111 = vmatmul.msk.f32.vlgmr.msra.gmra.mxu1 %vm572_vm4, %v565_v47  ;;  %v132_v47 = vld [vmem:[%s6210_s6 + $0x78] sm:$0xff] }
  0xc5   :  { %808 = vmatpush.msra.mxu1 %v114_v23  ;;  %v157_v23 = vld [vmem:[%s6210_s6 + $0x140] sm:$0xff] }
  0xc7   :  { %809 = vmatpush.msra.mxu1 %v106_v27  ;;  %v140_v27 = vld [vmem:[%s6210_s6 + $0xb8] sm:$0xff] }
  0xc9   :  { %810 = vmatpush.msra.mxu1 %v98_v31  ;;  %v125_v31 = vld [vmem:[%s6210_s6 + $0x40] sm:$0xff] }
  0xcb   :  { %811 = vmatpush.msra.mxu1 %v90_v35  ;;  %v139_v35 = vld [vmem:[%s6210_s6 + $0xb0] sm:$0xff] }
  0xcc   :  { %3112 = vmatmul.msk.f32.gmra.mxu1 %vm572_vm4, %v566_v48  ;;  %v180_v48 = vld [vmem:[%s6210_s6 + $0x1f8] sm:$0xff] }
 0x111   :  { %v3786_v49 = vpop.f32.mrf.mxu1 }
 0x117   :  { %v3865_v13 = vpop.f32.mrf.mxu2 }
 0x119   :  { %v3788_v50 = vpop.f32.mrf.mxu1 }
 0x11f   :  { %v3867_v14 = vpop.f32.mrf.mxu2 }
 0x121   :  { %v3790_v51 = vpop.f32.mrf.mxu1 }
 0x127   :  { %v3869_v15 = vpop.f32.mrf.mxu2 }
 0x129   :  { %v3792_v52 = vpop.f32.mrf.mxu1 }
 0x12f   :  { %v3886_v20 = vpop.f32.mrf.mxu2 }
 0x131   :  { %v3794_v53 = vpop.f32.mrf.mxu1 }
 0x137   :  { %v3888_v21 = vpop.f32.mrf.mxu2 }
 0x139   :  { %v3796_v54 = vpop.f32.mrf.mxu1 }
 0x13f   :  { %v3956_v38 = vpop.f32.mrf.mxu2 }
 0x141   :  { %v600_v55 = vpop.f32.mrf.mxu1 }
 0x142   :  { %v601_v3 = vadd.f32 %v3254_v1, %v600_v55  ;;  %v131_v55 = vld [vmem:[%s6210_s6 + $0x70] sm:$0xff] }
 0x144   :  { %v3839_v6 = vmax.f32 %v601_v3, 0.0  ;;  %v129_v3 = vld [vmem:[%s6210_s6 + $0x60] sm:$0xff] }
 0x149   :  { %v603_v2 = vpop.f32.mrf.mxu1 }
 0x14a   :  { %v604_v4 = vadd.f32 %v3254_v1, %v603_v2  ;;  %v144_v1 = vld [vmem:[%s6210_s6 + $0xd8] sm:$0xff] }
 0x14b   :  { %v160_v2 = vld [vmem:[%s6210_s6 + $0x158] sm:$0xff] }
 0x14c   :  { %v3837_v5 = vmax.f32 %v604_v4, 0.0  ;;  %v177_v4 = vld [vmem:[%s6210_s6 + $0x1e0] sm:$0xff] }
 0x14e   :  { %3113 = vmatpush.msk.msra.mxu2 %vm579_vm3, %v3837_v5 }
 0x150   :  { %646 = vmatpush.msra.mxu2 %v3839_v6 }
 0x151   :  { %3114 = vmatmul.msk.f32.vlgmr.msra.gmra.mxu2 %vm618_vm5, %v79_v7  ;;  %v143_v7 = vld [vmem:[%s6210_s6 + $0xd0] sm:$0xff] }
 0x152   :  { %756 = vmatpush.msrb.mxu2 %v112_v8  ;;  %v159_v8 = vld [vmem:[%s6210_s6 + $0x150] sm:$0xff] }
 0x154   :  { %757 = vmatpush.msrb.mxu2 %v104_v9  ;;  %v128_v9 = vld [vmem:[%s6210_s6 + $0x58] sm:$0xff] }
 0x156   :  { %758 = vmatpush.msrb.mxu2 %v96_v10  ;;  %v176_v10 = vld [vmem:[%s6210_s6 + $0x1d8] sm:$0xff] }
 0x158   :  { %759 = vmatpush.msrb.mxu2 %v88_v19  ;;  %v141_v19 = vld [vmem:[%s6210_s6 + $0xc0] sm:$0xff] }
 0x159   :  { %3115 = vmatmul.msk.f32.gmra.mxu2 %vm618_vm5, %v80_v11  ;;  %v142_v11 = vld [vmem:[%s6210_s6 + $0xc8] sm:$0xff] }
 0x15a   :  { %860 = vmatpush.msra.mxu2 %v116_v25  ;;  %v174_v25 = vld [vmem:[%s6210_s6 + $0x1c8] sm:$0xff] }
 0x15c   :  { %861 = vmatpush.msra.mxu2 %v108_v29  ;;  %v156_v29 = vld [vmem:[%s6210_s6 + $0x138] sm:$0xff] }
 0x15e   :  { %862 = vmatpush.msra.mxu2 %v100_v33  ;;  %v173_v33 = vld [vmem:[%s6210_s6 + $0x1c0] sm:$0xff] }
 0x160   :  { %863 = vmatpush.msra.mxu2 %v92_v37  ;;  %v155_v37 = vld [vmem:[%s6210_s6 + $0x130] sm:$0xff] }
 0x161   :  { %3116 = vmatmul.msk.f32.gmra.mxu2 %vm618_vm5, %v81_v12  ;;  %v158_v12 = vld [vmem:[%s6210_s6 + $0x148] sm:$0xff] }
 0x1d4   :  { %v3961_v39 = vpop.f32.mrf.mxu2 }
 0x1d5   :  { %3117 = vmatmul.msk.f32.vlgmr.msra.gmra.mxu3 %vm347_vm2, %v3961_v39  ;;  %3120 = vmatmul.msk.f32.vlgmr.msrb.gmra.mxu1 %vm347_vm2, %v3961_v39 }
 0x1d6   :  { %3123 = vmatmul.msk.f32.vlgmr.msrb.gmra.mxu0 %vm347_vm2, %v3961_v39  ;;  %3126 = vmatmul.msk.f32.vlgmr.msrb.gmra.mxu2 %vm347_vm2, %v3961_v39 }
 0x1d7   :  { %924 = vmatpush.msrb.mxu1 %v148_v41  ;;  %950 = vmatpush.msrb.mxu0 %v164_v42  ;;  %v172_v41 = vld [vmem:[%s6210_s6 + $0x1b8] sm:$0xff]  ;;  %v138_v42 = vld [vmem:[%s6210_s6 + $0xa8] sm:$0xff] }
 0x1d8   :  { %898 = vmatpush.msra.mxu3 %v132_v47  ;;  %976 = vmatpush.msrb.mxu2 %v180_v48  ;;  %v122_v47 = vld [vmem:[%s6210_s6 + $0x28] sm:$0xff] }
 0x1d9   :  { %925 = vmatpush.msrb.mxu1 %v147_v43  ;;  %951 = vmatpush.msrb.mxu0 %v163_v44  ;;  %v154_v43 = vld [vmem:[%s6210_s6 + $0x128] sm:$0xff]  ;;  %v123_v44 = vld [vmem:[%s6210_s6 + $0x30] sm:$0xff] }
 0x1da   :  { %899 = vmatpush.msra.mxu3 %v131_v55  ;;  %977 = vmatpush.msrb.mxu2 %v179_v57  ;;  %v170_v48 = vld [vmem:[%s6210_s6 + $0x1a8] sm:$0xff]  ;;  %v136_v55 = vld [vmem:[%s6210_s6 + $0x98] sm:$0xff] }
 0x1db   :  { %926 = vmatpush.msrb.mxu1 %v146_v45  ;;  %952 = vmatpush.msrb.mxu0 %v162_v46  ;;  %v171_v45 = vld [vmem:[%s6210_s6 + $0x1b0] sm:$0xff]  ;;  %v153_v46 = vld [vmem:[%s6210_s6 + $0x120] sm:$0xff]  ;;  %v152_v57 = vld [vmem:[%s6210_s6 + $0x118] sm:$0xff] }
 0x1dc   :  { %v3971_v40 = vpop.f32.mrf.mxu2  ;;  %900 = vmatpush.msra.mxu3 %v130_v63  ;;  %978 = vmatpush.msrb.mxu2 %v178_v0  ;;  %v135_v63 = vld [vmem:[%s6210_s6 + $0x90] sm:$0xff] }
 0x1dd   :  { %3118 = vmatmul.msk.f32.gmra.mxu3 %vm347_vm2, %v3971_v40  ;;  %3121 = vmatmul.msk.f32.gmra.mxu1 %vm347_vm2, %v3971_v40  ;;  %v151_v0 = vld [vmem:[%s6210_s6 + $0x110] sm:$0xff] }
 0x1de   :  { %3124 = vmatmul.msk.f32.gmra.mxu0 %vm347_vm2, %v3971_v40  ;;  %3127 = vmatmul.msk.f32.gmra.mxu2 %vm347_vm2, %v3971_v40 }
 0x1df   :  { %927 = vmatpush.msrb.mxu1 %v145_v60  ;;  %953 = vmatpush.msrb.mxu0 %v161_v61  ;;  %v121_v60 = vld [vmem:[%s6210_s6 + $0x20] sm:$0xff] }
 0x1e0   :  { %901 = vmatpush.msra.mxu3 %v129_v3  ;;  %979 = vmatpush.msrb.mxu2 %v177_v4  ;;  %v169_v61 = vld [vmem:[%s6210_s6 + $0x1a0] sm:$0xff]  ;;  %v150_v3 = vld [vmem:[%s6210_s6 + $0x108] sm:$0xff]  ;;  %v119_v4 = vld [vmem:[%s6210_s6 + $0x10] sm:$0xff] }
 0x1e1   :  { %928 = vmatpush.msrb.mxu1 %v144_v1  ;;  %954 = vmatpush.msrb.mxu0 %v160_v2  ;;  %v120_v1 = vld [vmem:[%s6210_s6 + $0x18] sm:$0xff] }
 0x1e2   :  { %902 = vmatpush.msra.mxu3 %v128_v9  ;;  %980 = vmatpush.msrb.mxu2 %v176_v10  ;;  %v168_v2 = vld [vmem:[%s6210_s6 + $0x198] sm:$0xff]  ;;  %v149_v9 = vld [vmem:[%s6210_s6 + $0x100] sm:$0xff] }
 0x1e3   :  { %929 = vmatpush.msrb.mxu1 %v143_v7  ;;  %955 = vmatpush.msrb.mxu0 %v159_v8  ;;  %v167_v7 = vld [vmem:[%s6210_s6 + $0x190] sm:$0xff]  ;;  %v133_v8 = vld [vmem:[%s6210_s6 + $0x80] sm:$0xff]  ;;  %v212_v10 = vld [vmem:[%s6210_s6 + $0x2f8] sm:$0xff] }
 0x1e4   :  { %v4011_v58 = vpop.f32.mrf.mxu2  ;;  %903 = vmatpush.msra.mxu3 %v127_v17  ;;  %981 = vmatpush.msrb.mxu2 %v175_v18  ;;  %v166_v17 = vld [vmem:[%s6210_s6 + $0x188] sm:$0xff]  ;;  %v211_v18 = vld [vmem:[%s6210_s6 + $0x2f0] sm:$0xff] }
 0x1e5   :  { %3119 = vmatmul.msk.f32.gmra.mxu3 %vm347_vm2, %v4011_v58  ;;  %3122 = vmatmul.msk.f32.gmra.mxu1 %vm347_vm2, %v4011_v58 }
 0x1e6   :  { %3125 = vmatmul.msk.f32.gmra.mxu0 %vm347_vm2, %v4011_v58  ;;  %3128 = vmatmul.msk.f32.gmra.mxu2 %vm347_vm2, %v4011_v58 }
 0x1e7   :  { %930 = vmatpush.msrb.mxu1 %v142_v11  ;;  %956 = vmatpush.msrb.mxu0 %v158_v12  ;;  %v228_v11 = vld [vmem:[%s6210_s6 + $0x378] sm:$0xff]  ;;  %v118_v12 = vld [vmem:[%s6210_s6 + $0x8] sm:$0xff] }
 0x1e8   :  { %904 = vmatpush.msra.mxu3 %v126_v24  ;;  %982 = vmatpush.msrb.mxu2 %v174_v25  ;;  %v4215_v24 = vpop.f32.mrf.mxu3 }
 0x1e9   :  { %931 = vmatpush.msrb.mxu1 %v141_v19  ;;  %957 = vmatpush.msrb.mxu0 %v157_v23  ;;  %v227_v19 = vld [vmem:[%s6210_s6 + $0x370] sm:$0xff]  ;;  %v4213_v23 = vpop.f32.mrf.mxu0 }
 0x1ea   :  { %905 = vmatpush.msra.mxu3 %v125_v31  ;;  %983 = vmatpush.msrb.mxu2 %v173_v33  ;;  %v210_v33 = vld [vmem:[%s6210_s6 + $0x2e8] sm:$0xff] }
 0x1eb   :  { %932 = vmatpush.msrb.mxu1 %v140_v27  ;;  %958 = vmatpush.msrb.mxu0 %v156_v29 }
 0x1ec   :  { %984 = vmatpush.msrb.mxu2 %v172_v41  ;;  %v196_v41 = vld [vmem:[%s6210_s6 + $0x278] sm:$0xff] }
 0x1ed   :  { %3129 = vmatmul.msk.f32.vlgmr.msrb.gmra.mxu3 %vm347_vm2, %v3961_v39  ;;  %3132 = vmatmul.msk.f32.vlgmr.msra.gmra.mxu1 %vm347_vm2, %v3961_v39 }
 0x1ee   :  { %3135 = vmatmul.msk.f32.vlgmr.msra.gmra.mxu0 %vm347_vm2, %v3961_v39  ;;  %3138 = vmatmul.msk.f32.vlgmr.msra.gmra.mxu2 %vm347_vm2, %v3961_v39  ;;  %v124_v39 = vld [vmem:[%s6210_s6 + $0x38] sm:$0xff] }
 0x1ef   :  { %933 = vmatpush.msrb.mxu1 %v139_v35  ;;  %959 = vmatpush.msrb.mxu0 %v155_v37  ;;  %v226_v35 = vld [vmem:[%s6210_s6 + $0x368] sm:$0xff]  ;;  %v117_v37 = vld [vmem:[%s6210_s6] sm:$0xff] }
 0x1f0   :  { %906 = vmatpush.msra.mxu3 %v124_v39  ;;  %985 = vmatpush.msrb.mxu2 %v171_v45  ;;  %v4219_v27 = vpop.f32.mrf.mxu3  ;;  %v165_v39 = vld [vmem:[%s6210_s6 + $0x180] sm:$0xff]  ;;  %v195_v45 = vld [vmem:[%s6210_s6 + $0x270] sm:$0xff] }
 0x1f1   :  { %934 = vmatpush.msrb.mxu1 %v138_v42  ;;  %960 = vmatpush.msrb.mxu0 %v154_v43  ;;  %v4217_v25 = vpop.f32.mrf.mxu0  ;;  %v209_v42 = vld [vmem:[%s6210_s6 + $0x2e0] sm:$0xff] }
 0x1f2   :  { %907 = vmatpush.msra.mxu3 %v123_v44  ;;  %986 = vmatpush.msrb.mxu2 %v170_v48  ;;  %v225_v43 = vld [vmem:[%s6210_s6 + $0x360] sm:$0xff]  ;;  %v244_v44 = vld [vmem:[%s6210_s6 + $0x3f8] sm:$0xff]  ;;  %v243_v48 = vld [vmem:[%s6210_s6 + $0x3f0] sm:$0xff] }
 0x1f3   :  { %961 = vmatpush.msrb.mxu0 %v153_v46  ;;  %v224_v46 = vld [vmem:[%s6210_s6 + $0x358] sm:$0xff] }
 0x1f4   :  { %908 = vmatpush.msra.mxu3 %v122_v47  ;;  %987 = vmatpush.msrb.mxu2 %v169_v61  ;;  %v242_v61 = vld [vmem:[%s6210_s6 + $0x3e8] sm:$0xff] }
 0x1f5   :  { %3130 = vmatmul.msk.f32.gmra.mxu3 %vm347_vm2, %v3971_v40  ;;  %3133 = vmatmul.msk.f32.gmra.mxu1 %vm347_vm2, %v3971_v40 }
 0x1f6   :  { %3136 = vmatmul.msk.f32.gmra.mxu0 %vm347_vm2, %v3971_v40  ;;  %3139 = vmatmul.msk.f32.gmra.mxu2 %vm347_vm2, %v3971_v40  ;;  %v137_v40 = vld [vmem:[%s6210_s6 + $0xa0] sm:$0xff] }
 0x1f7   :  { %935 = vmatpush.msrb.mxu1 %v137_v40  ;;  %962 = vmatpush.msrb.mxu0 %v152_v57  ;;  %v208_v40 = vld [vmem:[%s6210_s6 + $0x2d8] sm:$0xff]  ;;  %v207_v57 = vld [vmem:[%s6210_s6 + $0x2d0] sm:$0xff] }
 0x1f8   :  { %909 = vmatpush.msra.mxu3 %v121_v60  ;;  %988 = vmatpush.msrb.mxu2 %v168_v2  ;;  %v4223_v31 = vpop.f32.mrf.mxu3  ;;  %v223_v60 = vld [vmem:[%s6210_s6 + $0x350] sm:$0xff]  ;;  %v241_v2 = vld [vmem:[%s6210_s6 + $0x3e0] sm:$0xff] }
 0x1f9   :  { %936 = vmatpush.msrb.mxu1 %v136_v55  ;;  %963 = vmatpush.msrb.mxu0 %v151_v0  ;;  %v4221_v29 = vpop.f32.mrf.mxu0  ;;  %v194_v55 = vld [vmem:[%s6210_s6 + $0x268] sm:$0xff] }
 0x1fa   :  { %910 = vmatpush.msra.mxu3 %v120_v1  ;;  %989 = vmatpush.msrb.mxu2 %v167_v7  ;;  %v206_v0 = vld [vmem:[%s6210_s6 + $0x2c8] sm:$0xff]  ;;  %v221_v7 = vld [vmem:[%s6210_s6 + $0x340] sm:$0xff] }
 0x1fb   :  { %937 = vmatpush.msrb.mxu1 %v135_v63  ;;  %964 = vmatpush.msrb.mxu0 %v150_v3  ;;  %v193_v63 = vld [vmem:[%s6210_s6 + $0x260] sm:$0xff]  ;;  %v222_v1 = vld [vmem:[%s6210_s6 + $0x348] sm:$0xff]  ;;  %v192_v3 = vld [vmem:[%s6210_s6 + $0x258] sm:$0xff] }
 0x1fc   :  { %911 = vmatpush.msra.mxu3 %v119_v4  ;;  %990 = vmatpush.msrb.mxu2 %v166_v17  ;;  %v205_v4 = vld [vmem:[%s6210_s6 + $0x2c0] sm:$0xff]  ;;  %v190_v17 = vld [vmem:[%s6210_s6 + $0x248] sm:$0xff] }
 0x1fd   :  { %3131 = vmatmul.msk.f32.gmra.mxu3 %vm347_vm2, %v4011_v58  ;;  %3134 = vmatmul.msk.f32.gmra.mxu1 %vm347_vm2, %v4011_v58 }
 0x1fe   :  { %3137 = vmatmul.msk.f32.gmra.mxu0 %vm347_vm2, %v4011_v58  ;;  %3140 = vmatmul.msk.f32.gmra.mxu2 %vm347_vm2, %v4011_v58  ;;  %v134_v58 = vld [vmem:[%s6210_s6 + $0x88] sm:$0xff] }
 0x1ff   :  { %938 = vmatpush.msrb.mxu1 %v134_v58  ;;  %965 = vmatpush.msrb.mxu0 %v149_v9  ;;  %v191_v9 = vld [vmem:[%s6210_s6 + $0x250] sm:$0xff] }
 0x200   :  { %912 = vmatpush.msra.mxu3 %v118_v12  ;;  %991 = vmatpush.msrb.mxu2 %v165_v39  ;;  %v4287_v58 = vpop.f32.mrf.mxu3  ;;  %v4316_v12 = vld [vmem:[%s6210_s6 + $0x3d0] sm:$0xff]  ;;  %v202_v39 = vld [vmem:[%s6210_s6 + $0x2a8] sm:$0xff] }
 0x201   :  { %939 = vmatpush.msrb.mxu1 %v133_v8  ;;  %1054 = vmatpush.msra.mxu0 %v228_v11  ;;  %v4258_v47 = vpop.f32.mrf.mxu0  ;;  %v4301_v8 = vld [vmem:[%s6210_s6 + $0x3d8] sm:$0xff] }
 0x202   :  { %913 = vmatpush.msra.mxu3 %v117_v37  ;;  %1080 = vmatpush.msra.mxu2 %v244_v44  ;;  %v220_v11 = vld [vmem:[%s6210_s6 + $0x338] sm:$0xff]  ;;  %v4339_v37 = vld [vmem:[%s6210_s6 + $0x240] sm:$0xff] }
 0x203   :  { %1028 = vmatpush.msra.mxu1 %v212_v10  ;;  %1055 = vmatpush.msra.mxu0 %v227_v19  ;;  %v204_v10 = vld [vmem:[%s6210_s6 + $0x2b8] sm:$0xff]  ;;  %v219_v19 = vld [vmem:[%s6210_s6 + $0x330] sm:$0xff]  ;;  %v4362_v44 = vld [vmem:[%s6210_s6 + $0x2a0] sm:$0xff] }
 0x204   :  { %1002 = vmatpush.msrb.mxu3 %v196_v41  ;;  %1081 = vmatpush.msra.mxu2 %v243_v48  ;;  %v218_v41 = vld [vmem:[%s6210_s6 + $0x328] sm:$0xff]  ;;  %v4380_v48 = vld [vmem:[%s6210_s6 + $0x230] sm:$0xff] }
 0x205   :  { %1029 = vmatpush.msra.mxu1 %v211_v18  ;;  %1056 = vmatpush.msra.mxu0 %v226_v35  ;;  %v203_v18 = vld [vmem:[%s6210_s6 + $0x2b0] sm:$0xff]  ;;  %v4333_v35 = vld [vmem:[%s6210_s6 + $0x3c8] sm:$0xff] }
 0x206   :  { %1003 = vmatpush.msrb.mxu3 %v195_v45  ;;  %1082 = vmatpush.msra.mxu2 %v242_v61  ;;  %v217_v45 = vld [vmem:[%s6210_s6 + $0x320] sm:$0xff]  ;;  %v4404_v61 = vld [vmem:[%s6210_s6 + $0x228] sm:$0xff] }
 0x207   :  { %1030 = vmatpush.msra.mxu1 %v210_v33  ;;  %1057 = vmatpush.msra.mxu0 %v225_v43  ;;  %v4357_v43 = vld [vmem:[%s6210_s6 + $0x238] sm:$0xff]  ;;  %6402 = vst [vmem:[#allocation5_spill] sm:$0xff] %v4404_v61 }
 0x208   :  { %1004 = vmatpush.msrb.mxu3 %v194_v55  ;;  %1083 = vmatpush.msra.mxu2 %v241_v2  ;;  %v4385_v55 = vld [vmem:[%s6210_s6 + $0x298] sm:$0xff]  ;;  %v4428_v2 = vld [vmem:[%s6210_s6 + $0x220] sm:$0xff] }
 0x209   :  { %1031 = vmatpush.msra.mxu1 %v209_v42  ;;  %1058 = vmatpush.msra.mxu0 %v224_v46  ;;  %v4328_v33 = vpop.f32.mrf.mxu0  ;;  %v4351_v42 = vld [vmem:[%s6210_s6 + $0x3c0] sm:$0xff]  ;;  %v4374_v46 = vpop.f32.mrf.mxu3  ;;  %6400 = vst [vmem:[#allocation3_spill] sm:$0xff] %v4385_v55 }
 0x20a   :  { %1005 = vmatpush.msrb.mxu3 %v193_v63  ;;  %1084 = vmatpush.msra.mxu2 %v4301_v8  ;;  %v4409_v63 = vld [vmem:[%s6210_s6 + $0x290] sm:$0xff]  ;;  %6405 = vst [vmem:[#allocation8_spill] sm:$0xff] %v4428_v2 }
 0x20b   :  { %1032 = vmatpush.msra.mxu1 %v208_v40  ;;  %1059 = vmatpush.msra.mxu0 %v223_v60  ;;  %v4372_v40 = vld [vmem:[%s6210_s6 + $0x3b8] sm:$0xff]  ;;  %v4397_v60 = vld [vmem:[%s6210_s6 + $0x3b0] sm:$0xff]  ;;  %6403 = vst [vmem:[#allocation6_spill] sm:$0xff] %v4409_v63 }
 0x20c   :  { %1006 = vmatpush.msrb.mxu3 %v192_v3  ;;  %1085 = vmatpush.msra.mxu2 %v4316_v12  ;;  %v4433_v3 = vld [vmem:[%s6210_s6 + $0x288] sm:$0xff] }
 0x20d   :  { %1033 = vmatpush.msra.mxu1 %v207_v57  ;;  %1060 = vmatpush.msra.mxu0 %v222_v1  ;;  %v4390_v57 = vld [vmem:[%s6210_s6 + $0x318] sm:$0xff]  ;;  %v4421_v1 = vld [vmem:[%s6210_s6 + $0x3a8] sm:$0xff]  ;;  %6406 = vst [vmem:[#allocation9_spill] sm:$0xff] %v4433_v3 }
 0x20e   :  { %1007 = vmatpush.msrb.mxu3 %v191_v9  ;;  %1086 = vmatpush.msra.mxu2 %v4333_v35  ;;  %6401 = vst [vmem:[#allocation4_spill] sm:$0xff] %v4390_v57 }
 0x20f   :  { %1034 = vmatpush.msra.mxu1 %v206_v0  ;;  %1061 = vmatpush.msra.mxu0 %v221_v7  ;;  %v4414_v0 = vld [vmem:[%s6210_s6 + $0x310] sm:$0xff]  ;;  %v4443_v7 = vld [vmem:[%s6211_s12] sm:$0xff] }
 0x210   :  { %1008 = vmatpush.msrb.mxu3 %v190_v17  ;;  %1087 = vmatpush.msra.mxu2 %v4351_v42  ;;  %6404 = vst [vmem:[#allocation7_spill] sm:$0xff] %v4414_v0  ;;  %v4464_v17 = vld [vmem:[%s6210_s6 + $0x280] sm:$0xff] }
 0x211   :  { %1035 = vmatpush.msra.mxu1 %v205_v4  ;;  %1062 = vmatpush.msra.mxu0 %v220_v11  ;;  %v4438_v4 = vld [vmem:[%s6210_s6 + $0x308] sm:$0xff]  ;;  %v4445_v9 = vpop.f32.mrf.mxu0  ;;  %v4459_v11 = vld [vmem:[%s6210_s6 + $0x218] sm:$0xff]  ;;  %6409 = vst [vmem:[#allocation12_spill] sm:$0xff] %v4464_v17 }
 0x212   :  { %1009 = vmatpush.msrb.mxu3 %v4339_v37  ;;  %1088 = vmatpush.msra.mxu2 %v4372_v40  ;;  %6407 = vst [vmem:[#allocation10_spill] sm:$0xff] %v4438_v4 }
 0x213   :  { %1036 = vmatpush.msra.mxu1 %v204_v10  ;;  %1063 = vmatpush.msra.mxu0 %v219_v19  ;;  %v4452_v10 = vld [vmem:[%s6210_s6 + $0x3a0] sm:$0xff]  ;;  %6408 = vst [vmem:[#allocation11_spill] sm:$0xff] %v4459_v11  ;;  %v332_v19 = vperm.slane %v4443_v7, 1 }
 0x214   :  { %1010 = vmatpush.msrb.mxu3 %v4357_v43  ;;  %1089 = vmatpush.msra.mxu2 %v4397_v60 }
 0x215   :  { %1037 = vmatpush.msra.mxu1 %v203_v18  ;;  %1064 = vmatpush.msra.mxu0 %v218_v41  ;;  %v4469_v18 = vld [vmem:[%s6210_s6 + $0x300] sm:$0xff]  ;;  %v333_v41 = vperm.slane %v4443_v7, 2 }
 0x216   :  { %1011 = vmatpush.msrb.mxu3 %v4380_v48  ;;  %1090 = vmatpush.msra.mxu2 %v4421_v1  ;;  %6410 = vst [vmem:[#allocation13_spill] sm:$0xff] %v4469_v18 }
 0x217   :  { %1038 = vmatpush.msra.mxu1 %v202_v39  ;;  %1065 = vmatpush.msra.mxu0 %v217_v45  ;;  %v4477_v39 = vld [vmem:[%s6210_s6 + $0x398] sm:$0xff]  ;;  %v4485_v45 = vld [vmem:[%s6210_s6 + $0x210] sm:$0xff] }
 0x218   :  { %1012 = vmatpush.msrb.mxu3 %v4404_v61  ;;  %1091 = vmatpush.msra.mxu2 %v4452_v10  ;;  %6411 = vst [vmem:[#allocation14_spill] sm:$0xff] %v4477_v39  ;;  %v4541_v61 = vadd.f32 %v4219_v27, %v333_v41 }
 0x219   :  { %1039 = vmatpush.msra.mxu1 %v4362_v44  ;;  %1066 = vmatpush.msra.mxu0 %v4390_v57  ;;  %6412 = vst [vmem:[#allocation15_spill] sm:$0xff] %v4485_v45 }
 0x21a   :  { %1013 = vmatpush.msrb.mxu3 %v4428_v2  ;;  %1092 = vmatpush.msra.mxu2 %v4477_v39  ;;  %6419 = vst [vmem:[#allocation22_spill] sm:$0xff] %v4541_v61 }
 0x21b   :  { %1040 = vmatpush.msra.mxu1 %v4385_v55  ;;  %1067 = vmatpush.msra.mxu0 %v4414_v0  ;;  %v4504_v0 = vld [vmem:[%s6210_s6 + $0x388] sm:$0xff] }
 0x21c   :  { %1014 = vmatpush.msrb.mxu3 %v4459_v11  ;;  %6415 = vst [vmem:[#allocation18_spill] sm:$0xff] %v4504_v0  ;;  %v4517_v11 = vld [vmem:[%s6210_s6 + $0x200] sm:$0xff] }
 0x21d   :  { %1041 = vmatpush.msra.mxu1 %v4409_v63  ;;  %1068 = vmatpush.msra.mxu0 %v4438_v4  ;;  %v4490_v4 = vld [vmem:[%s6210_s6 + $0x390] sm:$0xff]  ;;  %6417 = vst [vmem:[#allocation20_spill] sm:$0xff] %v4517_v11 }
 0x21e   :  { %6413 = vst [vmem:[#allocation16_spill] sm:$0xff] %v4490_v4  ;;  %1015 = vmatpush.msrb.mxu3 %v4485_v45  ;;  %1093 = vmatpush.msra.mxu2 %v4490_v4  ;;  %v4511_v45 = vadd.f32 %v4215_v24, %v333_v41  ;;  %v4522_v4 = vld [vmem:[%s6210_s6 + $0x380] sm:$0xff]  ;;  %v334_v24 = vperm.slane %v4443_v7, 3 }
 0x21f   :  { %1042 = vmatpush.msra.mxu1 %v4433_v3  ;;  %1069 = vmatpush.msra.mxu0 %v4469_v18  ;;  %v4499_v18 = vld [vmem:[%s6210_s6 + $0x208] sm:$0xff]  ;;  %v4507_v3 = vadd.f32 %v3865_v13, %v332_v19  ;;  %v331_v13 = vperm.slane %v4443_v7, 0 }
 0x220   :  { %6414 = vst [vmem:[#allocation17_spill] sm:$0xff] %v4499_v18  ;;  %1016 = vmatpush.msrb.mxu3 %v4499_v18  ;;  %1094 = vmatpush.msra.mxu2 %v4504_v0  ;;  %v4534_v39 = vadd.f32 %v4213_v23, %v334_v24  ;;  %v4552_v27 = vadd.f32 %v4217_v25, %v334_v24  ;;  %v336_v25 = vperm.slane %v4443_v7, 5 }
 0x221   :  { %1043 = vmatpush.msra.mxu1 %v4464_v17  ;;  %v4493_v17 = vpop.f32.mrf.mxu3  ;;  %6416 = vst [vmem:[#allocation19_spill] sm:$0xff] %v4507_v3  ;;  %v4531_v2 = vadd.f32 %v3786_v49, %v331_v13 }
 0x222   :  { %1017 = vmatpush.msrb.mxu3 %v4517_v11  ;;  %1095 = vmatpush.msra.mxu2 %v4522_v4  ;;  %6420 = vst [vmem:[#allocation23_spill] sm:$0xff] %v4552_v27 }
 0x252   :  { %v709_v57 = vpop.f32.mrf.mxu1 }
 0x253   :  { %v875_v18 = vmul.f32 %v709_v57, %v4507_v3  ;;  %v735_v63 = vpop.f32.mrf.mxu0  ;;  %v4537_v57 = vadd.f32 %v3867_v14, %v332_v19  ;;  %v4548_v14 = vadd.f32 %v3788_v50, %v331_v13 }
 0x254   :  { %v876_v0 = vmul.f32 %v735_v63, %v4511_v45 }
 0x255   :  { %940 = vmatmul.f32.vlgmr.msrb.gmra.mxu1 %v875_v18  ;;  %6418 = vst [vmem:[#allocation21_spill] sm:$0xff] %v4537_v57 }
 0x256   :  { %966 = vmatmul.f32.vlgmr.msrb.gmra.mxu0 %v876_v0 }
 0x258   :  { %v683_v55 = vpop.f32.mrf.mxu3 }
 0x259   :  { %v874_v3 = vmul.f32 %v683_v55, %v4531_v2  ;;  %v761_v11 = vpop.f32.mrf.mxu2 }
 0x25a   :  { %v877_v63 = vmul.f32 %v761_v11, %v4534_v39  ;;  %v712_v18 = vpop.f32.mrf.mxu1 }
 0x25b   :  { %v738_v0 = vpop.f32.mrf.mxu0  ;;  %914 = vmatmul.f32.vlgmr.msra.gmra.mxu3 %v874_v3  ;;  %v883_v49 = vmul.f32 %v712_v18, %v4537_v57  ;;  %v4555_v3 = vadd.f32 %v3869_v15, %v332_v19  ;;  %v4572_v19 = vadd.f32 %v4221_v29, %v334_v24  ;;  %v338_v29 = vperm.slane %v4443_v7, 7 }
 0x25c   :  { %992 = vmatmul.f32.vlgmr.msrb.gmra.mxu2 %v877_v63  ;;  %v884_v23 = vmul.f32 %v738_v0, %v4541_v61 }
 0x25d   :  { %943 = vmatmul.f32.gmra.mxu1 %v883_v49  ;;  %1347 = vmatpush.msrb.mxu2 %v3801_v56  ;;  %6421 = vst [vmem:[#allocation24_spill] sm:$0xff] %v4555_v3  ;;  %v4560_v56 = vadd.f32 %v4223_v31, %v333_v41  ;;  %v4569_v31 = vadd.f32 %v3790_v51, %v331_v13 }
 0x25e   :  { %969 = vmatmul.f32.gmra.mxu0 %v884_v23  ;;  %6424 = vst [vmem:[#allocation27_spill] sm:$0xff] %v4572_v19  ;;  %v4575_v49 = vadd.f32 %v3886_v20, %v336_v25 }
 0x25f   :  { %1348 = vmatpush.msrb.mxu2 %v3813_v59  ;;  %6422 = vst [vmem:[#allocation25_spill] sm:$0xff] %v4560_v56 }
 0x260   :  { %v686_v55 = vpop.f32.mrf.mxu3  ;;  %6423 = vst [vmem:[#allocation26_spill] sm:$0xff] %v4569_v31 }
 0x261   :  { %v764_v11 = vpop.f32.mrf.mxu2  ;;  %v882_v63 = vmul.f32 %v686_v55, %v4548_v14  ;;  %1349 = vmatpush.msrb.mxu2 %v3824_v62  ;;  %v337_v62 = vperm.slane %v4443_v7, 6  ;;  %6425 = vst [vmem:[#allocation28_spill] sm:$0xff] %v4575_v49 }
 0x262   :  { %v715_v18 = vpop.f32.mrf.mxu1  ;;  %v885_v50 = vmul.f32 %v764_v11, %v4552_v27 }
 0x263   :  { %v741_v0 = vpop.f32.mrf.mxu0  ;;  %917 = vmatmul.f32.gmra.mxu3 %v882_v63  ;;  %v891_v59 = vmul.f32 %v715_v18, %v4555_v3  ;;  %1350 = vmatpush.msrb.mxu2 %v3874_v16  ;;  %v4579_v55 = vadd.f32 %v4287_v58, %v337_v62  ;;  %v335_v18 = vperm.slane %v4443_v7, 4  ;;  %v4590_v58 = vadd.f32 %v4258_v47, %v338_v29 }
 0x264   :  { %995 = vmatmul.f32.gmra.mxu2 %v885_v50  ;;  %v892_v15 = vmul.f32 %v741_v0, %v4560_v56  ;;  %v4593_v0 = vadd.f32 %v3888_v21, %v336_v25  ;;  %v4597_v7 = vadd.f32 %v4374_v46, %v337_v62  ;;  %v4608_v46 = vadd.f32 %v4328_v33, %v338_v29 }
 0x265   :  { %946 = vmatmul.f32.gmra.mxu1 %v891_v59  ;;  %6426 = vst [vmem:[#allocation29_spill] sm:$0xff] %v4579_v55  ;;  %v4587_v24 = vadd.f32 %v3792_v52, %v335_v18  ;;  %v4604_v21 = vadd.f32 %v3794_v53, %v335_v18  ;;  %v4623_v33 = vadd.f32 %v3796_v54, %v335_v18 }
 0x266   :  { %972 = vmatmul.f32.gmra.mxu0 %v892_v15  ;;  %6428 = vst [vmem:[#allocation31_spill] sm:$0xff] %v4590_v58 }
 0x267   :  { %6427 = vst [vmem:[#allocation30_spill] sm:$0xff] %v4587_v24 }
 0x268   :  { %v689_v41 = vpop.f32.mrf.mxu3  ;;  %6429 = vst [vmem:[#allocation32_spill] sm:$0xff] %v4593_v0 }
 0x269   :  { %v767_v16 = vpop.f32.mrf.mxu2  ;;  %v890_v23 = vmul.f32 %v689_v41, %v4569_v31  ;;  %6430 = vst [vmem:[#allocation33_spill] sm:$0xff] %v4597_v7 }
 0x26a   :  { %v813_v11 = vpop.f32.mrf.mxu1  ;;  %v893_v63 = vmul.f32 %v767_v16, %v4572_v19  ;;  %6431 = vst [vmem:[#allocation34_spill] sm:$0xff] %v4604_v21 }
 0x26b   :  { %v879_v51 = vmul.f32 %v813_v11, %v4575_v49  ;;  %v839_v13 = vpop.f32.mrf.mxu0  ;;  %920 = vmatmul.f32.gmra.mxu3 %v890_v23  ;;  %6432 = vst [vmem:[#allocation35_spill] sm:$0xff] %v4608_v46 }
 0x26c   :  { %v880_v20 = vmul.f32 %v839_v13, %v4579_v55  ;;  %998 = vmatmul.f32.gmra.mxu2 %v893_v63  ;;  %v4611_v63 = vadd.f32 %v3956_v38, %v336_v25  ;;  %6435 = vst [vmem:[#allocation38_spill] sm:$0xff] %v4623_v33 }
 0x26d   :  { %1044 = vmatmul.f32.vlgmr.msra.gmra.mxu1 %v879_v51 }
 0x26e   :  { %1070 = vmatmul.f32.vlgmr.msra.gmra.mxu0 %v880_v20  ;;  %6433 = vst [vmem:[#allocation36_spill] sm:$0xff] %v4611_v63 }
 0x270   :  { %v787_v50 = vpop.f32.mrf.mxu3 }
 0x271   :  { %v878_v59 = vmul.f32 %v787_v50, %v4587_v24  ;;  %v865_v15 = vpop.f32.mrf.mxu2 }
 0x272   :  { %v881_v41 = vmul.f32 %v865_v15, %v4590_v58  ;;  %v816_v16 = vpop.f32.mrf.mxu1 }
 0x273   :  { %v842_v23 = vpop.f32.mrf.mxu0  ;;  %1018 = vmatmul.f32.vlgmr.msrb.gmra.mxu3 %v878_v59  ;;  %v887_v52 = vmul.f32 %v816_v16, %v4593_v0 }
 0x274   :  { %1096 = vmatmul.f32.vlgmr.msra.gmra.mxu2 %v881_v41  ;;  %v888_v47 = vmul.f32 %v842_v23, %v4597_v7 }
 0x275   :  { %1047 = vmatmul.f32.gmra.mxu1 %v887_v52  ;;  %1451 = vmatpush.msra.mxu2 %v3893_v22  ;;  %v4616_v22 = vadd.f32 %v4493_v17, %v337_v62 }
 0x276   :  { %1073 = vmatmul.f32.gmra.mxu0 %v888_v47 }
 0x277   :  { %1452 = vmatpush.msra.mxu2 %v3908_v26  ;;  %6434 = vst [vmem:[#allocation37_spill] sm:$0xff] %v4616_v22 }
 0x278   :  { %v790_v11 = vpop.f32.mrf.mxu3 }
 0x279   :  { %v868_v51 = vpop.f32.mrf.mxu2  ;;  %v886_v13 = vmul.f32 %v790_v11, %v4604_v21  ;;  %1453 = vmatpush.msra.mxu2 %v3924_v30  ;;  %v4626_v30 = vadd.f32 %v4445_v9, %v338_v29 }
 0x27a   :  { %v819_v20 = vpop.f32.mrf.mxu1  ;;  %v889_v53 = vmul.f32 %v868_v51, %v4608_v46 }
 0x27b   :  { %v845_v50 = vpop.f32.mrf.mxu0  ;;  %1021 = vmatmul.f32.gmra.mxu3 %v886_v13  ;;  %v895_v26 = vmul.f32 %v819_v20, %v4611_v63  ;;  %1454 = vmatpush.msra.mxu2 %v3942_v34  ;;  %6436 = vst [vmem:[#allocation39_spill] sm:$0xff] %v4626_v30 }
 0x27c   :  { %1099 = vmatmul.f32.gmra.mxu2 %v889_v53  ;;  %v896_v38 = vmul.f32 %v845_v50, %v4616_v22 }
 0x27d   :  { %1050 = vmatmul.f32.gmra.mxu1 %v895_v26 }
 0x27e   :  { %1076 = vmatmul.f32.gmra.mxu0 %v896_v38 }
 0x280   :  { %v793_v17 = vpop.f32.mrf.mxu3 }
 0x281   :  { %v871_v25 = vpop.f32.mrf.mxu2  ;;  %v894_v62 = vmul.f32 %v793_v17, %v4623_v33 }
 0x282   :  { %v897_v59 = vmul.f32 %v871_v25, %v4626_v30 }
 0x283   :  { %1024 = vmatmul.f32.gmra.mxu3 %v894_v62 }
 0x284   :  { %1102 = vmatmul.f32.gmra.mxu2 %v897_v59 }
 0x2d2   :  { %v941_v34 = vpop.f32.mrf.mxu1 }
 0x2d3   :  { %v967_v15 = vpop.f32.mrf.mxu0 }
 0x2da   :  { %v944_v23 = vpop.f32.mrf.mxu1 }
 0x2db   :  { %v970_v52 = vpop.f32.mrf.mxu0 }
 0x2de   :  { %v915_v41 = vpop.f32.mrf.mxu3 }
 0x2df   :  { %v993_v16 = vpop.f32.mrf.mxu2  ;;  %v942_v26 = vadd.f32 %v941_v34, %v915_v41 }
 0x2e1   :  { %v968_v59 = vadd.f32 %v967_v15, %v942_v26  ;;  %v4633_v15 = vld [vmem:[%s6213_s14 + $0x18] sm:$0xff] }
 0x2e2   :  { %v947_v18 = vpop.f32.mrf.mxu1  ;;  %1165 = vmatpush.msrb.mxu1 %v4633_v15 }
 0x2e3   :  { %v973_v11 = vpop.f32.mrf.mxu0  ;;  %v994_v7 = vadd.f32 %v993_v16, %v968_v59  ;;  %v4783_v59 = vld [vmem:[%s6397_s27 + $0x28] sm:$0xff] }
 0x2e4   :  { %6443 = vst [vmem:[#allocation46_spill] sm:$0xff] %v4783_v59 }
 0x2e6   :  { %v918_v47 = vpop.f32.mrf.mxu3 }
 0x2e7   :  { %v996_v54 = vpop.f32.mrf.mxu2  ;;  %v945_v50 = vadd.f32 %v944_v23, %v918_v47 }
 0x2e9   :  { %v971_v38 = vadd.f32 %v970_v52, %v945_v50  ;;  %v4764_v50 = vld [vmem:[%s6397_s27 + $0xe8] sm:$0xff] }
 0x2ea   :  { %v1045_v51 = vpop.f32.mrf.mxu1  ;;  %6440 = vst [vmem:[#allocation43_spill] sm:$0xff] %v4764_v50 }
 0x2eb   :  { %v1071_v13 = vpop.f32.mrf.mxu0  ;;  %v997_v33 = vadd.f32 %v996_v54, %v971_v38  ;;  %v4770_v38 = vld [vmem:[%s6397_s27 + $0xa8] sm:$0xff] }
 0x2ec   :  { %6441 = vst [vmem:[#allocation44_spill] sm:$0xff] %v4770_v38 }
 0x2ee   :  { %v921_v9 = vpop.f32.mrf.mxu3 }
 0x2ef   :  { %v999_v29 = vpop.f32.mrf.mxu2  ;;  %v948_v17 = vadd.f32 %v947_v18, %v921_v9  ;;  %v4715_v18 = vld [vmem:[%s6213_s14 + $0x10] sm:$0xff]  ;;  %v4745_v9 = vld [vmem:[%s6397_s27 + $0x48] sm:$0xff] }
 0x2f0   :  { %1166 = vmatpush.msrb.mxu1 %v4715_v18 }
 0x2f1   :  { %v974_v30 = vadd.f32 %v973_v11, %v948_v17  ;;  %v4721_v11 = vld [vmem:[%s6213_s14 + $0x8] sm:$0xff] }
 0x2f2   :  { %v1048_v25 = vpop.f32.mrf.mxu1  ;;  %1167 = vmatpush.msrb.mxu1 %v4721_v11 }
 0x2f3   :  { %v1074_v22 = vpop.f32.mrf.mxu0  ;;  %v1000_v46 = vadd.f32 %v999_v29, %v974_v30  ;;  %v4704_v30 = vld [vmem:[%s6397_s27 + $0xf0] sm:$0xff]  ;;  %v4751_v29 = vld [vmem:[%s6397_s27 + $0x8] sm:$0xff] }
 0x2f6   :  { %v1019_v20 = vpop.f32.mrf.mxu3 }
 0x2f7   :  { %v1097_v53 = vpop.f32.mrf.mxu2  ;;  %v1020_v0 = vadd.f32 %v1019_v20, %v994_v7 }
 0x2f9   :  { %v1046_v56 = vadd.f32 %v1045_v51, %v1020_v0  ;;  %v4664_v0 = vld [vmem:[%s6215_s15] sm:$0xff] }
 0x2fa   :  { %v1051_v49 = vpop.f32.mrf.mxu1  ;;  %v4757_v51 = vld [vmem:[%s6212_s13] ss:$0 sm:$0xff] }
 0x2fb   :  { %v1077_v34 = vpop.f32.mrf.mxu0  ;;  %v1072_v54 = vadd.f32 %v1071_v13, %v1046_v56  ;;  %v4652_v56 = vld [vmem:[%s6215_s15 + $0x10] sm:$0xff]  ;;  %6439 = vst [vmem:[#allocation42_spill] sm:$0xff] %v4757_v51 }
 0x2fe   :  { %v1022_v62 = vpop.f32.mrf.mxu3 }
 0x2ff   :  { %v1100_v63 = vpop.f32.mrf.mxu2  ;;  %v1023_v21 = vadd.f32 %v1022_v62, %v997_v33  ;;  %v4696_v33 = vld [vmem:[%s6397_s27 + $0x10] sm:$0xff] }
 0x301   :  { %v1049_v24 = vadd.f32 %v1048_v25, %v1023_v21  ;;  %v4669_v21 = vld [vmem:[%s6214_s3 + $0x8] sm:$0xf] }
 0x302   :  { %6438 = vst [vmem:[#allocation41_spill] sm:$0xff] %v4669_v21  ;;  %v4777_v25 = vld [vmem:[%s6397_s27 + $0x68] sm:$0xff] }
 0x303   :  { %v1075_v41 = vadd.f32 %v1074_v22, %v1049_v24  ;;  %v4645_v24 = vld [vmem:[%s6215_s15 + $0x18] sm:$0xff]  ;;  %v4690_v22 = vld [vmem:[%s6397_s27 + $0x50] sm:$0xff]  ;;  %6442 = vst [vmem:[#allocation45_spill] sm:$0xff] %v4777_v25 }
 0x305   :  { %v1101_v7 = vadd.f32 %v1100_v63, %v1075_v41  ;;  %v4684_v63 = vld [vmem:[%s6397_s27 + $0x90] sm:$0xff] }
 0x306   :  { %v1025_v55 = vpop.f32.mrf.mxu3 }
 0x307   :  { %v1026_v58 = vadd.f32 %v1025_v55, %v1000_v46  ;;  %v1103_v47 = vpop.f32.mrf.mxu2  ;;  %v1098_v55 = vadd.f32 %v1097_v53, %v1072_v54  ;;  %v4678_v46 = vld [vmem:[%s6397_s27 + $0xd0] sm:$0xff]  ;;  %v4799_v54 = vld [vmem:[%s6217_s16] ss:$0 sm:$0xff] }
 0x308   :  { %6445 = vst [vmem:[#allocation48_spill] sm:$0xff] %v4799_v54 }
 0x309   :  { %v1052_v23 = vadd.f32 %v1051_v49, %v1026_v58  ;;  %v4640_v49 = vld [vmem:[%s6214_s3] sm:$0xff]  ;;  %v4658_v58 = vld [vmem:[%s6215_s15 + $0x8] sm:$0xff] }
 0x30a   :  { %6437 = vst [vmem:[#allocation40_spill] sm:$0xff] %v4640_v49 }
 0x30b   :  { %v1078_v52 = vadd.f32 %v1077_v34, %v1052_v23  ;;  %v4790_v34 = vld [vmem:[%s6216_s17] ss:$0 sm:$0xff] }
 0x30c   :  { %6444 = vst [vmem:[#allocation47_spill] sm:$0xff] %v4790_v34 }
 0x30d   :  { %v1104_v16 = vadd.f32 %v1103_v47, %v1078_v52 }
 0x30f   :  { %3141 = vmatpush.msk.msra.mxu3 %vm579_vm3, %v1104_v16 }
 0x311   :  { %1133 = vmatpush.msra.mxu3 %v1101_v7 }
 0x313   :  { %1134 = vmatpush.msra.mxu3 %v1098_v55 }
 0x314   :  { %3142 = vmatmul.msk.f32.vlgmr.msra.gmra.mxu3 %vm1109_vm6, %v4640_v49 }
 0x315   :  { %1196 = vmatpush.msrb.mxu3 %v4645_v24 }
 0x317   :  { %1197 = vmatpush.msrb.mxu3 %v4652_v56 }
 0x319   :  { %1198 = vmatpush.msrb.mxu3 %v4658_v58 }
 0x31b   :  { %1199 = vmatpush.msrb.mxu3 %v4664_v0 }
 0x31c   :  { %3143 = vmatmul.msk.f32.gmra.mxu3 %vm1109_vm6, %v4669_v21 }
 0x31d   :  { %1399 = vmatpush.msra.mxu3 %v4678_v46 }
 0x31f   :  { %1400 = vmatpush.msra.mxu3 %v4684_v63 }
 0x321   :  { %1401 = vmatpush.msra.mxu3 %v4690_v22 }
 0x323   :  { %1402 = vmatpush.msra.mxu3 %v4696_v33 }
 0x324   :  { %3146 = vmatmul.msk.f32.vlgmr.msrb.gmra.mxu3 %vm347_vm2, %v3839_v6 }
 0x325   :  { %1503 = vmatpush.msrb.mxu3 %v4704_v30 }
 0x327   :  { %1504 = vmatpush.msrb.mxu3 %v3916_v28  ;;  %v4727_v28 = vld [vmem:[%s6213_s14] sm:$0xff] }
 0x328   :  { %1168 = vmatpush.msrb.mxu1 %v4727_v28 }
 0x329   :  { %1505 = vmatpush.msrb.mxu3 %v3933_v32  ;;  %v4733_v32 = vld [vmem:[%s6397_s27 + $0xc8] sm:$0xff] }
 0x32a   :  { %1373 = vmatpush.msra.mxu1 %v4733_v32 }
 0x32b   :  { %1506 = vmatpush.msrb.mxu3 %v3951_v36  ;;  %v4739_v36 = vld [vmem:[%s6397_s27 + $0x88] sm:$0xff] }
 0x32c   :  { %3147 = vmatmul.msk.f32.gmra.mxu3 %vm347_vm2, %v3837_v5  ;;  %1374 = vmatpush.msra.mxu1 %v4739_v36 }
 0x32e   :  { %1375 = vmatpush.msra.mxu1 %v4745_v9 }
 0x330   :  { %1376 = vmatpush.msra.mxu1 %v4751_v29 }
 0x397   :  { %v1136_v13 = vpop.f32.mrf.mxu3 }
 0x398   :  { %v1137_v20 = vadd.f32 %v4757_v51, %v1136_v13 }
 0x39a   :  { %v1142_v53 = vmax.f32 %v1137_v20, 0.0 }
 0x39c   :  { %3144 = vmatmul.msk.f32.vlgmr.msrb.gmra.mxu1 %vm347_vm2, %v1142_v53 }
 0x39d   :  { %1477 = vmatpush.msrb.mxu1 %v4764_v50 }
 0x39f   :  { %v1139_v26 = vpop.f32.mrf.mxu3  ;;  %1478 = vmatpush.msrb.mxu1 %v4770_v38 }
 0x3a0   :  { %v1140_v17 = vadd.f32 %v4757_v51, %v1139_v26 }
 0x3a1   :  { %1479 = vmatpush.msrb.mxu1 %v4777_v25 }
 0x3a2   :  { %v1143_v62 = vmax.f32 %v1140_v17, 0.0 }
 0x3a3   :  { %1480 = vmatpush.msrb.mxu1 %v4783_v59 }
 0x3a4   :  { %3145 = vmatmul.msk.f32.gmra.mxu1 %vm347_vm2, %v1143_v62 }
 0x3a7   :  { %v1201_v23 = vpop.f32.mrf.mxu3 }
 0x3a8   :  { %v1202_v47 = vadd.f32 %v4790_v34, %v1201_v23 }
 0x3af   :  { %v1204_v41 = vpop.f32.mrf.mxu3 }
 0x3b0   :  { %v1205_v52 = vadd.f32 %v4790_v34, %v1204_v41 }
 0x3b2   :  { %1251 = vrot.lane.b32.xlu0 %v1205_v52, %s3509_s11 }
 0x3ba   :  { %1249 = vrot.lane.b32.xlu0 %v1202_v47, %s3509_s11 }
 0x419   :  { %v1170_v16 = vpop.f32.mrf.mxu1 }
 0x41a   :  { %v1171_v7 = vadd.f32 %v4799_v54, %v1170_v16 }
 0x41c   :  { %v1207_v55 = vadd.f32 %v1202_v47, %v1171_v7 }
 0x41e   :  { %v3148_v13 = vmul.f32 -1.442695, %v1207_v55 }
 0x420   :  { %3261 = vpow2.f32 %v3148_v13 }
 0x421   :  { %v1173_v20 = vpop.f32.mrf.mxu1 }
 0x422   :  { %v1174_v53 = vadd.f32 %v4799_v54, %v1173_v20 }
 0x424   :  { %v1208_v26 = vadd.f32 %v1205_v52, %v1174_v53 }
 0x426   :  { %v3262_v17 = vpop.eup %3261  ;;  %v3149_v62 = vmul.f32 -1.442695, %v1208_v26  ;;  %v1252_v26 = vpop.permute.xlu0 %1251 }
 0x427   :  { %v1215_v23 = vadd.f32 1.0, %v3262_v17 }
 0x428   :  { %3263 = vpow2.f32 %v3149_v62 }
 0x429   :  { %3265 = vrcp.f32 %v1215_v23  ;;  %v1228_v49 = vand.u32 2147483648, %v1215_v23  ;;  %vm1222_vm12 = vweird.f32 %v1215_v23 }
 0x42e   :  { %v3264_v41 = vpop.eup %3263 }
 0x42f   :  { %v1216_v59 = vadd.f32 1.0, %v3264_v41  ;;  %v3266_v25 = vpop.eup %3265 }
 0x430   :  { %v1218_v38 = vmul.f32 %v3266_v25, %v1215_v23  ;;  %vm1223_vm11 = vweird.f32 %v3266_v25 }
 0x431   :  { %3267 = vrcp.f32 %v1216_v59  ;;  %v1243_v55 = vand.u32 2147483648, %v1216_v59  ;;  %v1241_v21 = vand.u32 2147483647, %v1216_v59  ;;  %vm1237_vm8 = vweird.f32 %v1216_v59  ;;  %vm1224_vm13 = vmor %vm1222_vm12, %vm1223_vm11 }
 0x432   :  { %v1219_v16 = vsub.f32 1.0, %v1218_v38  ;;  %v1226_v38 = vand.u32 2147483647, %v1215_v23 }
 0x433   :  { %v1244_v17 = vor.u32 1.1754944e-38, %v1243_v55  ;;  %vm1242_vm10 = vcmp.eq.f32.partialorder %v1241_v21, 8.507059e+37 }
 0x434   :  { %v1220_v20 = vmul.f32 %v3266_v25, %v1219_v16  ;;  %vm1227_vm14 = vcmp.eq.f32.partialorder %v1226_v38, 8.507059e+37 }
 0x436   :  { %v1221_v41 = vadd.f32 %v3266_v25, %v1220_v20 }
 0x437   :  { %v3268_v50 = vpop.eup %3267 }
 0x438   :  { %v1233_v51 = vmul.f32 %v3268_v50, %v1216_v59  ;;  %vm1238_vm7 = vweird.f32 %v3268_v50  ;;  %v1250_v59 = vpop.permute.xlu0 %1249 }
 0x439   :  { %vm1239_vm9 = vmor %vm1237_vm8, %vm1238_vm7 }
 0x43a   :  { %v1234_v47 = vsub.f32 1.0, %v1233_v51  ;;  %v1225_v51 = vsel %vm1224_vm13, %v3266_v25, %v1221_v41 }
 0x43c   :  { %v1235_v13 = vmul.f32 %v3268_v50, %v1234_v47  ;;  %v1229_v47 = vor.u32 1.1754944e-38, %v1228_v49 }
 0x43e   :  { %v1236_v52 = vadd.f32 %v3268_v50, %v1235_v13  ;;  %v1230_v16 = vsel %vm1227_vm14, %v1229_v47, %v1225_v51  ;;  %v4829_v47 = vld [vmem:[%s6399_s10] sm:$0xff] }
 0x43f   :  { %v1255_v13 = vmul.f32 %v1250_v59, %v1230_v16  ;;  %v4842_v59 = vld [vmem:[%s6397_s27 + $0x98] sm:$0xff] }
 0x440   :  { %v1240_v62 = vsel %vm1239_vm9, %v3268_v50, %v1236_v52 }
 0x441   :  { %v1245_v54 = vsel %vm1242_vm10, %v1244_v17, %v1240_v62  ;;  %v1269_v17 = vsub.f32 1.0, %v1230_v16 }
 0x442   :  { %v1256_v34 = vmul.f32 %v1252_v26, %v1245_v54 }
 0x444   :  { %1261 = vrot.lane.b32.xlu1 %v1256_v34, %s3509_s11  ;;  %v1270_v34 = vsub.f32 1.0, %v1245_v54 }
 0x44c   :  { %1259 = vrot.lane.b32.xlu1 %v1255_v13, %s3509_s11  ;;  %v4848_v13 = vld [vmem:[%s6397_s27 + $0x58] sm:$0xff] }
 0x454   :  { %1281 = vrot.lane.b32.xlu1 %v3839_v6, %s3510_s0 }
 0x4b6   :  { %v1262_v21 = vpop.permute.xlu1 %1261 }
 0x4b7   :  { %v1266_v50 = vadd.f32 %v1262_v21, %v1174_v53  ;;  %v4854_v21 = vld [vmem:[%s6397_s27 + $0x18] sm:$0xff] }
 0x4b9   :  { %3269 = vtanh.f32 %v1266_v50  ;;  %v4860_v50 = vld [vmem:[%s6399_s10 + $0x8] sm:$0xff] }
 0x4be   :  { %v1260_v55 = vpop.permute.xlu1 %1259 }
 0x4bf   :  { %v3270_v23 = vpop.eup %3269  ;;  %v1265_v20 = vadd.f32 %v1260_v55, %v1171_v7  ;;  %v4867_v55 = vld [vmem:[%s6397_s27 + $0xf8] sm:$0xff] }
 0x4c0   :  { %1275 = vrot.lane.b32.xlu2 %v3270_v23, %s3511_s26  ;;  %v4873_v23 = vld [vmem:[%s6397_s27 + $0xb8] sm:$0xff] }
 0x4c1   :  { %3271 = vtanh.f32 %v1265_v20  ;;  %v4879_v20 = vld [vmem:[%s6397_s27 + $0x78] sm:$0xff] }
 0x4c6   :  { %v1282_v7 = vpop.permute.xlu1 %1281 }
 0x4c7   :  { %v3272_v49 = vpop.eup %3271  ;;  %v1287_v41 = vmul.f32 %v1282_v7, %v1230_v16  ;;  %v4836_v16 = vld [vmem:[%s6397_s27 + $0xd8] sm:$0xff] }
 0x4c8   :  { %1283 = vrot.lane.b32.xlu2 %v3837_v5, %s3510_s0  ;;  %1273 = vrot.lane.b32.xlu0 %v3272_v49, %s3511_s26  ;;  %v4885_v49 = vld [vmem:[%s6397_s27 + $0x38] sm:$0xff] }
 0x4c9   :  { %v4926_v7 = vld [vmem:[%s6210_s6 + $0x178] sm:$0xff] }
 0x4ca   :  { %6447 = vst [vmem:[#allocation50_spill] sm:$0xff] %v4926_v7 }
 0x51a   :  { %v1276_v25 = vpop.permute.xlu2 %1275 }
 0x51b   :  { %v1280_v6 = vmul.f32 %v1276_v25, %v1270_v34  ;;  %v4891_v25 = vld [vmem:[%s6399_s10 + $0x10] sm:$0xf] }
 0x522   :  { %v1284_v52 = vpop.permute.xlu2 %1283 }
 0x523   :  { %v1288_v26 = vmul.f32 %v1284_v52, %v1245_v54  ;;  %v4908_v52 = vld [vmem:[%s6210_s6 + $0xf8] sm:$0xff] }
 0x525   :  { %v4811_v53 = vadd.f32 %v1288_v26, %v1280_v6  ;;  %v4914_v6 = vld [vmem:[%s6210_s6 + $0x1f8] sm:$0xff] }
 0x526   :  { %6446 = vst [vmem:[#allocation49_spill] sm:$0xff] %v4914_v6  ;;  %v4920_v26 = vld [vmem:[%s6210_s6 + $0x78] sm:$0xff] }
 0x527   :  { %1295 = vrot.lane.b32.xlu2 %v4811_v53, %s3511_s26 }
 0x53a   :  { %v1274_v62 = vpop.permute.xlu0 %1273 }
 0x53b   :  { %v1279_v38 = vmul.f32 %v1274_v62, %v1269_v17  ;;  %v4932_v17 = vld [vmem:[%s6210_s6 + $0xf0] sm:$0xff] }
 0x53c   :  { %6448 = vst [vmem:[#allocation51_spill] sm:$0xff] %v4932_v17  ;;  %v4938_v62 = vld [vmem:[%s6210_s6 + $0x1f0] sm:$0xff] }
 0x53d   :  { %v4815_v51 = vadd.f32 %v1287_v41, %v1279_v38  ;;  %6449 = vst [vmem:[#allocation52_spill] sm:$0xff] %v4938_v62  ;;  %v4944_v41 = vld [vmem:[%s6210_s6 + $0x70] sm:$0xff] }
 0x53e   :  { %6450 = vst [vmem:[#allocation53_spill] sm:$0xff] %v4944_v41  ;;  %v4950_v38 = vld [vmem:[%s6210_s6 + $0x170] sm:$0xff] }
 0x53f   :  { %1293 = vrot.lane.b32.xlu0 %v4815_v51, %s3511_s26  ;;  %6451 = vst [vmem:[#allocation54_spill] sm:$0xff] %v4950_v38 }
 0x581   :  { %v4819_v5 = vpop.permute.xlu2 %1295 }
 0x582   :  { %3150 = vmatpush.msk.msrb.mxu0 %vm579_vm3, %v4819_v5 }
 0x5b1   :  { %v4823_v54 = vpop.permute.xlu0 %1293 }
 0x5b2   :  { %1315 = vmatpush.msrb.mxu0 %v4823_v54 }
 0x5b3   :  { %3151 = vmatmul.msk.f32.vlgmr.msrb.gmra.mxu0 %vm618_vm5, %v4829_v47 }
 0x5b4   :  { %1425 = vmatpush.msra.mxu0 %v4836_v16 }
 0x5b6   :  { %1426 = vmatpush.msra.mxu0 %v4842_v59 }
 0x5b8   :  { %1427 = vmatpush.msra.mxu0 %v4848_v13 }
 0x5ba   :  { %1428 = vmatpush.msra.mxu0 %v4854_v21 }
 0x5bb   :  { %3152 = vmatmul.msk.f32.gmra.mxu0 %vm618_vm5, %v4860_v50 }
 0x5bc   :  { %1529 = vmatpush.msrb.mxu0 %v4867_v55 }
 0x5be   :  { %1530 = vmatpush.msrb.mxu0 %v4873_v23 }
 0x5c0   :  { %1531 = vmatpush.msrb.mxu0 %v4879_v20 }
 0x5c2   :  { %1532 = vmatpush.msrb.mxu0 %v4885_v49 }
 0x5c3   :  { %3153 = vmatmul.msk.f32.gmra.mxu0 %vm618_vm5, %v4891_v25 }
 0x630   :  { %v4895_v34 = vpop.f32.mrf.mxu0 }
 0x631   :  { %3154 = vmatmul.msk.f32.vlgmr.msrb.gmra.mxu2 %vm347_vm2, %v4895_v34  ;;  %3157 = vmatmul.msk.f32.vlgmr.msra.gmra.mxu1 %vm347_vm2, %v4895_v34 }
 0x632   :  { %3160 = vmatmul.msk.f32.vlgmr.msra.gmra.mxu3 %vm347_vm2, %v4895_v34  ;;  %3163 = vmatmul.msk.f32.vlgmr.msra.gmra.mxu0 %vm347_vm2, %v4895_v34 }
 0x633   :  { %1593 = vmatpush.msra.mxu1 %v4908_v52  ;;  %1645 = vmatpush.msra.mxu0 %v4914_v6  ;;  %v5008_v6 = vld [vmem:[%s6210_s6 + $0x160] sm:$0xff] }
 0x634   :  { %1567 = vmatpush.msrb.mxu2 %v4920_v26  ;;  %1619 = vmatpush.msra.mxu3 %v4926_v7  ;;  %6459 = vst [vmem:[#allocation62_spill] sm:$0xff] %v5008_v6  ;;  %v5090_v7 = vld [vmem:[%s6210_s6 + $0x148] sm:$0xff] }
 0x635   :  { %1594 = vmatpush.msra.mxu1 %v4932_v17  ;;  %1646 = vmatpush.msra.mxu0 %v4938_v62  ;;  %v4956_v17 = vld [vmem:[%s6210_s6 + $0xe8] sm:$0xff]  ;;  %6471 = vst [vmem:[#allocation74_spill] sm:$0xff] %v5090_v7 }
 0x636   :  { %1568 = vmatpush.msrb.mxu2 %v4944_v41  ;;  %1620 = vmatpush.msra.mxu3 %v4950_v38  ;;  %6452 = vst [vmem:[#allocation55_spill] sm:$0xff] %v4956_v17  ;;  %v4962_v62 = vld [vmem:[%s6210_s6 + $0x1e8] sm:$0xff] }
 0x637   :  { %1595 = vmatpush.msra.mxu1 %v4956_v17  ;;  %6453 = vst [vmem:[#allocation56_spill] sm:$0xff] %v4962_v62  ;;  %1647 = vmatpush.msra.mxu0 %v4962_v62  ;;  %v4970_v38 = vld [vmem:[%s6210_s6 + $0x68] sm:$0xff]  ;;  %v4990_v62 = vld [vmem:[%s6210_s6 + $0xe0] sm:$0xff] }
 0x638   :  { %v4965_v41 = vpop.f32.mrf.mxu0  ;;  %6454 = vst [vmem:[#allocation57_spill] sm:$0xff] %v4970_v38  ;;  %1569 = vmatpush.msrb.mxu2 %v4970_v38  ;;  %v4976_v17 = vld [vmem:[%s6210_s6 + $0x168] sm:$0xff]  ;;  %v5002_v38 = vld [vmem:[%s6210_s6 + $0x60] sm:$0xff] }
 0x639   :  { %6455 = vst [vmem:[#allocation58_spill] sm:$0xff] %v4976_v17  ;;  %1621 = vmatpush.msra.mxu3 %v4976_v17  ;;  %3155 = vmatmul.msk.f32.gmra.mxu2 %vm347_vm2, %v4965_v41  ;;  %v4996_v17 = vld [vmem:[%s6210_s6 + $0x1e0] sm:$0xff] }
 0x63a   :  { %3158 = vmatmul.msk.f32.gmra.mxu1 %vm347_vm2, %v4965_v41  ;;  %3161 = vmatmul.msk.f32.gmra.mxu3 %vm347_vm2, %v4965_v41  ;;  %6456 = vst [vmem:[#allocation59_spill] sm:$0xff] %v4990_v62 }
 0x63b   :  { %3164 = vmatmul.msk.f32.gmra.mxu0 %vm347_vm2, %v4965_v41  ;;  %1596 = vmatpush.msra.mxu1 %v4990_v62  ;;  %6457 = vst [vmem:[#allocation60_spill] sm:$0xff] %v4996_v17  ;;  %v5014_v62 = vld [vmem:[%s6210_s6 + $0xd8] sm:$0xff] }
 0x63c   :  { %1648 = vmatpush.msra.mxu0 %v4996_v17  ;;  %6458 = vst [vmem:[#allocation61_spill] sm:$0xff] %v5002_v38  ;;  %1570 = vmatpush.msrb.mxu2 %v5002_v38  ;;  %v5020_v17 = vld [vmem:[%s6210_s6 + $0x1d8] sm:$0xff] }
 0x63d   :  { %1622 = vmatpush.msra.mxu3 %v5008_v6  ;;  %6460 = vst [vmem:[#allocation63_spill] sm:$0xff] %v5014_v62  ;;  %1597 = vmatpush.msra.mxu1 %v5014_v62  ;;  %v5026_v38 = vld [vmem:[%s6210_s6 + $0x58] sm:$0xff]  ;;  %v5038_v62 = vld [vmem:[%s6210_s6 + $0xd0] sm:$0xff] }
 0x63e   :  { %6461 = vst [vmem:[#allocation64_spill] sm:$0xff] %v5020_v17  ;;  %1649 = vmatpush.msra.mxu0 %v5020_v17  ;;  %1571 = vmatpush.msrb.mxu2 %v5026_v38  ;;  %v5032_v6 = vld [vmem:[%s6210_s6 + $0x158] sm:$0xff]  ;;  %v5044_v17 = vld [vmem:[%s6210_s6 + $0x1d0] sm:$0xff] }
 0x63f   :  { %6462 = vst [vmem:[#allocation65_spill] sm:$0xff] %v5026_v38  ;;  %1623 = vmatpush.msra.mxu3 %v5032_v6  ;;  %1598 = vmatpush.msra.mxu1 %v5038_v62 }
 0x640   :  { %6463 = vst [vmem:[#allocation66_spill] sm:$0xff] %v5032_v6  ;;  %1650 = vmatpush.msra.mxu0 %v5044_v17  ;;  %v5047_v38 = vpop.f32.mrf.mxu0  ;;  %v5052_v6 = vld [vmem:[%s6210_s6 + $0x50] sm:$0xff] }
 0x641   :  { %6464 = vst [vmem:[#allocation67_spill] sm:$0xff] %v5038_v62  ;;  %1572 = vmatpush.msrb.mxu2 %v5052_v6  ;;  %v5058_v62 = vld [vmem:[%s6210_s6 + $0x150] sm:$0xff] }
 0x642   :  { %6465 = vst [vmem:[#allocation68_spill] sm:$0xff] %v5044_v17  ;;  %1624 = vmatpush.msra.mxu3 %v5058_v62  ;;  %3156 = vmatmul.msk.f32.gmra.mxu2 %vm347_vm2, %v5047_v38  ;;  %v5072_v17 = vld [vmem:[%s6210_s6 + $0xc8] sm:$0xff] }
 0x643   :  { %6466 = vst [vmem:[#allocation69_spill] sm:$0xff] %v5052_v6  ;;  %3159 = vmatmul.msk.f32.gmra.mxu1 %vm347_vm2, %v5047_v38  ;;  %3162 = vmatmul.msk.f32.gmra.mxu3 %vm347_vm2, %v5047_v38  ;;  %v5084_v6 = vld [vmem:[%s6210_s6 + $0x48] sm:$0xff] }
 0x644   :  { %6467 = vst [vmem:[#allocation70_spill] sm:$0xff] %v5058_v62  ;;  %3165 = vmatmul.msk.f32.gmra.mxu0 %vm347_vm2, %v5047_v38  ;;  %1599 = vmatpush.msra.mxu1 %v5072_v17  ;;  %v5078_v62 = vld [vmem:[%s6210_s6 + $0x1c8] sm:$0xff] }
 0x645   :  { %6468 = vst [vmem:[#allocation71_spill] sm:$0xff] %v5072_v17  ;;  %1651 = vmatpush.msra.mxu0 %v5078_v62  ;;  %1573 = vmatpush.msrb.mxu2 %v5084_v6  ;;  %v5096_v17 = vld [vmem:[%s6210_s6 + $0xc0] sm:$0xff] }
 0x646   :  { %6469 = vst [vmem:[#allocation72_spill] sm:$0xff] %v5078_v62  ;;  %1625 = vmatpush.msra.mxu3 %v5090_v7  ;;  %1600 = vmatpush.msra.mxu1 %v5096_v17  ;;  %v5102_v62 = vld [vmem:[%s6210_s6 + $0x1c0] sm:$0xff] }
 0x647   :  { %6470 = vst [vmem:[#allocation73_spill] sm:$0xff] %v5084_v6  ;;  %1652 = vmatpush.msra.mxu0 %v5102_v62  ;;  %v5108_v6 = vld [vmem:[%s6210_s6 + $0x40] sm:$0xff] }
 0x648   :  { %6472 = vst [vmem:[#allocation75_spill] sm:$0xff] %v5096_v17  ;;  %1574 = vmatpush.msrb.mxu2 %v5108_v6  ;;  %v5114_v7 = vld [vmem:[%s6210_s6 + $0x140] sm:$0xff]  ;;  %v5120_v17 = vld [vmem:[%s6210_s6 + $0xb8] sm:$0xff] }
 0x649   :  { %6473 = vst [vmem:[#allocation76_spill] sm:$0xff] %v5102_v62  ;;  %1626 = vmatpush.msra.mxu3 %v5114_v7  ;;  %1601 = vmatpush.msra.mxu1 %v5120_v17  ;;  %v5126_v62 = vld [vmem:[%s6210_s6 + $0x1b8] sm:$0xff] }
 0x64a   :  { %6474 = vst [vmem:[#allocation77_spill] sm:$0xff] %v5108_v6  ;;  %1653 = vmatpush.msra.mxu0 %v5126_v62  ;;  %v5132_v6 = vld [vmem:[%s6210_s6 + $0x38] sm:$0xff]  ;;  %3166 = vmatmul.msk.f32.vlgmr.msra.gmra.mxu2 %vm347_vm2, %v4895_v34 }
 0x64b   :  { %6475 = vst [vmem:[#allocation78_spill] sm:$0xff] %v5114_v7  ;;  %1575 = vmatpush.msrb.mxu2 %v5132_v6  ;;  %v5138_v7 = vld [vmem:[%s6210_s6 + $0x138] sm:$0xff]  ;;  %3169 = vmatmul.msk.f32.vlgmr.msrb.gmra.mxu1 %vm347_vm2, %v4895_v34 }
 0x64c   :  { %6476 = vst [vmem:[#allocation79_spill] sm:$0xff] %v5120_v17  ;;  %1627 = vmatpush.msra.mxu3 %v5138_v7  ;;  %3175 = vmatmul.msk.f32.vlgmr.msrb.gmra.mxu0 %vm347_vm2, %v4895_v34  ;;  %v5164_v17 = vld [vmem:[%s6210_s6 + $0x30] sm:$0xff] }
 0x64d   :  { %6477 = vst [vmem:[#allocation80_spill] sm:$0xff] %v5126_v62  ;;  %3172 = vmatmul.msk.f32.vlgmr.msrb.gmra.mxu3 %vm347_vm2, %v4895_v34  ;;  %v5152_v62 = vld [vmem:[%s6210_s6 + $0xb0] sm:$0xff]  ;;  %1576 = vmatpush.msrb.mxu2 %v5164_v17 }
 0x64e   :  { %6478 = vst [vmem:[#allocation81_spill] sm:$0xff] %v5138_v7  ;;  %1602 = vmatpush.msra.mxu1 %v5152_v62  ;;  %v5158_v7 = vld [vmem:[%s6210_s6 + $0x1b0] sm:$0xff] }
 0x64f   :  { %6479 = vst [vmem:[#allocation82_spill] sm:$0xff] %v5152_v62  ;;  %1654 = vmatpush.msra.mxu0 %v5158_v7  ;;  %v5170_v34 = vld [vmem:[%s6210_s6 + $0x130] sm:$0xff]  ;;  %v5176_v62 = vld [vmem:[%s6210_s6 + $0xa8] sm:$0xff] }
 0x650   :  { %6480 = vst [vmem:[#allocation83_spill] sm:$0xff] %v5158_v7  ;;  %1628 = vmatpush.msra.mxu3 %v5170_v34  ;;  %1603 = vmatpush.msra.mxu1 %v5176_v62  ;;  %v5182_v7 = vld [vmem:[%s6210_s6 + $0x1a8] sm:$0xff] }
 0x651   :  { %6481 = vst [vmem:[#allocation84_spill] sm:$0xff] %v5164_v17  ;;  %1655 = vmatpush.msra.mxu0 %v5182_v7  ;;  %v5188_v17 = vld [vmem:[%s6210_s6 + $0x28] sm:$0xff] }
 0x652   :  { %6482 = vst [vmem:[#allocation85_spill] sm:$0xff] %v5170_v34  ;;  %1577 = vmatpush.msrb.mxu2 %v5188_v17  ;;  %v5194_v34 = vld [vmem:[%s6210_s6 + $0x128] sm:$0xff] }
 0x653   :  { %6483 = vst [vmem:[#allocation86_spill] sm:$0xff] %v5176_v62  ;;  %1629 = vmatpush.msra.mxu3 %v5194_v34  ;;  %v5200_v62 = vld [vmem:[%s6210_s6 + $0xa0] sm:$0xff]  ;;  %3167 = vmatmul.msk.f32.gmra.mxu2 %vm347_vm2, %v4965_v41 }
 0x654   :  { %6484 = vst [vmem:[#allocation87_spill] sm:$0xff] %v5182_v7  ;;  %1604 = vmatpush.msra.mxu1 %v5200_v62  ;;  %v5206_v7 = vld [vmem:[%s6210_s6 + $0x1a0] sm:$0xff]  ;;  %3176 = vmatmul.msk.f32.gmra.mxu0 %vm347_vm2, %v4965_v41 }
 0x655   :  { %6485 = vst [vmem:[#allocation88_spill] sm:$0xff] %v5188_v17  ;;  %1656 = vmatpush.msra.mxu0 %v5206_v7  ;;  %v5212_v17 = vld [vmem:[%s6210_s6 + $0x20] sm:$0xff]  ;;  %3170 = vmatmul.msk.f32.gmra.mxu1 %vm347_vm2, %v4965_v41 }
 0x656   :  { %6486 = vst [vmem:[#allocation89_spill] sm:$0xff] %v5194_v34  ;;  %1578 = vmatpush.msrb.mxu2 %v5212_v17  ;;  %v5218_v34 = vld [vmem:[%s6210_s6 + $0x120] sm:$0xff]  ;;  %3173 = vmatmul.msk.f32.gmra.mxu3 %vm347_vm2, %v4965_v41  ;;  %v5250_v41 = vld [vmem:[%s6210_s6 + $0x118] sm:$0xff] }
 0x657   :  { %6487 = vst [vmem:[#allocation90_spill] sm:$0xff] %v5200_v62  ;;  %1630 = vmatpush.msra.mxu3 %v5218_v34  ;;  %v5244_v62 = vld [vmem:[%s6210_s6 + $0x18] sm:$0xff] }
 0x658   :  { %6488 = vst [vmem:[#allocation91_spill] sm:$0xff] %v5206_v7  ;;  %v5232_v7 = vld [vmem:[%s6210_s6 + $0x98] sm:$0xff]  ;;  %1579 = vmatpush.msrb.mxu2 %v5244_v62 }
 0x659   :  { %6489 = vst [vmem:[#allocation92_spill] sm:$0xff] %v5218_v34  ;;  %1605 = vmatpush.msra.mxu1 %v5232_v7  ;;  %v5238_v34 = vld [vmem:[%s6210_s6 + $0x198] sm:$0xff]  ;;  %1631 = vmatpush.msra.mxu3 %v5250_v41 }
 0x65a   :  { %6490 = vst [vmem:[#allocation93_spill] sm:$0xff] %v5232_v7  ;;  %1657 = vmatpush.msra.mxu0 %v5238_v34  ;;  %v5256_v7 = vld [vmem:[%s6210_s6 + $0x90] sm:$0xff] }
 0x65b   :  { %6491 = vst [vmem:[#allocation94_spill] sm:$0xff] %v5238_v34  ;;  %1606 = vmatpush.msra.mxu1 %v5256_v7  ;;  %v5262_v34 = vld [vmem:[%s6210_s6 + $0x190] sm:$0xff]  ;;  %3168 = vmatmul.msk.f32.gmra.mxu2 %vm347_vm2, %v5047_v38 }
 0x65c   :  { %6492 = vst [vmem:[#allocation95_spill] sm:$0xff] %v5244_v62  ;;  %1658 = vmatpush.msra.mxu0 %v5262_v34  ;;  %v5268_v62 = vld [vmem:[%s6210_s6 + $0x10] sm:$0xff] }
 0x65d   :  { %6493 = vst [vmem:[#allocation96_spill] sm:$0xff] %v5250_v41  ;;  %1580 = vmatpush.msrb.mxu2 %v5268_v62  ;;  %v5274_v41 = vld [vmem:[%s6210_s6 + $0x110] sm:$0xff]  ;;  %3171 = vmatmul.msk.f32.gmra.mxu1 %vm347_vm2, %v5047_v38 }
 0x65e   :  { %6494 = vst [vmem:[#allocation97_spill] sm:$0xff] %v5256_v7  ;;  %1632 = vmatpush.msra.mxu3 %v5274_v41  ;;  %v5280_v7 = vld [vmem:[%s6210_s6 + $0x88] sm:$0xff]  ;;  %3177 = vmatmul.msk.f32.gmra.mxu0 %vm347_vm2, %v5047_v38 }
 0x65f   :  { %6495 = vst [vmem:[#allocation98_spill] sm:$0xff] %v5262_v34  ;;  %1607 = vmatpush.msra.mxu1 %v5280_v7  ;;  %v5286_v34 = vld [vmem:[%s6210_s6 + $0x188] sm:$0xff]  ;;  %3174 = vmatmul.msk.f32.gmra.mxu3 %vm347_vm2, %v5047_v38  ;;  %v5330_v38 = vld [vmem:[%s6210_s6 + $0x3f8] sm:$0xff] }
 0x660   :  { %6496 = vst [vmem:[#allocation99_spill] sm:$0xff] %v5268_v62  ;;  %1659 = vmatpush.msra.mxu0 %v5286_v34  ;;  %v5292_v62 = vld [vmem:[%s6210_s6 + $0x8] sm:$0xff] }
 0x661   :  { %6497 = vst [vmem:[#allocation100_spill] sm:$0xff] %v5274_v41  ;;  %1581 = vmatpush.msrb.mxu2 %v5292_v62  ;;  %v5298_v41 = vld [vmem:[%s6210_s6 + $0x108] sm:$0xff] }
 0x662   :  { %6498 = vst [vmem:[#allocation101_spill] sm:$0xff] %v5280_v7  ;;  %1633 = vmatpush.msra.mxu3 %v5298_v41  ;;  %v5324_v7 = vld [vmem:[%s6210_s6 + $0x2f8] sm:$0xff] }
 0x663   :  { %6499 = vst [vmem:[#allocation102_spill] sm:$0xff] %v5286_v34  ;;  %v5312_v34 = vld [vmem:[%s6210_s6 + $0x80] sm:$0xff] }
 0x664   :  { %6500 = vst [vmem:[#allocation103_spill] sm:$0xff] %v5298_v41  ;;  %1608 = vmatpush.msra.mxu1 %v5312_v34  ;;  %v5318_v41 = vld [vmem:[%s6210_s6 + $0x180] sm:$0xff] }
 0x665   :  { %6501 = vst [vmem:[#allocation104_spill] sm:$0xff] %v5312_v34  ;;  %1660 = vmatpush.msra.mxu0 %v5318_v41  ;;  %v5336_v34 = vld [vmem:[%s6210_s6] sm:$0xff] }
 0x666   :  { %6502 = vst [vmem:[#allocation105_spill] sm:$0xff] %v5318_v41  ;;  %1697 = vmatpush.msrb.mxu1 %v5324_v7  ;;  %1582 = vmatpush.msrb.mxu2 %v5336_v34  ;;  %v5342_v41 = vld [vmem:[%s6210_s6 + $0x100] sm:$0xff] }
 0x667   :  { %6503 = vst [vmem:[#allocation106_spill] sm:$0xff] %v5324_v7  ;;  %1749 = vmatpush.msrb.mxu0 %v5330_v38  ;;  %1634 = vmatpush.msra.mxu3 %v5342_v41  ;;  %v5348_v7 = vld [vmem:[%s6210_s6 + $0x2f0] sm:$0xff] }
 0x668   :  { %6504 = vst [vmem:[#allocation107_spill] sm:$0xff] %v5330_v38  ;;  %1698 = vmatpush.msrb.mxu1 %v5348_v7  ;;  %v5354_v38 = vld [vmem:[%s6210_s6 + $0x3f0] sm:$0xff] }
 0x669   :  { %6505 = vst [vmem:[#allocation108_spill] sm:$0xff] %v5336_v34  ;;  %1750 = vmatpush.msrb.mxu0 %v5354_v38  ;;  %v5360_v34 = vld [vmem:[%s6210_s6 + $0x278] sm:$0xff] }
 0x66a   :  { %6506 = vst [vmem:[#allocation109_spill] sm:$0xff] %v5342_v41  ;;  %1671 = vmatpush.msra.mxu2 %v5360_v34  ;;  %v5366_v41 = vld [vmem:[%s6210_s6 + $0x378] sm:$0xff] }
 0x66b   :  { %6507 = vst [vmem:[#allocation110_spill] sm:$0xff] %v5348_v7  ;;  %1723 = vmatpush.msrb.mxu3 %v5366_v41  ;;  %v5372_v7 = vld [vmem:[%s6210_s6 + $0x2e8] sm:$0xff] }
 0x66c   :  { %6508 = vst [vmem:[#allocation111_spill] sm:$0xff] %v5354_v38  ;;  %1699 = vmatpush.msrb.mxu1 %v5372_v7  ;;  %v5378_v38 = vld [vmem:[%s6210_s6 + $0x3e8] sm:$0xff] }
 0x66d   :  { %6509 = vst [vmem:[#allocation112_spill] sm:$0xff] %v5360_v34  ;;  %1751 = vmatpush.msrb.mxu0 %v5378_v38  ;;  %v5384_v34 = vld [vmem:[%s6210_s6 + $0x270] sm:$0xff] }
 0x66e   :  { %6510 = vst [vmem:[#allocation113_spill] sm:$0xff] %v5366_v41  ;;  %1672 = vmatpush.msra.mxu2 %v5384_v34  ;;  %v5390_v41 = vld [vmem:[%s6210_s6 + $0x370] sm:$0xff] }
 0x66f   :  { %6511 = vst [vmem:[#allocation114_spill] sm:$0xff] %v5372_v7  ;;  %1724 = vmatpush.msrb.mxu3 %v5390_v41  ;;  %v5396_v7 = vld [vmem:[%s6210_s6 + $0x2e0] sm:$0xff] }
 0x670   :  { %6512 = vst [vmem:[#allocation115_spill] sm:$0xff] %v5378_v38  ;;  %1700 = vmatpush.msrb.mxu1 %v5396_v7  ;;  %v5402_v38 = vld [vmem:[%s6210_s6 + $0x3e0] sm:$0xff] }
 0x671   :  { %6513 = vst [vmem:[#allocation116_spill] sm:$0xff] %v5384_v34  ;;  %1752 = vmatpush.msrb.mxu0 %v5402_v38  ;;  %v5408_v34 = vld [vmem:[%s6210_s6 + $0x268] sm:$0xff] }
 0x672   :  { %6514 = vst [vmem:[#allocation117_spill] sm:$0xff] %v5390_v41  ;;  %1673 = vmatpush.msra.mxu2 %v5408_v34  ;;  %v5414_v41 = vld [vmem:[%s6210_s6 + $0x368] sm:$0xff] }
 0x673   :  { %6515 = vst [vmem:[#allocation118_spill] sm:$0xff] %v5396_v7  ;;  %1725 = vmatpush.msrb.mxu3 %v5414_v41  ;;  %v5420_v7 = vld [vmem:[%s6210_s6 + $0x2d8] sm:$0xff]  ;;  %1753 = vmatpush.msrb.mxu0 %v4301_v8 }
 0x674   :  { %6516 = vst [vmem:[#allocation119_spill] sm:$0xff] %v5402_v38  ;;  %1701 = vmatpush.msrb.mxu1 %v5420_v7  ;;  %v5427_v38 = vld [vmem:[%s6210_s6 + $0x260] sm:$0xff]  ;;  %v5446_v8 = vld [vmem:[%s6210_s6 + $0x258] sm:$0xff] }
 0x675   :  { %6517 = vst [vmem:[#allocation120_spill] sm:$0xff] %v5414_v41  ;;  %1674 = vmatpush.msra.mxu2 %v5427_v38  ;;  %v5433_v41 = vld [vmem:[%s6210_s6 + $0x360] sm:$0xff]  ;;  %1754 = vmatpush.msrb.mxu0 %v4316_v12  ;;  %v5465_v12 = vld [vmem:[%s6210_s6 + $0x250] sm:$0xff] }
 0x676   :  { %6518 = vst [vmem:[#allocation121_spill] sm:$0xff] %v5420_v7  ;;  %1726 = vmatpush.msrb.mxu3 %v5433_v41  ;;  %v5439_v7 = vld [vmem:[%s6210_s6 + $0x2d0] sm:$0xff] }
 0x677   :  { %6519 = vst [vmem:[#allocation122_spill] sm:$0xff] %v5433_v41  ;;  %1702 = vmatpush.msrb.mxu1 %v5439_v7  ;;  %1675 = vmatpush.msra.mxu2 %v5446_v8  ;;  %v5452_v41 = vld [vmem:[%s6210_s6 + $0x358] sm:$0xff] }
 0x678   :  { %6520 = vst [vmem:[#allocation123_spill] sm:$0xff] %v5439_v7  ;;  %1727 = vmatpush.msrb.mxu3 %v5452_v41  ;;  %v5458_v7 = vld [vmem:[%s6210_s6 + $0x2c8] sm:$0xff]  ;;  %1755 = vmatpush.msrb.mxu0 %v4333_v35 }
 0x679   :  { %6521 = vst [vmem:[#allocation124_spill] sm:$0xff] %v5452_v41  ;;  %1703 = vmatpush.msrb.mxu1 %v5458_v7  ;;  %1676 = vmatpush.msra.mxu2 %v5465_v12  ;;  %v5471_v41 = vld [vmem:[%s6210_s6 + $0x350] sm:$0xff]  ;;  %v5484_v35 = vld [vmem:[%s6210_s6 + $0x248] sm:$0xff] }
 0x67a   :  { %6522 = vst [vmem:[#allocation125_spill] sm:$0xff] %v5458_v7  ;;  %1728 = vmatpush.msrb.mxu3 %v5471_v41  ;;  %v5477_v7 = vld [vmem:[%s6210_s6 + $0x2c0] sm:$0xff]  ;;  %1756 = vmatpush.msrb.mxu0 %v4351_v42 }
 0x67b   :  { %6523 = vst [vmem:[#allocation126_spill] sm:$0xff] %v5471_v41  ;;  %1704 = vmatpush.msrb.mxu1 %v5477_v7  ;;  %1677 = vmatpush.msra.mxu2 %v5484_v35  ;;  %v5490_v41 = vld [vmem:[%s6210_s6 + $0x348] sm:$0xff]  ;;  %v5504_v42 = vld [vmem:[%s6210_s6 + $0x340] sm:$0xff] }
 0x67c   :  { %6524 = vst [vmem:[#allocation127_spill] sm:$0xff] %v5477_v7  ;;  %1729 = vmatpush.msrb.mxu3 %v5490_v41  ;;  %v5496_v7 = vld [vmem:[%s6210_s6 + $0x2b8] sm:$0xff]  ;;  %1757 = vmatpush.msrb.mxu0 %v4372_v40  ;;  %v5524_v40 = vld [vmem:[%s6210_s6 + $0x2a8] sm:$0xff] }
 0x67d   :  { %6525 = vst [vmem:[#allocation128_spill] sm:$0xff] %v5490_v41  ;;  %1705 = vmatpush.msrb.mxu1 %v5496_v7  ;;  %1678 = vmatpush.msra.mxu2 %v4339_v37  ;;  %v5510_v41 = vld [vmem:[%s6210_s6 + $0x2b0] sm:$0xff]  ;;  %v5518_v37 = vld [vmem:[%s6210_s6 + $0x338] sm:$0xff] }
 0x67e   :  { %6526 = vst [vmem:[#allocation129_spill] sm:$0xff] %v5496_v7  ;;  %1730 = vmatpush.msrb.mxu3 %v5504_v42  ;;  %1758 = vmatpush.msrb.mxu0 %v4397_v60  ;;  %v6532_v60 = vld [vmem:[#allocation5_spill] sm:$0xff] }
 0x67f   :  { %6527 = vst [vmem:[#allocation130_spill] sm:$0xff] %v5504_v42  ;;  %1706 = vmatpush.msrb.mxu1 %v5510_v41  ;;  %1679 = vmatpush.msra.mxu2 %v4357_v43  ;;  %v5532_v43 = vld [vmem:[%s6210_s6 + $0x330] sm:$0xff] }
 0x680   :  { %6528 = vst [vmem:[#allocation131_spill] sm:$0xff] %v5510_v41  ;;  %1731 = vmatpush.msrb.mxu3 %v5518_v37  ;;  %1759 = vmatpush.msrb.mxu0 %v4421_v1  ;;  %v6535_v1 = vld [vmem:[#allocation14_spill] sm:$0xff]  ;;  %v6545_v41 = vld [vmem:[#allocation7_spill] sm:$0xff]  ;;  %v6546_v42 = vld [vmem:[#allocation12_spill] sm:$0xff] }
 0x681   :  { %6529 = vst [vmem:[#allocation132_spill] sm:$0xff] %v5518_v37  ;;  %1707 = vmatpush.msrb.mxu1 %v5524_v40  ;;  %1680 = vmatpush.msra.mxu2 %v4380_v48  ;;  %v6534_v48 = vld [vmem:[#allocation3_spill] sm:$0xff]  ;;  %v6536_v37 = vld [vmem:[#allocation8_spill] sm:$0xff] }
 0x682   :  { %6530 = vst [vmem:[#allocation133_spill] sm:$0xff] %v5524_v40  ;;  %1732 = vmatpush.msrb.mxu3 %v5532_v43  ;;  %1760 = vmatpush.msrb.mxu0 %v4452_v10  ;;  %v5541_v40 = vld [vmem:[%s6210_s6 + $0x328] sm:$0xff]  ;;  %v6538_v10 = vld [vmem:[#allocation6_spill] sm:$0xff] }
 0x683   :  { %6531 = vst [vmem:[#allocation134_spill] sm:$0xff] %v5532_v43  ;;  %1708 = vmatpush.msrb.mxu1 %v4362_v44  ;;  %1681 = vmatpush.msra.mxu2 %v6532_v60  ;;  %v5550_v44 = vld [vmem:[%s6210_s6 + $0x320] sm:$0xff]  ;;  %v6539_v60 = vld [vmem:[#allocation16_spill] sm:$0xff] }
 0x684   :  { %6533 = vst [vmem:[#allocation5_spill] sm:$0xff] %v5541_v40  ;;  %1733 = vmatpush.msrb.mxu3 %v5541_v40  ;;  %1761 = vmatpush.msrb.mxu0 %v6535_v1  ;;  %v6540_v43 = vld [vmem:[#allocation11_spill] sm:$0xff]  ;;  %v6541_v40 = vld [vmem:[#allocation4_spill] sm:$0xff]  ;;  %v6543_v1 = vld [vmem:[#allocation18_spill] sm:$0xff] }
 0x685   :  { %1709 = vmatpush.msrb.mxu1 %v6534_v48  ;;  %1682 = vmatpush.msra.mxu2 %v6536_v37  ;;  %6537 = vst [vmem:[#allocation3_spill] sm:$0xff] %v5550_v44  ;;  %v6542_v48 = vld [vmem:[#allocation9_spill] sm:$0xff]  ;;  %v6544_v37 = vld [vmem:[#allocation15_spill] sm:$0xff] }
 0x686   :  { %1734 = vmatpush.msrb.mxu3 %v5550_v44  ;;  %1762 = vmatpush.msrb.mxu0 %v6539_v60  ;;  %v6547_v44 = vld [vmem:[#allocation17_spill] sm:$0xff]  ;;  %v6549_v60 = vld [vmem:[#allocation20_spill] sm:$0xff] }
 0x687   :  { %1710 = vmatpush.msrb.mxu1 %v6538_v10  ;;  %1683 = vmatpush.msra.mxu2 %v6540_v43  ;;  %v6548_v10 = vld [vmem:[#allocation10_spill] sm:$0xff]  ;;  %v6550_v43 = vld [vmem:[#allocation13_spill] sm:$0xff] }
 0x688   :  { %1735 = vmatpush.msrb.mxu3 %v6541_v40  ;;  %1763 = vmatpush.msrb.mxu0 %v6543_v1 }
 0x689   :  { %1711 = vmatpush.msrb.mxu1 %v6542_v48  ;;  %1684 = vmatpush.msra.mxu2 %v6544_v37  ;;  %v6551_v48 = vld [vmem:[#allocation19_spill] sm:$0xff] }
 0x68a   :  { %1736 = vmatpush.msrb.mxu3 %v6545_v41  ;;  %1764 = vmatpush.msrb.mxu0 %v4522_v4  ;;  %v3455_v4 = vld [vmem:[%s6397_s27 + $0xc0] sm:$0xff] }
 0x68b   :  { %1712 = vmatpush.msrb.mxu1 %v6546_v42  ;;  %1685 = vmatpush.msra.mxu2 %v6547_v44 }
 0x68c   :  { %1737 = vmatpush.msrb.mxu3 %v6548_v10  ;;  %v3456_v10 = vld [vmem:[%s6397_s27 + $0x80] sm:$0xff] }
 0x68d   :  { %1686 = vmatpush.msra.mxu2 %v6549_v60 }
 0x68e   :  { %1738 = vmatpush.msrb.mxu3 %v6550_v43 }
 0x6ae   :  { %v1378_v40 = vpop.f32.mrf.mxu1 }
 0x6af   :  { %v1544_v7 = vmul.f32 %v1378_v40, %v6551_v48  ;;  %v1430_v1 = vpop.f32.mrf.mxu0 }
 0x6b0   :  { %v1546_v37 = vmul.f32 %v1430_v1, %v4534_v39 }
 0x6b1   :  { %1609 = vmatmul.f32.vlgmr.msra.gmra.mxu1 %v1544_v7 }
 0x6b2   :  { %1661 = vmatmul.f32.vlgmr.msra.gmra.mxu0 %v1546_v37  ;;  %1821 = vmatpush.msra.mxu1 %v4633_v15 }
 0x6b3   :  { %1993 = vmatpush.msra.mxu0 %v3455_v4 }
 0x6b4   :  { %v1352_v41 = vpop.f32.mrf.mxu2  ;;  %1822 = vmatpush.msra.mxu1 %v4715_v18  ;;  %v3457_v18 = vld [vmem:[%s6397_s27 + $0x40] sm:$0xff] }
 0x6b5   :  { %v1543_v42 = vmul.f32 %v1352_v41, %v4531_v2  ;;  %v1404_v44 = vpop.f32.mrf.mxu3  ;;  %1994 = vmatpush.msra.mxu0 %v3456_v10 }
 0x6b6   :  { %v1545_v7 = vmul.f32 %v1404_v44, %v4511_v45  ;;  %1823 = vmatpush.msra.mxu1 %v4721_v11  ;;  %v3458_v11 = vld [vmem:[%s6397_s27] sm:$0xff] }
 0x6b7   :  { %v1381_v60 = vpop.f32.mrf.mxu1  ;;  %1583 = vmatmul.f32.vlgmr.msrb.gmra.mxu2 %v1543_v42  ;;  %1995 = vmatpush.msra.mxu0 %v3457_v18 }
 0x6b8   :  { %v1552_v15 = vmul.f32 %v1381_v60, %v4537_v57  ;;  %v1433_v43 = vpop.f32.mrf.mxu0  ;;  %1635 = vmatmul.f32.vlgmr.msra.gmra.mxu3 %v1545_v7  ;;  %1824 = vmatpush.msra.mxu1 %v4727_v28  ;;  %v6552_v60 = vld [vmem:[#allocation25_spill] sm:$0xff] }
 0x6b9   :  { %v1554_v40 = vmul.f32 %v1433_v43, %v4552_v27  ;;  %1848 = vmatpush.msra.mxu3 %v4645_v24  ;;  %1996 = vmatpush.msra.mxu0 %v3458_v11  ;;  %v6553_v43 = vld [vmem:[#allocation28_spill] sm:$0xff]  ;;  %v6554_v11 = vld [vmem:[#allocation31_spill] sm:$0xff] }
 0x6ba   :  { %1612 = vmatmul.f32.gmra.mxu1 %v1552_v15 }
 0x6bb   :  { %1664 = vmatmul.f32.gmra.mxu0 %v1554_v40  ;;  %1849 = vmatpush.msra.mxu3 %v4652_v56 }
 0x6bc   :  { %v1355_v1 = vpop.f32.mrf.mxu2 }
 0x6bd   :  { %v1551_v37 = vmul.f32 %v1355_v1, %v4548_v14  ;;  %v1407_v4 = vpop.f32.mrf.mxu3  ;;  %1850 = vmatpush.msra.mxu3 %v4658_v58 }
 0x6be   :  { %v1553_v41 = vmul.f32 %v1407_v4, %v4541_v61  ;;  %v6555_v4 = vld [vmem:[#allocation30_spill] sm:$0xff] }
 0x6bf   :  { %1586 = vmatmul.f32.gmra.mxu2 %v1551_v37  ;;  %1851 = vmatpush.msra.mxu3 %v4664_v0  ;;  %v3459_v0 = vld [vmem:[%s6397_s27 + $0xe0] sm:$0xff] }
 0x6c0   :  { %v1384_v28 = vpop.f32.mrf.mxu1  ;;  %1638 = vmatmul.f32.gmra.mxu3 %v1553_v41 }
 0x6c1   :  { %v1560_v42 = vmul.f32 %v1384_v28, %v4555_v3  ;;  %v1436_v24 = vpop.f32.mrf.mxu0 }
 0x6c2   :  { %v1562_v56 = vmul.f32 %v1436_v24, %v4572_v19  ;;  %v6556_v24 = vld [vmem:[#allocation29_spill] sm:$0xff] }
 0x6c3   :  { %1615 = vmatmul.f32.gmra.mxu1 %v1560_v42  ;;  %v3460_v42 = vld [vmem:[%s6397_s27 + $0xa0] sm:$0xff] }
 0x6c4   :  { %1667 = vmatmul.f32.gmra.mxu0 %v1562_v56 }
 0x6c5   :  { %v1358_v44 = vpop.f32.mrf.mxu2 }
 0x6c6   :  { %v1559_v10 = vmul.f32 %v1358_v44, %v4569_v31  ;;  %v1410_v7 = vpop.f32.mrf.mxu3 }
 0x6c7   :  { %v1561_v58 = vmul.f32 %v1410_v7, %v6552_v60 }
 0x6c8   :  { %v1482_v15 = vpop.f32.mrf.mxu1  ;;  %1589 = vmatmul.f32.gmra.mxu2 %v1559_v10 }
 0x6c9   :  { %v1548_v18 = vmul.f32 %v1482_v15, %v6553_v43  ;;  %v1534_v40 = vpop.f32.mrf.mxu0  ;;  %1641 = vmatmul.f32.gmra.mxu3 %v1561_v58  ;;  %v6558_v58 = vld [vmem:[#allocation35_spill] sm:$0xff] }
 0x6ca   :  { %v1550_v1 = vmul.f32 %v1534_v40, %v6554_v11  ;;  %v6559_v40 = vld [vmem:[#allocation34_spill] sm:$0xff] }
 0x6cb   :  { %1713 = vmatmul.f32.vlgmr.msrb.gmra.mxu1 %v1548_v18 }
 0x6cc   :  { %1765 = vmatmul.f32.vlgmr.msrb.gmra.mxu0 %v1550_v1  ;;  %2019 = vmatpush.msrb.mxu1 %v4733_v32  ;;  %v6557_v32 = vld [vmem:[#allocation32_spill] sm:$0xff] }
 0x6cd   :  { %2097 = vmatpush.msrb.mxu0 %v3459_v0  ;;  %v1456_v37 = vpop.f32.mrf.mxu2 }
 0x6ce   :  { %2020 = vmatpush.msrb.mxu1 %v4739_v36  ;;  %v1547_v41 = vmul.f32 %v1456_v37, %v6555_v4  ;;  %v3461_v36 = vld [vmem:[%s6397_s27 + $0x60] sm:$0xff]  ;;  %v6560_v37 = vld [vmem:[#allocation33_spill] sm:$0xff] }
 0x6cf   :  { %2098 = vmatpush.msrb.mxu0 %v3460_v42 }
 0x6d0   :  { %v1508_v28 = vpop.f32.mrf.mxu3  ;;  %2021 = vmatpush.msrb.mxu1 %v4745_v9  ;;  %1687 = vmatmul.f32.vlgmr.msra.gmra.mxu2 %v1547_v41  ;;  %v3462_v9 = vld [vmem:[%s6397_s27 + $0x20] sm:$0xff] }
 0x6d1   :  { %v1549_v56 = vmul.f32 %v1508_v28, %v6556_v24  ;;  %v1537_v7 = vpop.f32.mrf.mxu0  ;;  %2099 = vmatpush.msrb.mxu0 %v3461_v36  ;;  %v6561_v28 = vld [vmem:[#allocation36_spill] sm:$0xff] }
 0x6d2   :  { %v1485_v44 = vpop.f32.mrf.mxu1  ;;  %v1558_v15 = vmul.f32 %v1537_v7, %v6558_v58  ;;  %2022 = vmatpush.msrb.mxu1 %v4751_v29 }
 0x6d3   :  { %v1556_v10 = vmul.f32 %v1485_v44, %v6557_v32  ;;  %1739 = vmatmul.f32.vlgmr.msrb.gmra.mxu3 %v1549_v56  ;;  %2100 = vmatpush.msrb.mxu0 %v3462_v9  ;;  %v3464_v9 = vld [vmem:[%s6397_s27 + $0x70] sm:$0xff] }
 0x6d4   :  { %2045 = vmatpush.msrb.mxu3 %v4678_v46  ;;  %1768 = vmatmul.f32.gmra.mxu0 %v1558_v15  ;;  %v6564_v15 = vld [vmem:[#allocation37_spill] sm:$0xff] }
 0x6d5   :  { %1716 = vmatmul.f32.gmra.mxu1 %v1556_v10  ;;  %v6563_v10 = vld [vmem:[#allocation38_spill] sm:$0xff] }
 0x6d6   :  { %2046 = vmatpush.msrb.mxu3 %v4684_v63  ;;  %v1459_v18 = vpop.f32.mrf.mxu2  ;;  %v6562_v63 = vld [vmem:[#allocation39_spill] sm:$0xff] }
 0x6d7   :  { %v1555_v1 = vmul.f32 %v1459_v18, %v6559_v40  ;;  %v3465_v18 = vld [vmem:[%s6397_s27 + $0x30] sm:$0xff] }
 0x6d8   :  { %2047 = vmatpush.msrb.mxu3 %v4690_v22 }
 0x6d9   :  { %v1511_v0 = vpop.f32.mrf.mxu3  ;;  %1690 = vmatmul.f32.gmra.mxu2 %v1555_v1 }
 0x6da   :  { %v1557_v41 = vmul.f32 %v1511_v0, %v6560_v37  ;;  %v1488_v29 = vpop.f32.mrf.mxu1  ;;  %2048 = vmatpush.msrb.mxu3 %v4696_v33  ;;  %v3463_v33 = vld [vmem:[%s6397_s27 + $0xb0] sm:$0xff] }
 0x6db   :  { %v1564_v42 = vmul.f32 %v1488_v29, %v6561_v28  ;;  %v1540_v46 = vpop.f32.mrf.mxu0 }
 0x6dc   :  { %v1566_v56 = vmul.f32 %v1540_v46, %v6562_v63  ;;  %1742 = vmatmul.f32.gmra.mxu3 %v1557_v41 }
 0x6dd   :  { %1719 = vmatmul.f32.gmra.mxu1 %v1564_v42 }
 0x6de   :  { %1771 = vmatmul.f32.gmra.mxu0 %v1566_v56  ;;  %v1462_v44 = vpop.f32.mrf.mxu2 }
 0x6df   :  { %v1563_v7 = vmul.f32 %v1462_v44, %v6563_v10 }
 0x6e1   :  { %1693 = vmatmul.f32.gmra.mxu2 %v1563_v7 }
 0x6e2   :  { %v1514_v36 = vpop.f32.mrf.mxu3 }
 0x6e3   :  { %v1565_v22 = vmul.f32 %v1514_v36, %v6564_v15 }
 0x6e5   :  { %1745 = vmatmul.f32.gmra.mxu3 %v1565_v22 }
 0x6ed   :  { %3183 = vmatmul.msk.f32.vlgmr.msra.gmra.mxu3 %vm347_vm2, %v4823_v54 }
 0x6ee   :  { %2149 = vmatpush.msra.mxu3 %v4704_v30 }
 0x6f0   :  { %2150 = vmatpush.msra.mxu3 %v3463_v33 }
 0x6f2   :  { %2151 = vmatpush.msra.mxu3 %v3464_v9 }
 0x6f4   :  { %2152 = vmatpush.msra.mxu3 %v3465_v18 }
 0x6f5   :  { %3184 = vmatmul.msk.f32.gmra.mxu3 %vm347_vm2, %v4819_v5 }
 0x72e   :  { %v1610_v54 = vpop.f32.mrf.mxu1 }
 0x72f   :  { %v1662_v30 = vpop.f32.mrf.mxu0 }
 0x737   :  { %v1613_v41 = vpop.f32.mrf.mxu1 }
 0x738   :  { %v1665_v29 = vpop.f32.mrf.mxu0 }
 0x73a   :  { %v1584_v1 = vpop.f32.mrf.mxu2 }
 0x73b   :  { %v1636_v0 = vpop.f32.mrf.mxu3  ;;  %v1611_v15 = vadd.f32 %v1610_v54, %v1584_v1 }
 0x73d   :  { %v1637_v37 = vadd.f32 %v1636_v0, %v1611_v15 }
 0x73f   :  { %v1663_v43 = vadd.f32 %v1662_v30, %v1637_v37  ;;  %v6565_v37 = vld [vmem:[#allocation47_spill] sm:$0xff] }
 0x740   :  { %v1616_v56 = vpop.f32.mrf.mxu1 }
 0x741   :  { %v1668_v44 = vpop.f32.mrf.mxu0 }
 0x742   :  { %v1587_v42 = vpop.f32.mrf.mxu2 }
 0x743   :  { %v1639_v46 = vpop.f32.mrf.mxu3  ;;  %v1614_v18 = vadd.f32 %v1613_v41, %v1587_v42 }
 0x745   :  { %v1640_v28 = vadd.f32 %v1639_v46, %v1614_v18 }
 0x747   :  { %v1666_v11 = vadd.f32 %v1665_v29, %v1640_v28  ;;  %v6571_v28 = vld [vmem:[#allocation45_spill] sm:$0xff]  ;;  %v6573_v29 = vld [vmem:[#allocation48_spill] sm:$0xff] }
 0x748   :  { %v1714_v22 = vpop.f32.mrf.mxu1 }
 0x749   :  { %v1766_v63 = vpop.f32.mrf.mxu0 }
 0x74b   :  { %v1590_v7 = vpop.f32.mrf.mxu2 }
 0x74c   :  { %v1642_v36 = vpop.f32.mrf.mxu3  ;;  %v1617_v5 = vadd.f32 %v1616_v56, %v1590_v7 }
 0x74e   :  { %v1643_v40 = vadd.f32 %v1642_v36, %v1617_v5 }
 0x750   :  { %v1669_v60 = vadd.f32 %v1668_v44, %v1643_v40 }
 0x751   :  { %v1769_v24 = vpop.f32.mrf.mxu0 }
 0x752   :  { %v1717_v10 = vpop.f32.mrf.mxu1 }
 0x753   :  { %v1688_v33 = vpop.f32.mrf.mxu2 }
 0x754   :  { %v1689_v19 = vadd.f32 %v1688_v33, %v1663_v43 }
 0x756   :  { %v1740_v9 = vpop.f32.mrf.mxu3  ;;  %v1715_v41 = vadd.f32 %v1714_v22, %v1689_v19  ;;  %v6568_v19 = vld [vmem:[#allocation42_spill] sm:$0xff] }
 0x758   :  { %v1741_v56 = vadd.f32 %v1740_v9, %v1715_v41 }
 0x75a   :  { %v1720_v57 = vpop.f32.mrf.mxu1  ;;  %v1767_v43 = vadd.f32 %v1766_v63, %v1741_v56 }
 0x75b   :  { %v1772_v46 = vpop.f32.mrf.mxu0 }
 0x75c   :  { %v1691_v58 = vpop.f32.mrf.mxu2 }
 0x75d   :  { %v1692_v4 = vadd.f32 %v1691_v58, %v1666_v11  ;;  %v6570_v58 = vld [vmem:[#allocation44_spill] sm:$0xff] }
 0x75f   :  { %v1743_v32 = vpop.f32.mrf.mxu3  ;;  %v1718_v31 = vadd.f32 %v1717_v10, %v1692_v4  ;;  %v6572_v10 = vld [vmem:[#allocation46_spill] sm:$0xff] }
 0x761   :  { %v1744_v1 = vadd.f32 %v1743_v32, %v1718_v31 }
 0x763   :  { %v1770_v0 = vadd.f32 %v1769_v24, %v1744_v1  ;;  %v6569_v24 = vld [vmem:[#allocation43_spill] sm:$0xff] }
 0x764   :  { %v1694_v3 = vpop.f32.mrf.mxu2 }
 0x765   :  { %v1695_v27 = vadd.f32 %v1694_v3, %v1669_v60  ;;  %v6566_v3 = vld [vmem:[#allocation40_spill] sm:$0xff] }
 0x767   :  { %v1721_v54 = vadd.f32 %v1720_v57, %v1695_v27  ;;  %v6567_v27 = vld [vmem:[#allocation41_spill] sm:$0xff] }
 0x768   :  { %v1746_v61 = vpop.f32.mrf.mxu3 }
 0x769   :  { %v1747_v42 = vadd.f32 %v1746_v61, %v1721_v54 }
 0x76b   :  { %v1773_v15 = vadd.f32 %v1772_v46, %v1747_v42 }
 0x76d   :  { %3178 = vmatpush.msk.msrb.mxu2 %vm579_vm3, %v1773_v15 }
 0x76f   :  { %1792 = vmatpush.msrb.mxu2 %v1770_v0 }
 0x770   :  { %v1853_v7 = vpop.f32.mrf.mxu3 }
 0x771   :  { %v1854_v11 = vadd.f32 %v6565_v37, %v1853_v7  ;;  %1793 = vmatpush.msrb.mxu2 %v1767_v43 }
 0x772   :  { %3179 = vmatmul.msk.f32.vlgmr.msrb.gmra.mxu2 %vm1109_vm6, %v6566_v3 }
 0x773   :  { %1901 = vrot.lane.b32.xlu2 %v1854_v11, %s3509_s11 }
 0x778   :  { %v1856_v57 = vpop.f32.mrf.mxu3 }
 0x779   :  { %v1857_v61 = vadd.f32 %v6565_v37, %v1856_v57 }
 0x77a   :  { %3180 = vmatmul.msk.f32.gmra.mxu2 %vm1109_vm6, %v6567_v27 }
 0x77b   :  { %1903 = vrot.lane.b32.xlu1 %v1857_v61, %s3509_s11 }
 0x7cd   :  { %v1902_v27 = vpop.permute.xlu2 %1901 }
 0x7f5   :  { %v1795_v31 = vpop.f32.mrf.mxu2 }
 0x7f6   :  { %v1796_v60 = vadd.f32 %v6568_v19, %v1795_v31 }
 0x7f8   :  { %v1801_v4 = vmax.f32 %v1796_v60, 0.0 }
 0x7fa   :  { %3181 = vmatmul.msk.f32.vlgmr.msra.gmra.mxu1 %vm347_vm2, %v1801_v4 }
 0x7fb   :  { %2123 = vmatpush.msra.mxu1 %v6569_v24 }
 0x7fd   :  { %v1798_v32 = vpop.f32.mrf.mxu2  ;;  %2124 = vmatpush.msra.mxu1 %v6570_v58 }
 0x7fe   :  { %v1799_v40 = vadd.f32 %v6568_v19, %v1798_v32 }
 0x7ff   :  { %2125 = vmatpush.msra.mxu1 %v6571_v28 }
 0x800   :  { %v1802_v63 = vmax.f32 %v1799_v40, 0.0 }
 0x801   :  { %2126 = vmatpush.msra.mxu1 %v6572_v10 }
 0x802   :  { %3182 = vmatmul.msk.f32.gmra.mxu1 %vm347_vm2, %v1802_v63  ;;  %v1904_v63 = vpop.permute.xlu1 %1903 }
 0x877   :  { %v1826_v30 = vpop.f32.mrf.mxu1 }
 0x878   :  { %v1827_v44 = vadd.f32 %v6573_v29, %v1826_v30 }
 0x87a   :  { %v1859_v36 = vadd.f32 %v1854_v11, %v1827_v44 }
 0x87c   :  { %v3185_v22 = vmul.f32 -1.442695, %v1859_v36 }
 0x87e   :  { %3273 = vpow2.f32 %v3185_v22 }
 0x87f   :  { %v1829_v33 = vpop.f32.mrf.mxu1 }
 0x880   :  { %v1830_v9 = vadd.f32 %v6573_v29, %v1829_v33 }
 0x882   :  { %v1860_v18 = vadd.f32 %v1857_v61, %v1830_v9 }
 0x884   :  { %v3274_v5 = vpop.eup %3273  ;;  %v3186_v41 = vmul.f32 -1.442695, %v1860_v18 }
 0x885   :  { %v1867_v54 = vadd.f32 1.0, %v3274_v5 }
 0x886   :  { %3275 = vpow2.f32 %v3186_v41 }
 0x887   :  { %3277 = vrcp.f32 %v1867_v54  ;;  %v1880_v0 = vand.u32 2147483648, %v1867_v54  ;;  %v1878_v37 = vand.u32 2147483647, %v1867_v54  ;;  %vm1874_vm0 = vweird.f32 %v1867_v54 }
 0x889   :  { %v1881_v3 = vor.u32 1.1754944e-38, %v1880_v0  ;;  %vm1879_vm4 = vcmp.eq.f32.partialorder %v1878_v37, 8.507059e+37  ;;  %v6586_v37 = vld [vmem:[#allocation62_spill] sm:$0xff] }
 0x88c   :  { %v3276_v1 = vpop.eup %3275 }
 0x88d   :  { %v3278_v42 = vpop.eup %3277  ;;  %v1868_v46 = vadd.f32 1.0, %v3276_v1 }
 0x88e   :  { %v1870_v56 = vmul.f32 %v3278_v42, %v1867_v54  ;;  %vm1875_vm15 = vweird.f32 %v3278_v42 }
 0x88f   :  { %3279 = vrcp.f32 %v1868_v46  ;;  %vm1876_vm1 = vmor %vm1874_vm0, %vm1875_vm15  ;;  %v1895_v4 = vand.u32 2147483648, %v1868_v46  ;;  %v1893_v32 = vand.u32 2147483647, %v1868_v46  ;;  %vm1889_vm8 = vweird.f32 %v1868_v46 }
 0x890   :  { %v1871_v15 = vsub.f32 1.0, %v1870_v56 }
 0x891   :  { %v1896_v40 = vor.u32 1.1754944e-38, %v1895_v4  ;;  %vm1894_vm10 = vcmp.eq.f32.partialorder %v1893_v32, 8.507059e+37  ;;  %v6595_v4 = vld [vmem:[#allocation68_spill] sm:$0xff]  ;;  %v6597_v32 = vld [vmem:[#allocation71_spill] sm:$0xff] }
 0x892   :  { %v1872_v7 = vmul.f32 %v3278_v42, %v1871_v15 }
 0x894   :  { %v1873_v11 = vadd.f32 %v3278_v42, %v1872_v7 }
 0x895   :  { %v3280_v43 = vpop.eup %3279 }
 0x896   :  { %v1877_v57 = vsel %vm1876_vm1, %v3278_v42, %v1873_v11  ;;  %v1885_v61 = vmul.f32 %v3280_v43, %v1868_v46  ;;  %vm1890_vm7 = vweird.f32 %v3280_v43  ;;  %v6587_v11 = vld [vmem:[#allocation60_spill] sm:$0xff] }
 0x897   :  { %v1882_v31 = vsel %vm1879_vm4, %v1881_v3, %v1877_v57  ;;  %vm1891_vm9 = vmor %vm1889_vm8, %vm1890_vm7  ;;  %v6589_v3 = vld [vmem:[#allocation63_spill] sm:$0xff]  ;;  %v6590_v57 = vld [vmem:[#allocation66_spill] sm:$0xff] }
 0x898   :  { %v1907_v19 = vmul.f32 %v1902_v27, %v1882_v31  ;;  %v1886_v60 = vsub.f32 1.0, %v1885_v61  ;;  %v6591_v61 = vld [vmem:[#allocation64_spill] sm:$0xff]  ;;  %v6592_v27 = vld [vmem:[#allocation69_spill] sm:$0xff] }
 0x89a   :  { %1911 = vrot.lane.b32.xlu1 %v1907_v19, %s3509_s11  ;;  %v1887_v24 = vmul.f32 %v3280_v43, %v1886_v60  ;;  %v6594_v60 = vld [vmem:[#allocation70_spill] sm:$0xff] }
 0x89c   :  { %v1888_v58 = vadd.f32 %v3280_v43, %v1887_v24  ;;  %v6596_v24 = vld [vmem:[#allocation73_spill] sm:$0xff] }
 0x89e   :  { %v1892_v28 = vsel %vm1891_vm9, %v3280_v43, %v1888_v58  ;;  %v6588_v43 = vld [vmem:[#allocation65_spill] sm:$0xff]  ;;  %v6598_v58 = vld [vmem:[#allocation74_spill] sm:$0xff] }
 0x89f   :  { %v1897_v10 = vsel %vm1894_vm10, %v1896_v40, %v1892_v28  ;;  %v6599_v40 = vld [vmem:[#allocation72_spill] sm:$0xff]  ;;  %v6600_v28 = vld [vmem:[#allocation77_spill] sm:$0xff] }
 0x8a0   :  { %v1908_v30 = vmul.f32 %v1904_v63, %v1897_v10  ;;  %v1922_v41 = vsub.f32 1.0, %v1897_v10  ;;  %v1934_v1 = vmul.f32 %v1897_v10, %v4811_v53  ;;  %v6601_v63 = vld [vmem:[#allocation75_spill] sm:$0xff]  ;;  %v6602_v10 = vld [vmem:[#allocation78_spill] sm:$0xff] }
 0x8a2   :  { %1913 = vrot.lane.b32.xlu0 %v1908_v30, %s3509_s11  ;;  %v6603_v30 = vld [vmem:[#allocation76_spill] sm:$0xff] }
 0x90c   :  { %v1912_v29 = vpop.permute.xlu1 %1911 }
 0x90d   :  { %v1917_v36 = vadd.f32 %v1912_v29, %v1827_v44  ;;  %v1921_v44 = vsub.f32 1.0, %v1882_v31  ;;  %v6604_v29 = vld [vmem:[#allocation79_spill] sm:$0xff] }
 0x90f   :  { %3281 = vtanh.f32 %v1917_v36  ;;  %v6605_v36 = vld [vmem:[#allocation81_spill] sm:$0xff] }
 0x914   :  { %v1914_v22 = vpop.permute.xlu0 %1913 }
 0x915   :  { %v3282_v33 = vpop.eup %3281  ;;  %v1918_v18 = vadd.f32 %v1914_v22, %v1830_v9  ;;  %v1933_v9 = vmul.f32 %v1882_v31, %v4815_v51  ;;  %v6593_v31 = vld [vmem:[#allocation67_spill] sm:$0xff]  ;;  %v6606_v22 = vld [vmem:[#allocation80_spill] sm:$0xff] }
 0x916   :  { %1925 = vrot.lane.b32.xlu0 %v3282_v33, %s3511_s26  ;;  %v6607_v33 = vld [vmem:[#allocation84_spill] sm:$0xff] }
 0x917   :  { %3283 = vtanh.f32 %v1918_v18  ;;  %v6608_v18 = vld [vmem:[#allocation82_spill] sm:$0xff] }
 0x91d   :  { %v3284_v5 = vpop.eup %3283 }
 0x91e   :  { %1927 = vrot.lane.b32.xlu2 %v3284_v5, %s3511_s26  ;;  %v6609_v5 = vld [vmem:[#allocation85_spill] sm:$0xff] }
 0x978   :  { %v1928_v54 = vpop.permute.xlu2 %1927 }
 0x979   :  { %v1932_v42 = vmul.f32 %v1928_v54, %v1922_v41  ;;  %v6611_v41 = vld [vmem:[#allocation88_spill] sm:$0xff]  ;;  %v6612_v54 = vld [vmem:[#allocation86_spill] sm:$0xff] }
 0x97b   :  { %v5669_v46 = vadd.f32 %v1934_v1, %v1932_v42  ;;  %v6613_v1 = vld [vmem:[#allocation89_spill] sm:$0xff]  ;;  %v6614_v42 = vld [vmem:[#allocation87_spill] sm:$0xff] }
 0x97d   :  { %1941 = vrot.lane.b32.xlu1 %v5669_v46, %s3511_s26 }
 0x988   :  { %v1926_v56 = vpop.permute.xlu0 %1925 }
 0x989   :  { %v1931_v15 = vmul.f32 %v1926_v56, %v1921_v44  ;;  %v6615_v44 = vld [vmem:[#allocation90_spill] sm:$0xff]  ;;  %v6616_v56 = vld [vmem:[#allocation92_spill] sm:$0xff] }
 0x98b   :  { %v5674_v0 = vadd.f32 %v1933_v9, %v1931_v15  ;;  %v6617_v9 = vld [vmem:[#allocation91_spill] sm:$0xff] }
 0x98c   :  { %v6618_v15 = vld [vmem:[#allocation95_spill] sm:$0xff] }
 0x98d   :  { %1939 = vrot.lane.b32.xlu2 %v5674_v0, %s3511_s26 }
 0x9e7   :  { %v5682_v53 = vpop.permute.xlu2 %1939 }
 0x9ef   :  { %v5678_v7 = vpop.permute.xlu1 %1941 }
 0x9f0   :  { %3187 = vmatpush.msk.msra.mxu2 %vm579_vm3, %v5678_v7 }
 0x9f2   :  { %1961 = vmatpush.msra.mxu2 %v5682_v53 }
 0x9f3   :  { %3188 = vmatmul.msk.f32.vlgmr.msra.gmra.mxu2 %vm618_vm5, %v4829_v47  ;;  %v6574_v47 = vld [vmem:[#allocation50_spill] sm:$0xff] }
 0x9f4   :  { %2071 = vmatpush.msrb.mxu2 %v4836_v16  ;;  %v6575_v16 = vld [vmem:[#allocation49_spill] sm:$0xff] }
 0x9f6   :  { %2072 = vmatpush.msrb.mxu2 %v4842_v59  ;;  %v6576_v59 = vld [vmem:[#allocation53_spill] sm:$0xff] }
 0x9f8   :  { %2073 = vmatpush.msrb.mxu2 %v4848_v13  ;;  %v6577_v13 = vld [vmem:[#allocation51_spill] sm:$0xff] }
 0x9fa   :  { %2074 = vmatpush.msrb.mxu2 %v4854_v21  ;;  %v6578_v21 = vld [vmem:[#allocation54_spill] sm:$0xff] }
 0x9fb   :  { %3189 = vmatmul.msk.f32.gmra.mxu2 %vm618_vm5, %v4860_v50  ;;  %v6579_v50 = vld [vmem:[#allocation52_spill] sm:$0xff] }
 0x9fc   :  { %2175 = vmatpush.msra.mxu2 %v4867_v55  ;;  %v6580_v55 = vld [vmem:[#allocation57_spill] sm:$0xff] }
 0x9fe   :  { %2176 = vmatpush.msra.mxu2 %v4873_v23  ;;  %v6581_v23 = vld [vmem:[#allocation55_spill] sm:$0xff] }
 0xa00   :  { %2177 = vmatpush.msra.mxu2 %v4879_v20 }
 0xa02   :  { %2178 = vmatpush.msra.mxu2 %v4885_v49  ;;  %v6582_v49 = vld [vmem:[#allocation58_spill] sm:$0xff] }
 0xa03   :  { %3190 = vmatmul.msk.f32.gmra.mxu2 %vm618_vm5, %v4891_v25  ;;  %v6583_v25 = vld [vmem:[#allocation56_spill] sm:$0xff] }
 0xa76   :  { %v1963_v51 = vpop.f32.mrf.mxu2 }
 0xa77   :  { %3191 = vmatmul.msk.f32.vlgmr.msra.gmra.mxu0 %vm347_vm2, %v1963_v51  ;;  %3194 = vmatmul.msk.f32.vlgmr.msrb.gmra.mxu1 %vm347_vm2, %v1963_v51 }
 0xa78   :  { %3197 = vmatmul.msk.f32.vlgmr.msrb.gmra.mxu3 %vm347_vm2, %v1963_v51  ;;  %3200 = vmatmul.msk.f32.vlgmr.msrb.gmra.mxu2 %vm347_vm2, %v1963_v51 }
 0xa79   :  { %2213 = vmatpush.msra.mxu0 %v4920_v26  ;;  %2239 = vmatpush.msrb.mxu1 %v4908_v52  ;;  %v6584_v52 = vld [vmem:[#allocation61_spill] sm:$0xff]  ;;  %v6585_v26 = vld [vmem:[#allocation59_spill] sm:$0xff] }
 0xa7a   :  { %2265 = vmatpush.msrb.mxu3 %v6574_v47  ;;  %2291 = vmatpush.msrb.mxu2 %v6575_v16  ;;  %v6620_v47 = vld [vmem:[#allocation96_spill] sm:$0xff]  ;;  %v6622_v16 = vld [vmem:[#allocation99_spill] sm:$0xff] }
 0xa7b   :  { %2214 = vmatpush.msra.mxu0 %v6576_v59  ;;  %2240 = vmatpush.msrb.mxu1 %v6577_v13  ;;  %v6623_v59 = vld [vmem:[#allocation97_spill] sm:$0xff]  ;;  %v6624_v13 = vld [vmem:[#allocation100_spill] sm:$0xff] }
 0xa7c   :  { %2266 = vmatpush.msrb.mxu3 %v6578_v21  ;;  %2292 = vmatpush.msrb.mxu2 %v6579_v50  ;;  %v6625_v21 = vld [vmem:[#allocation98_spill] sm:$0xff]  ;;  %v6626_v50 = vld [vmem:[#allocation101_spill] sm:$0xff] }
 0xa7d   :  { %2215 = vmatpush.msra.mxu0 %v6580_v55  ;;  %2241 = vmatpush.msrb.mxu1 %v6581_v23  ;;  %v6627_v55 = vld [vmem:[#allocation103_spill] sm:$0xff]  ;;  %v6628_v23 = vld [vmem:[#allocation102_spill] sm:$0xff] }
 0xa7e   :  { %v1966_v20 = vpop.f32.mrf.mxu2  ;;  %2267 = vmatpush.msrb.mxu3 %v6582_v49  ;;  %2293 = vmatpush.msrb.mxu2 %v6583_v25  ;;  %v6630_v49 = vld [vmem:[#allocation104_spill] sm:$0xff] }
 0xa7f   :  { %3192 = vmatmul.msk.f32.gmra.mxu0 %vm347_vm2, %v1966_v20  ;;  %3195 = vmatmul.msk.f32.gmra.mxu1 %vm347_vm2, %v1966_v20  ;;  %v6631_v25 = vld [vmem:[#allocation112_spill] sm:$0xff] }
 0xa80   :  { %3198 = vmatmul.msk.f32.gmra.mxu3 %vm347_vm2, %v1966_v20  ;;  %3201 = vmatmul.msk.f32.gmra.mxu2 %vm347_vm2, %v1966_v20 }
 0xa81   :  { %2216 = vmatpush.msra.mxu0 %v6584_v52  ;;  %2242 = vmatpush.msrb.mxu1 %v6585_v26  ;;  %v6633_v52 = vld [vmem:[#allocation109_spill] sm:$0xff] }
 0xa82   :  { %2268 = vmatpush.msrb.mxu3 %v6586_v37  ;;  %2294 = vmatpush.msrb.mxu2 %v6587_v11  ;;  %v6634_v26 = vld [vmem:[#allocation105_spill] sm:$0xff]  ;;  %v6635_v37 = vld [vmem:[#allocation116_spill] sm:$0xff]  ;;  %v6636_v11 = vld [vmem:[#allocation110_spill] sm:$0xff] }
 0xa83   :  { %2217 = vmatpush.msra.mxu0 %v6588_v43  ;;  %2243 = vmatpush.msrb.mxu1 %v6589_v3  ;;  %v6637_v43 = vld [vmem:[#allocation113_spill] sm:$0xff]  ;;  %v6638_v3 = vld [vmem:[#allocation107_spill] sm:$0xff] }
 0xa84   :  { %2269 = vmatpush.msrb.mxu3 %v6590_v57  ;;  %2295 = vmatpush.msrb.mxu2 %v6591_v61  ;;  %v6639_v57 = vld [vmem:[#allocation114_spill] sm:$0xff]  ;;  %v6640_v61 = vld [vmem:[#allocation117_spill] sm:$0xff] }
 0xa85   :  { %2218 = vmatpush.msra.mxu0 %v6592_v27  ;;  %2244 = vmatpush.msrb.mxu1 %v6593_v31  ;;  %v6641_v27 = vld [vmem:[#allocation111_spill] sm:$0xff]  ;;  %v6642_v31 = vld [vmem:[#allocation118_spill] sm:$0xff] }
 0xa86   :  { %v1969_v19 = vpop.f32.mrf.mxu2  ;;  %2270 = vmatpush.msrb.mxu3 %v6594_v60  ;;  %2296 = vmatpush.msrb.mxu2 %v6595_v4  ;;  %v6644_v60 = vld [vmem:[#allocation115_spill] sm:$0xff]  ;;  %v6645_v4 = vld [vmem:[#allocation121_spill] sm:$0xff] }
 0xa87   :  { %3193 = vmatmul.msk.f32.gmra.mxu0 %vm347_vm2, %v1969_v19  ;;  %3196 = vmatmul.msk.f32.gmra.mxu1 %vm347_vm2, %v1969_v19 }
 0xa88   :  { %3199 = vmatmul.msk.f32.gmra.mxu3 %vm347_vm2, %v1969_v19  ;;  %3202 = vmatmul.msk.f32.gmra.mxu2 %vm347_vm2, %v1969_v19 }
 0xa89   :  { %2219 = vmatpush.msra.mxu0 %v6596_v24  ;;  %2245 = vmatpush.msrb.mxu1 %v6597_v32  ;;  %v6646_v24 = vld [vmem:[#allocation122_spill] sm:$0xff]  ;;  %v6648_v32 = vld [vmem:[#allocation123_spill] sm:$0xff] }
 0xa8a   :  { %2271 = vmatpush.msrb.mxu3 %v6598_v58  ;;  %2297 = vmatpush.msrb.mxu2 %v6599_v40  ;;  %v6649_v58 = vld [vmem:[#allocation124_spill] sm:$0xff]  ;;  %v6651_v40 = vld [vmem:[#allocation126_spill] sm:$0xff] }
 0xa8b   :  { %2220 = vmatpush.msra.mxu0 %v6600_v28  ;;  %2246 = vmatpush.msrb.mxu1 %v6601_v63  ;;  %v3467_v28 = vld [vmem:[%s6210_s6 + $0x3d0] sm:$0xff]  ;;  %v6652_v63 = vld [vmem:[#allocation127_spill] sm:$0xff] }
 0xa8c   :  { %2272 = vmatpush.msrb.mxu3 %v6602_v10  ;;  %2298 = vmatpush.msrb.mxu2 %v6603_v30  ;;  %v6653_v10 = vld [vmem:[#allocation128_spill] sm:$0xff]  ;;  %v3470_v30 = vld [vmem:[%s6210_s6 + $0x238] sm:$0xff] }
 0xa8d   :  { %2221 = vmatpush.msra.mxu0 %v5132_v6  ;;  %2247 = vmatpush.msrb.mxu1 %v6604_v29  ;;  %v6610_v6 = vld [vmem:[#allocation83_spill] sm:$0xff]  ;;  %v6654_v29 = vld [vmem:[#allocation129_spill] sm:$0xff] }
 0xa8e   :  { %2273 = vmatpush.msrb.mxu3 %v6605_v36  ;;  %2299 = vmatpush.msrb.mxu2 %v6606_v22  ;;  %v6655_v36 = vld [vmem:[#allocation130_spill] sm:$0xff] }
 0xa8f   :  { %3203 = vmatmul.msk.f32.vlgmr.msrb.gmra.mxu0 %vm347_vm2, %v1963_v51  ;;  %3206 = vmatmul.msk.f32.vlgmr.msra.gmra.mxu1 %vm347_vm2, %v1963_v51  ;;  %v3471_v22 = vld [vmem:[%s6210_s6 + $0x3c0] sm:$0xff] }
 0xa90   :  { %3209 = vmatmul.msk.f32.vlgmr.msra.gmra.mxu3 %vm347_vm2, %v1963_v51  ;;  %3212 = vmatmul.msk.f32.vlgmr.msra.gmra.mxu2 %vm347_vm2, %v1963_v51  ;;  %v6619_v51 = vld [vmem:[#allocation93_spill] sm:$0xff] }
 0xa91   :  { %2222 = vmatpush.msra.mxu0 %v6607_v33  ;;  %2248 = vmatpush.msrb.mxu1 %v6608_v18  ;;  %v3472_v33 = vld [vmem:[%s6210_s6 + $0x230] sm:$0xff]  ;;  %v6656_v18 = vld [vmem:[#allocation131_spill] sm:$0xff] }
 0xa92   :  { %2274 = vmatpush.msrb.mxu3 %v6609_v5  ;;  %2300 = vmatpush.msrb.mxu2 %v6610_v6  ;;  %v6657_v5 = vld [vmem:[#allocation132_spill] sm:$0xff]  ;;  %v3473_v6 = vld [vmem:[%s6210_s6 + $0x3b8] sm:$0xff] }
 0xa93   :  { %2223 = vmatpush.msra.mxu0 %v6611_v41  ;;  %2249 = vmatpush.msrb.mxu1 %v6612_v54  ;;  %v3474_v41 = vld [vmem:[%s6210_s6 + $0x228] sm:$0xff]  ;;  %v6658_v54 = vld [vmem:[#allocation133_spill] sm:$0xff] }
 0xa94   :  { %2275 = vmatpush.msrb.mxu3 %v6613_v1  ;;  %2301 = vmatpush.msrb.mxu2 %v6614_v42  ;;  %v6659_v1 = vld [vmem:[#allocation134_spill] sm:$0xff]  ;;  %v3475_v42 = vld [vmem:[%s6210_s6 + $0x3b0] sm:$0xff] }
 0xa95   :  { %2224 = vmatpush.msra.mxu0 %v5212_v17  ;;  %2250 = vmatpush.msrb.mxu1 %v6615_v44  ;;  %v6621_v17 = vld [vmem:[#allocation94_spill] sm:$0xff] }
 0xa96   :  { %2276 = vmatpush.msrb.mxu3 %v6616_v56  ;;  %2302 = vmatpush.msrb.mxu2 %v6617_v9  ;;  %v3476_v44 = vld [vmem:[%s6210_s6 + $0x220] sm:$0xff]  ;;  %v6660_v9 = vld [vmem:[#allocation5_spill] sm:$0xff] }
 0xa97   :  { %3204 = vmatmul.msk.f32.gmra.mxu0 %vm347_vm2, %v1966_v20  ;;  %3207 = vmatmul.msk.f32.gmra.mxu1 %vm347_vm2, %v1966_v20  ;;  %v3477_v56 = vld [vmem:[%s6210_s6 + $0x2a0] sm:$0xff] }
 0xa98   :  { %3210 = vmatmul.msk.f32.gmra.mxu3 %vm347_vm2, %v1966_v20  ;;  %3213 = vmatmul.msk.f32.gmra.mxu2 %vm347_vm2, %v1966_v20  ;;  %v6629_v20 = vld [vmem:[#allocation108_spill] sm:$0xff] }
 0xa99   :  { %2225 = vmatpush.msra.mxu0 %v6618_v15  ;;  %2251 = vmatpush.msrb.mxu1 %v6619_v51  ;;  %v3478_v15 = vld [vmem:[%s6210_s6 + $0x3a8] sm:$0xff]  ;;  %v3479_v51 = vld [vmem:[%s6210_s6 + $0x218] sm:$0xff] }
 0xa9a   :  { %2277 = vmatpush.msrb.mxu3 %v6620_v47  ;;  %2303 = vmatpush.msrb.mxu2 %v6621_v17  ;;  %v3480_v47 = vld [vmem:[%s6210_s6 + $0x298] sm:$0xff]  ;;  %v6661_v17 = vld [vmem:[#allocation3_spill] sm:$0xff] }
 0xa9b   :  { %2226 = vmatpush.msra.mxu0 %v6622_v16  ;;  %2252 = vmatpush.msrb.mxu1 %v6623_v59  ;;  %v3481_v16 = vld [vmem:[%s6210_s6 + $0x3a0] sm:$0xff]  ;;  %v3482_v59 = vld [vmem:[%s6210_s6 + $0x210] sm:$0xff] }
 0xa9c   :  { %2278 = vmatpush.msrb.mxu3 %v6624_v13  ;;  %2304 = vmatpush.msrb.mxu2 %v6625_v21  ;;  %v3483_v13 = vld [vmem:[%s6210_s6 + $0x290] sm:$0xff]  ;;  %v3484_v21 = vld [vmem:[%s6210_s6 + $0x318] sm:$0xff] }
 0xa9d   :  { %2227 = vmatpush.msra.mxu0 %v5292_v62  ;;  %2253 = vmatpush.msrb.mxu1 %v6626_v50  ;;  %v6632_v62 = vld [vmem:[#allocation106_spill] sm:$0xff] }
 0xa9e   :  { %2279 = vmatpush.msrb.mxu3 %v6627_v55  ;;  %2305 = vmatpush.msrb.mxu2 %v6628_v23  ;;  %v3485_v50 = vld [vmem:[%s6210_s6 + $0x398] sm:$0xff]  ;;  %v3486_v55 = vld [vmem:[%s6210_s6 + $0x208] sm:$0xff] }
 0xa9f   :  { %3205 = vmatmul.msk.f32.gmra.mxu0 %vm347_vm2, %v1969_v19  ;;  %3208 = vmatmul.msk.f32.gmra.mxu1 %vm347_vm2, %v1969_v19  ;;  %v3487_v23 = vld [vmem:[%s6210_s6 + $0x288] sm:$0xff] }
 0xaa0   :  { %3211 = vmatmul.msk.f32.gmra.mxu3 %vm347_vm2, %v1969_v19  ;;  %3214 = vmatmul.msk.f32.gmra.mxu2 %vm347_vm2, %v1969_v19  ;;  %v6643_v19 = vld [vmem:[#allocation120_spill] sm:$0xff] }
 0xaa1   :  { %2228 = vmatpush.msra.mxu0 %v6629_v20  ;;  %2254 = vmatpush.msrb.mxu1 %v6630_v49  ;;  %v3488_v20 = vld [vmem:[%s6210_s6 + $0x310] sm:$0xff] }
 0xaa2   :  { %2280 = vmatpush.msrb.mxu3 %v6633_v52  ;;  %2306 = vmatpush.msrb.mxu2 %v6634_v26  ;;  %v3489_v49 = vld [vmem:[%s6210_s6 + $0x390] sm:$0xff]  ;;  %v3492_v52 = vld [vmem:[%s6210_s6 + $0x308] sm:$0xff] }
 0xaa3   :  { %2317 = vmatpush.msrb.mxu0 %v6631_v25  ;;  %2343 = vmatpush.msra.mxu1 %v6632_v62  ;;  %v3490_v25 = vld [vmem:[%s6210_s6 + $0x200] sm:$0xff]  ;;  %v3493_v26 = vld [vmem:[%s6210_s6 + $0x388] sm:$0xff] }
 0xaa4   :  { %2369 = vmatpush.msra.mxu3 %v6637_v43  ;;  %2395 = vmatpush.msra.mxu2 %v6638_v3  ;;  %v3491_v62 = vld [vmem:[%s6210_s6 + $0x280] sm:$0xff] }
 0xaa5   :  { %2318 = vmatpush.msrb.mxu0 %v6635_v37  ;;  %2344 = vmatpush.msra.mxu1 %v6636_v11  ;;  %v3494_v37 = vld [vmem:[%s6210_s6 + $0x300] sm:$0xff] }
 0xaa6   :  { %2370 = vmatpush.msra.mxu3 %v6640_v61  ;;  %2396 = vmatpush.msra.mxu2 %v6641_v27  ;;  %v3495_v11 = vld [vmem:[%s6210_s6 + $0x380] sm:$0xff] }
 0xaa7   :  { %2319 = vmatpush.msrb.mxu0 %v5408_v34  ;;  %2345 = vmatpush.msra.mxu1 %v6639_v57  ;;  %v6647_v34 = vld [vmem:[#allocation119_spill] sm:$0xff] }
 0xaa8   :  { %2371 = vmatpush.msra.mxu3 %v6643_v19  ;;  %2397 = vmatpush.msra.mxu2 %v6644_v60 }
 0xaa9   :  { %2320 = vmatpush.msrb.mxu0 %v5427_v38  ;;  %2346 = vmatpush.msra.mxu1 %v6642_v31  ;;  %v3466_v38 = vld [vmem:[%s6210_s6 + $0x3d8] sm:$0xff] }
 0xaaa   :  { %2372 = vmatpush.msra.mxu3 %v6646_v24  ;;  %2398 = vmatpush.msra.mxu2 %v6647_v34 }
 0xaab   :  { %2321 = vmatpush.msrb.mxu0 %v5446_v8  ;;  %2347 = vmatpush.msra.mxu1 %v6645_v4  ;;  %v6650_v8 = vld [vmem:[#allocation125_spill] sm:$0xff] }
 0xaac   :  { %2373 = vmatpush.msra.mxu3 %v6649_v58  ;;  %2399 = vmatpush.msra.mxu2 %v3466_v38 }
 0xaad   :  { %2322 = vmatpush.msrb.mxu0 %v5465_v12  ;;  %2348 = vmatpush.msra.mxu1 %v6648_v32  ;;  %v3468_v12 = vld [vmem:[%s6210_s6 + $0x240] sm:$0xff]  ;;  %v6662_v32 = vld [vmem:[#allocation21_spill] sm:$0xff] }
 0xaae   :  { %2374 = vmatpush.msra.mxu3 %v6651_v40  ;;  %2400 = vmatpush.msra.mxu2 %v3467_v28  ;;  %v6663_v40 = vld [vmem:[#allocation22_spill] sm:$0xff] }
 0xaaf   :  { %2323 = vmatpush.msrb.mxu0 %v5484_v35  ;;  %2349 = vmatpush.msra.mxu1 %v6650_v8  ;;  %v3469_v35 = vld [vmem:[%s6210_s6 + $0x3c8] sm:$0xff] }
 0xab0   :  { %2375 = vmatpush.msra.mxu3 %v6653_v10  ;;  %2401 = vmatpush.msra.mxu2 %v3469_v35 }
 0xab1   :  { %2324 = vmatpush.msrb.mxu0 %v3468_v12  ;;  %2350 = vmatpush.msra.mxu1 %v6652_v63  ;;  %v6664_v12 = vld [vmem:[#allocation23_spill] sm:$0xff] }
 0xab2   :  { %2376 = vmatpush.msra.mxu3 %v6655_v36  ;;  %2402 = vmatpush.msra.mxu2 %v3471_v22  ;;  %v6666_v22 = vld [vmem:[#allocation24_spill] sm:$0xff] }
 0xab3   :  { %2325 = vmatpush.msrb.mxu0 %v3470_v30  ;;  %2351 = vmatpush.msra.mxu1 %v6654_v29  ;;  %v3498_v30 = vld [vmem:[%s6215_s15 + $0x8] sm:$0xff]  ;;  %v6665_v29 = vld [vmem:[#allocation26_spill] sm:$0xff] }
 0xab4   :  { %2377 = vmatpush.msra.mxu3 %v6657_v5  ;;  %2403 = vmatpush.msra.mxu2 %v3473_v6  ;;  %v5956_v5 = vld [vmem:[%s6218_s18 + $0x38] sm:$0xff]  ;;  %v3499_v6 = vld [vmem:[%s6215_s15] sm:$0xff] }
 0xab5   :  { %2326 = vmatpush.msrb.mxu0 %v3472_v33  ;;  %2352 = vmatpush.msra.mxu1 %v6656_v18  ;;  %v5951_v18 = vld [vmem:[%s6218_s18 + $0x40] sm:$0xff] }
 0xab6   :  { %2378 = vmatpush.msra.mxu3 %v6659_v1  ;;  %2404 = vmatpush.msra.mxu2 %v3475_v42  ;;  %v6667_v42 = vld [vmem:[#allocation25_spill] sm:$0xff] }
 0xab7   :  { %2327 = vmatpush.msrb.mxu0 %v3474_v41  ;;  %2353 = vmatpush.msra.mxu1 %v6658_v54  ;;  %v5965_v41 = vld [vmem:[%s6218_s18 + $0x30] sm:$0xff] }
 0xab8   :  { %2379 = vmatpush.msra.mxu3 %v6660_v9  ;;  %2405 = vmatpush.msra.mxu2 %v3478_v15 }
 0xab9   :  { %2328 = vmatpush.msrb.mxu0 %v3476_v44  ;;  %2354 = vmatpush.msra.mxu1 %v3477_v56  ;;  %v6668_v56 = vld [vmem:[#allocation27_spill] sm:$0xff] }
 0xaba   :  { %2380 = vmatpush.msra.mxu3 %v6661_v17  ;;  %2406 = vmatpush.msra.mxu2 %v3481_v16  ;;  %v6670_v16 = vld [vmem:[#allocation28_spill] sm:$0xff] }
 0xabb   :  { %2329 = vmatpush.msrb.mxu0 %v3479_v51  ;;  %2355 = vmatpush.msra.mxu1 %v3480_v47  ;;  %v6669_v47 = vld [vmem:[#allocation30_spill] sm:$0xff] }
 0xabc   :  { %2381 = vmatpush.msra.mxu3 %v3484_v21  ;;  %2407 = vmatpush.msra.mxu2 %v3485_v50  ;;  %v2587_v21 = vld [vmem:[%s6218_s18 + $0x20] sm:$0xff]  ;;  %v2586_v50 = vld [vmem:[%s6218_s18 + $0x18] sm:$0xff] }
 0xabd   :  { %2330 = vmatpush.msrb.mxu0 %v3482_v59  ;;  %2356 = vmatpush.msra.mxu1 %v3483_v13  ;;  %v2588_v13 = vld [vmem:[%s6218_s18 + $0x28] sm:$0xff] }
 0xabe   :  { %2382 = vmatpush.msra.mxu3 %v3488_v20  ;;  %2408 = vmatpush.msra.mxu2 %v3489_v49  ;;  %v6671_v20 = vld [vmem:[#allocation29_spill] sm:$0xff] }
 0xabf   :  { %2331 = vmatpush.msrb.mxu0 %v3486_v55  ;;  %2357 = vmatpush.msra.mxu1 %v3487_v23 }
 0xac0   :  { %2383 = vmatpush.msra.mxu3 %v3492_v52  ;;  %2409 = vmatpush.msra.mxu2 %v3493_v26 }
 0xac1   :  { %2332 = vmatpush.msrb.mxu0 %v3490_v25  ;;  %2358 = vmatpush.msra.mxu1 %v3491_v62  ;;  %v6672_v25 = vld [vmem:[#allocation31_spill] sm:$0xff] }
 0xac2   :  { %2384 = vmatpush.msra.mxu3 %v3494_v37  ;;  %2410 = vmatpush.msra.mxu2 %v3495_v11  ;;  %v6673_v37 = vld [vmem:[#allocation34_spill] sm:$0xff] }
 0xaf4   :  { %v1998_v43 = vpop.f32.mrf.mxu0  ;;  %v2024_v3 = vpop.f32.mrf.mxu1 }
 0xaf5   :  { %v2189_v57 = vmul.f32 %v1998_v43, %v4531_v2  ;;  %v2190_v61 = vmul.f32 %v2024_v3, %v6551_v48  ;;  %v5920_v2 = vld [vmem:[%s6218_s18 + $0x58] sm:$0xff]  ;;  %v3497_v48 = vld [vmem:[%s6215_s15 + $0x10] sm:$0xff] }
 0xaf6   :  { %v6674_v43 = vld [vmem:[#allocation32_spill] sm:$0xff] }
 0xaf7   :  { %2229 = vmatmul.f32.vlgmr.msra.gmra.mxu0 %v2189_v57  ;;  %2255 = vmatmul.f32.vlgmr.msrb.gmra.mxu1 %v2190_v61  ;;  %v2585_v57 = vld [vmem:[%s6218_s18 + $0x10] sm:$0xff]  ;;  %v2584_v61 = vld [vmem:[%s6218_s18 + $0x8] sm:$0xff] }
 0xafb   :  { %v2050_v27 = vpop.f32.mrf.mxu3  ;;  %v2076_v31 = vpop.f32.mrf.mxu2 }
 0xafc   :  { %v2191_v19 = vmul.f32 %v2050_v27, %v4511_v45  ;;  %v2192_v60 = vmul.f32 %v2076_v31, %v4534_v39  ;;  %v2001_v4 = vpop.f32.mrf.mxu0  ;;  %v2027_v24 = vpop.f32.mrf.mxu1  ;;  %v5925_v45 = vld [vmem:[%s6218_s18 + $0x50] sm:$0xff]  ;;  %v3496_v39 = vld [vmem:[%s6215_s15 + $0x18] sm:$0xff]  ;;  %v2583_v27 = vld [vmem:[%s6218_s18] sm:$0xff] }
 0xafd   :  { %v2197_v34 = vmul.f32 %v2001_v4, %v4548_v14  ;;  %v2198_v58 = vmul.f32 %v2027_v24, %v6662_v32  ;;  %v5934_v14 = vld [vmem:[%s6218_s18 + $0x48] sm:$0xff] }
 0xafe   :  { %2281 = vmatmul.f32.vlgmr.msrb.gmra.mxu3 %v2191_v19  ;;  %2307 = vmatmul.f32.vlgmr.msrb.gmra.mxu2 %v2192_v60  ;;  %v6675_v60 = vld [vmem:[#allocation33_spill] sm:$0xff]  ;;  %v6676_v24 = vld [vmem:[#allocation35_spill] sm:$0xff] }
 0xaff   :  { %2232 = vmatmul.f32.gmra.mxu0 %v2197_v34  ;;  %2258 = vmatmul.f32.gmra.mxu1 %v2198_v58 }
 0xb00   :  { %2494 = vmatpush.msrb.mxu3 %v3496_v39  ;;  %2607 = vmatpush.msrb.mxu2 %v5920_v2  ;;  %v6677_v39 = vld [vmem:[#allocation38_spill] sm:$0xff] }
 0xb02   :  { %2495 = vmatpush.msrb.mxu3 %v3497_v48  ;;  %2608 = vmatpush.msrb.mxu2 %v5925_v45 }
 0xb03   :  { %v2053_v38 = vpop.f32.mrf.mxu3  ;;  %v2079_v8 = vpop.f32.mrf.mxu2 }
 0xb04   :  { %v2199_v28 = vmul.f32 %v2053_v38, %v6663_v40  ;;  %v2200_v63 = vmul.f32 %v2079_v8, %v6664_v12  ;;  %v2004_v10 = vpop.f32.mrf.mxu0  ;;  %v2030_v35 = vpop.f32.mrf.mxu1  ;;  %2496 = vmatpush.msrb.mxu3 %v3498_v30  ;;  %2609 = vmatpush.msrb.mxu2 %v5934_v14  ;;  %v6678_v38 = vld [vmem:[#allocation36_spill] sm:$0xff]  ;;  %v6679_v12 = vld [vmem:[#allocation37_spill] sm:$0xff] }
 0xb05   :  { %v2205_v36 = vmul.f32 %v2004_v10, %v6665_v29  ;;  %v2206_v33 = vmul.f32 %v2030_v35, %v6666_v22  ;;  %v6680_v10 = vld [vmem:[#allocation39_spill] sm:$0xff] }
 0xb06   :  { %2284 = vmatmul.f32.gmra.mxu3 %v2199_v28  ;;  %2310 = vmatmul.f32.gmra.mxu2 %v2200_v63 }
 0xb07   :  { %2235 = vmatmul.f32.gmra.mxu0 %v2205_v36  ;;  %2261 = vmatmul.f32.gmra.mxu1 %v2206_v33 }
 0xb08   :  { %2497 = vmatpush.msrb.mxu3 %v3499_v6  ;;  %2610 = vmatpush.msrb.mxu2 %v5951_v18 }
 0xb0a   :  { %2611 = vmatpush.msrb.mxu2 %v5956_v5 }
 0xb0b   :  { %v2056_v54 = vpop.f32.mrf.mxu3  ;;  %v2082_v1 = vpop.f32.mrf.mxu2 }
 0xb0c   :  { %v2207_v44 = vmul.f32 %v2056_v54, %v6667_v42  ;;  %v2208_v9 = vmul.f32 %v2082_v1, %v6668_v56  ;;  %v2102_v15 = vpop.f32.mrf.mxu0  ;;  %v2128_v51 = vpop.f32.mrf.mxu1  ;;  %2612 = vmatpush.msrb.mxu2 %v5965_v41 }
 0xb0d   :  { %v2193_v17 = vmul.f32 %v2102_v15, %v6669_v47  ;;  %v2194_v59 = vmul.f32 %v2128_v51, %v6670_v16 }
 0xb0e   :  { %2287 = vmatmul.f32.gmra.mxu3 %v2207_v44  ;;  %2313 = vmatmul.f32.gmra.mxu2 %v2208_v9 }
 0xb0f   :  { %2333 = vmatmul.f32.vlgmr.msrb.gmra.mxu0 %v2193_v17  ;;  %2359 = vmatmul.f32.vlgmr.msra.gmra.mxu1 %v2194_v59 }
 0xb10   :  { %2613 = vmatpush.msrb.mxu2 %v2588_v13 }
 0xb12   :  { %2614 = vmatpush.msrb.mxu2 %v2587_v21 }
 0xb13   :  { %v2154_v55 = vpop.f32.mrf.mxu3  ;;  %v2180_v23 = vpop.f32.mrf.mxu2 }
 0xb14   :  { %v2195_v49 = vmul.f32 %v2154_v55, %v6671_v20  ;;  %v2196_v62 = vmul.f32 %v2180_v23, %v6672_v25  ;;  %v2105_v52 = vpop.f32.mrf.mxu0  ;;  %v2131_v26 = vpop.f32.mrf.mxu1  ;;  %2615 = vmatpush.msrb.mxu2 %v2586_v50 }
 0xb15   :  { %v2201_v11 = vmul.f32 %v2105_v52, %v6673_v37  ;;  %v2202_v3 = vmul.f32 %v2131_v26, %v6674_v43 }
 0xb16   :  { %2385 = vmatmul.f32.vlgmr.msra.gmra.mxu3 %v2195_v49  ;;  %2411 = vmatmul.f32.vlgmr.msra.gmra.mxu2 %v2196_v62 }
 0xb17   :  { %2336 = vmatmul.f32.gmra.mxu0 %v2201_v11  ;;  %2362 = vmatmul.f32.gmra.mxu1 %v2202_v3 }
 0xb18   :  { %2616 = vmatpush.msrb.mxu2 %v2585_v57  ;;  %2754 = vmatpush.msra.mxu3 %v5920_v2 }
 0xb1a   :  { %2617 = vmatpush.msrb.mxu2 %v2584_v61  ;;  %2755 = vmatpush.msra.mxu3 %v5925_v45 }
 0xb1b   :  { %v2157_v31 = vpop.f32.mrf.mxu3  ;;  %v2183_v19 = vpop.f32.mrf.mxu2 }
 0xb1c   :  { %v2203_v4 = vmul.f32 %v2157_v31, %v6675_v60  ;;  %v2204_v34 = vmul.f32 %v2183_v19, %v6676_v24  ;;  %v2108_v32 = vpop.f32.mrf.mxu0  ;;  %v2134_v58 = vpop.f32.mrf.mxu1  ;;  %2618 = vmatpush.msrb.mxu2 %v2583_v27  ;;  %2756 = vmatpush.msra.mxu3 %v5934_v14  ;;  %v6022_v19 = vld [vmem:[%s6219_s19] ss:$0 sm:$0xff] }
 0xb1d   :  { %v2209_v48 = vmul.f32 %v2108_v32, %v6677_v39  ;;  %v2210_v8 = vmul.f32 %v2134_v58, %v6678_v38  ;;  %v3501_v39 = vld [vmem:[%s6214_s3] sm:$0xff]  ;;  %v3503_v38 = vld [vmem:[%s6213_s14 + $0x18] sm:$0xff] }
 0xb1e   :  { %2885 = vmatpush.msra.mxu2 %v5920_v2  ;;  %2388 = vmatmul.f32.gmra.mxu3 %v2203_v4  ;;  %v3512_v2 = vmov 0.0  }
 0xb1f   :  { %2414 = vmatmul.f32.gmra.mxu2 %v2204_v34  ;;  %2339 = vmatmul.f32.gmra.mxu0 %v2209_v48  ;;  %v3500_v34 = vld [vmem:[%s6216_s17] ss:$0 sm:$0xff]  ;;  %v3502_v48 = vld [vmem:[%s6214_s3 + $0x8] sm:$0xf] }
 0xb20   :  { %2365 = vmatmul.f32.gmra.mxu1 %v2210_v8  ;;  %2757 = vmatpush.msra.mxu3 %v5951_v18  ;;  %v3504_v8 = vld [vmem:[%s6213_s14 + $0x10] sm:$0xff] }
 0xb21   :  { %2886 = vmatpush.msra.mxu2 %v5925_v45 }
 0xb22   :  { %2758 = vmatpush.msra.mxu3 %v5956_v5 }
 0xb23   :  { %2887 = vmatpush.msra.mxu2 %v5934_v14  ;;  %v2160_v40 = vpop.f32.mrf.mxu3  ;;  %v2186_v28 = vpop.f32.mrf.mxu2 }
 0xb24   :  { %v2211_v63 = vmul.f32 %v2160_v40, %v6679_v12  ;;  %v2212_v35 = vmul.f32 %v2186_v28, %v6680_v10  ;;  %2759 = vmatpush.msra.mxu3 %v5965_v41  ;;  %v3505_v40 = vld [vmem:[%s6213_s14 + $0x8] sm:$0xff]  ;;  %v3506_v10 = vld [vmem:[%s6213_s14] sm:$0xff] }
 0xb25   :  { %2888 = vmatpush.msra.mxu2 %v5951_v18 }
 0xb26   :  { %2391 = vmatmul.f32.gmra.mxu3 %v2211_v63 }
 0xb27   :  { %2417 = vmatmul.f32.gmra.mxu2 %v2212_v35  ;;  %2760 = vmatpush.msra.mxu3 %v2588_v13 }
 0xb28   :  { %2889 = vmatpush.msra.mxu2 %v5956_v5 }
 0xb29   :  { %2761 = vmatpush.msra.mxu3 %v2587_v21 }
 0xb2a   :  { %2890 = vmatpush.msra.mxu2 %v5965_v41 }
 0xb2b   :  { %2762 = vmatpush.msra.mxu3 %v2586_v50 }
 0xb2c   :  { %2891 = vmatpush.msra.mxu2 %v2588_v13 }
 0xb2d   :  { %2763 = vmatpush.msra.mxu3 %v2585_v57 }
 0xb2e   :  { %2892 = vmatpush.msra.mxu2 %v2587_v21  ;;  %3220 = vmatmul.msk.f32.vlgmr.msrb.gmra.mxu3 %vm347_vm2, %v5682_v53 }
 0xb2f   :  { %2619 = vmatmul.f32.vlgmr.msrb.gmra.mxu2 %v3512_v2  ;;  %2764 = vmatpush.msra.mxu3 %v2584_v61 }
 0xb30   :  { %2893 = vmatpush.msra.mxu2 %v2586_v50 }
 0xb31   :  { %2765 = vmatpush.msra.mxu3 %v2583_v27 }
 0xb32   :  { %2894 = vmatpush.msra.mxu2 %v2585_v57 }
 0xb34   :  { %2895 = vmatpush.msra.mxu2 %v2584_v61 }
 0xb36   :  { %2896 = vmatpush.msra.mxu2 %v2583_v27  ;;  %3221 = vmatmul.msk.f32.gmra.mxu3 %vm347_vm2, %v5678_v7 }
 0xb74   :  { %v2230_v45 = vpop.f32.mrf.mxu0  ;;  %v2256_v14 = vpop.f32.mrf.mxu1 }
 0xb75   :  { %v2257_v51 = vadd.f32 %v2256_v14, %v2230_v45 }
 0xb7c   :  { %v2233_v30 = vpop.f32.mrf.mxu0  ;;  %v2259_v29 = vpop.f32.mrf.mxu1 }
 0xb7d   :  { %v2260_v9 = vadd.f32 %v2259_v29, %v2233_v30 }
 0xb81   :  { %v2282_v36 = vpop.f32.mrf.mxu3  ;;  %v2308_v22 = vpop.f32.mrf.mxu2 }
 0xb82   :  { %v2283_v16 = vadd.f32 %v2282_v36, %v2257_v51 }
 0xb84   :  { %v2236_v33 = vpop.f32.mrf.mxu0  ;;  %v2262_v18 = vpop.f32.mrf.mxu1  ;;  %v2309_v23 = vadd.f32 %v2308_v22, %v2283_v16 }
 0xb85   :  { %v2263_v15 = vadd.f32 %v2262_v18, %v2236_v33 }
 0xb89   :  { %v2285_v53 = vpop.f32.mrf.mxu3  ;;  %v2311_v5 = vpop.f32.mrf.mxu2 }
 0xb8a   :  { %v2286_v47 = vadd.f32 %v2285_v53, %v2260_v9 }
 0xb8c   :  { %v2334_v6 = vpop.f32.mrf.mxu0  ;;  %v2360_v1 = vpop.f32.mrf.mxu1  ;;  %v2312_v50 = vadd.f32 %v2311_v5, %v2286_v47 }
 0xb8d   :  { %v2335_v25 = vadd.f32 %v2334_v6, %v2309_v23 }
 0xb8f   :  { %v2361_v43 = vadd.f32 %v2360_v1, %v2335_v25 }
 0xb91   :  { %v2288_v41 = vpop.f32.mrf.mxu3  ;;  %v2314_v54 = vpop.f32.mrf.mxu2 }
 0xb92   :  { %v2289_v17 = vadd.f32 %v2288_v41, %v2263_v15 }
 0xb94   :  { %v2337_v42 = vpop.f32.mrf.mxu0  ;;  %v2363_v7 = vpop.f32.mrf.mxu1  ;;  %v2315_v55 = vadd.f32 %v2314_v54, %v2289_v17 }
 0xb95   :  { %v2338_v20 = vadd.f32 %v2337_v42, %v2312_v50  ;;  %v3507_v42 = vld [vmem:[%s6212_s13] ss:$0 sm:$0xff] }
 0xb97   :  { %v2364_v52 = vadd.f32 %v2363_v7, %v2338_v20 }
 0xb99   :  { %v2386_v44 = vpop.f32.mrf.mxu3  ;;  %v2412_v56 = vpop.f32.mrf.mxu2 }
 0xb9a   :  { %v2387_v61 = vadd.f32 %v2386_v44, %v2361_v43 }
 0xb9c   :  { %v2340_v59 = vpop.f32.mrf.mxu0  ;;  %v2413_v60 = vadd.f32 %v2412_v56, %v2387_v61 }
 0xb9d   :  { %v2341_v49 = vadd.f32 %v2340_v59, %v2315_v55  ;;  %v2366_v62 = vpop.f32.mrf.mxu1 }
 0xb9f   :  { %v2367_v26 = vadd.f32 %v2366_v62, %v2341_v49 }
 0xba1   :  { %v2389_v13 = vpop.f32.mrf.mxu3 }
 0xba2   :  { %v2415_v21 = vpop.f32.mrf.mxu2  ;;  %v2390_v3 = vadd.f32 %v2389_v13, %v2364_v52  ;;  %v3508_v13 = vld [vmem:[%s6217_s16] ss:$0 sm:$0xff] }
 0xba4   :  { %v2416_v31 = vadd.f32 %v2415_v21, %v2390_v3 }
 0xba9   :  { %v2392_v37 = vpop.f32.mrf.mxu3 }
 0xbaa   :  { %v2418_v11 = vpop.f32.mrf.mxu2  ;;  %v2393_v57 = vadd.f32 %v2392_v37, %v2367_v26 }
 0xbac   :  { %v2419_v27 = vadd.f32 %v2418_v11, %v2393_v57 }
 0xbae   :  { %3215 = vmatpush.msk.msra.mxu0 %vm579_vm3, %v2419_v27  ;;  %3246 = vmatpush.msk.msrb.mxu1 %vm579_vm3, %v2419_v27 }
 0xbb0   :  { %2438 = vmatpush.msra.mxu0 %v2416_v31  ;;  %3247 = vmatpush.msrb.mxu1 %v2416_v31 }
 0xbb1   :  { %v2499_v4 = vpop.f32.mrf.mxu3 }
 0xbb2   :  { %v2620_v24 = vpop.f32.mrf.mxu2  ;;  %v6027_v32 = vadd.f32 %v3500_v34, %v2499_v4  ;;  %2439 = vmatpush.msra.mxu0 %v2413_v60  ;;  %3248 = vmatpush.msrb.mxu1 %v2413_v60 }
 0xbb3   :  { %v2621_v58 = vadd.f32 %v6022_v19, %v2620_v24  ;;  %3216 = vmatmul.msk.f32.vlgmr.msra.gmra.mxu0 %vm1109_vm6, %v3501_v39  ;;  %3217 = vmatmul.msk.f32.vlgmr.msrb.gmra.mxu1 %vm1109_vm6, %v3502_v48 }
 0xbb4   :  { %2547 = vrot.lane.b32.xlu1 %v6027_v32, %s3509_s11  ;;  %2467 = vmatpush.msra.mxu1 %v3503_v38 }
 0xbb5   :  { %3285 = vtanh.f32 %v2621_v58  ;;  %v3224_v35 = vmul.f32 -1.442695, %v2621_v58 }
 0xbb6   :  { %2468 = vmatpush.msra.mxu1 %v3504_v8 }
 0xbb7   :  { %3287 = vpow2.f32 %v3224_v35 }
 0xbb8   :  { %2469 = vmatpush.msra.mxu1 %v3505_v40 }
 0xbb9   :  { %v2502_v28 = vpop.f32.mrf.mxu3 }
 0xbba   :  { %v2503_v63 = vadd.f32 %v3500_v34, %v2502_v28  ;;  %2470 = vmatpush.msra.mxu1 %v3506_v10 }
 0xbbb   :  { %v3286_v12 = vpop.eup %3285 }
 0xbbc   :  { %2645 = vrot.lane.b32.xlu2 %v3286_v12, %s3509_s11  ;;  %2549 = vrot.lane.b32.xlu0 %v2503_v63, %s3509_s11 }
 0xbbd   :  { %v3288_v2 = vpop.eup %3287 }
 0xbbe   :  { %v2626_v45 = vadd.f32 1.0, %v3288_v2 }
 0xbc0   :  { %3289 = vrcp.f32 %v2626_v45  ;;  %vm2632_vm6 = vweird.f32 %v2626_v45  ;;  %v2638_v22 = vand.u32 2147483648, %v2626_v45  ;;  %v2636_v18 = vand.u32 2147483647, %v2626_v45 }
 0xbc2   :  { %v2639_v53 = vor.u32 1.1754944e-38, %v2638_v22  ;;  %vm2637_vm13 = vcmp.eq.f32.partialorder %v2636_v18, 8.507059e+37 }
 0xbc6   :  { %v3290_v14 = vpop.eup %3289 }
 0xbc7   :  { %v2628_v30 = vmul.f32 %v3290_v14, %v2626_v45  ;;  %vm2633_vm11 = vweird.f32 %v3290_v14 }
 0xbc8   :  { %vm2634_vm12 = vmor %vm2632_vm6, %vm2633_vm11  ;;  %vm2697_vm6 = vcmask 91136   ;;  %vm2745_vm11 = vcmask 523264  }
 0xbc9   :  { %v2629_v29 = vsub.f32 1.0, %v2628_v30 }
 0xbcb   :  { %v2630_v36 = vmul.f32 %v3290_v14, %v2629_v29 }
 0xbcd   :  { %v2631_v33 = vadd.f32 %v3290_v14, %v2630_v36 }
 0xbcf   :  { %v2635_v5 = vsel %vm2634_vm12, %v3290_v14, %v2631_v33  ;;  %vm2599_vm12 = vcmask 785408  }
 0xbd0   :  { %v6054_v6 = vsel %vm2637_vm13, %v2639_v53, %v2635_v5 }
 0xbd1   :  { %v2643_v51 = vmul.f32 0.0, %v6054_v6 }
 0xc16   :  { %v2646_v41 = vpop.permute.xlu2 %2645 }
 0xc17   :  { %v2648_v54 = vmul.f32 %v2646_v41, %v6054_v6 }
 0xc19   :  { %2650 = vrot.lane.b32.xlu2 %v2648_v54, %s3510_s0 }
 0xc2e   :  { %v2550_v2 = vpop.permute.xlu0 %2549 }
 0xc30   :  { %v2441_v1 = vpop.f32.mrf.mxu0  ;;  %v2444_v56 = vpop.f32.mrf.mxu1 }
 0xc31   :  { %v2442_v44 = vadd.f32 %v3507_v42, %v2441_v1  ;;  %v2445_v15 = vadd.f32 %v3507_v42, %v2444_v56 }
 0xc33   :  { %v2447_v9 = vmax.f32 %v2442_v44, 0.0  ;;  %v2448_v7 = vmax.f32 %v2445_v15, 0.0 }
 0xc35   :  { %3218 = vmatmul.msk.f32.vlgmr.msra.gmra.mxu1 %vm347_vm2, %v2447_v9 }
 0xc3d   :  { %3219 = vmatmul.msk.f32.gmra.mxu1 %vm347_vm2, %v2448_v7 }
 0xc73   :  { %v2651_v47 = vpop.permute.xlu2 %2650 }
 0xc74   :  { %v6064_v17 = vadd.f32 %v2651_v47, %v2643_v51 }
 0xc76   :  { %3291 = vtanh.f32 %v6064_v17 }
 0xc7c   :  { %v3292_v16 = vpop.eup %3291 }
 0xc7d   :  { %2656 = vrot.lane.b32.xlu2 %v3292_v16, %s3509_s11 }
 0xcb2   :  { %v2472_v59 = vpop.f32.mrf.mxu1 }
 0xcb3   :  { %v2473_v21 = vadd.f32 %v3508_v13, %v2472_v59 }
 0xcb5   :  { %v2505_v50 = vadd.f32 %v6027_v32, %v2473_v21  ;;  %v2548_v32 = vpop.permute.xlu1 %2547 }
 0xcb7   :  { %v3222_v55 = vmul.f32 -1.442695, %v2505_v50 }
 0xcb9   :  { %3293 = vpow2.f32 %v3222_v55 }
 0xcba   :  { %v2475_v23 = vpop.f32.mrf.mxu1 }
 0xcbb   :  { %v2476_v20 = vadd.f32 %v3508_v13, %v2475_v23 }
 0xcbd   :  { %v2506_v49 = vadd.f32 %v2503_v63, %v2476_v20 }
 0xcbf   :  { %v3294_v25 = vpop.eup %3293  ;;  %v3223_v62 = vmul.f32 -1.442695, %v2506_v49 }
 0xcc0   :  { %v2513_v52 = vadd.f32 1.0, %v3294_v25 }
 0xcc1   :  { %3295 = vpow2.f32 %v3223_v62 }
 0xcc2   :  { %3297 = vrcp.f32 %v2513_v52  ;;  %v2526_v57 = vand.u32 2147483648, %v2513_v52  ;;  %v2524_v27 = vand.u32 2147483647, %v2513_v52  ;;  %vm2520_vm15 = vweird.f32 %v2513_v52 }
 0xcc4   :  { %v2527_v4 = vor.u32 1.1754944e-38, %v2526_v57  ;;  %vm2525_vm1 = vcmp.eq.f32.partialorder %v2524_v27, 8.507059e+37 }
 0xcc7   :  { %v3296_v26 = vpop.eup %3295 }
 0xcc8   :  { %v3298_v37 = vpop.eup %3297  ;;  %v2514_v11 = vadd.f32 1.0, %v3296_v26 }
 0xcc9   :  { %v2516_v43 = vmul.f32 %v3298_v37, %v2513_v52  ;;  %vm2521_vm14 = vweird.f32 %v3298_v37 }
 0xcca   :  { %3299 = vrcp.f32 %v2514_v11  ;;  %vm2522_vm0 = vmor %vm2520_vm15, %vm2521_vm14  ;;  %v2541_v38 = vand.u32 2147483648, %v2514_v11  ;;  %v2539_v40 = vand.u32 2147483647, %v2514_v11  ;;  %vm2535_vm7 = vweird.f32 %v2514_v11 }
 0xccb   :  { %v2517_v3 = vsub.f32 1.0, %v2516_v43 }
 0xccc   :  { %v2542_v10 = vor.u32 1.1754944e-38, %v2541_v38  ;;  %vm2540_vm9 = vcmp.eq.f32.partialorder %v2539_v40, 8.507059e+37 }
 0xccd   :  { %v2518_v61 = vmul.f32 %v3298_v37, %v2517_v3 }
 0xccf   :  { %v2519_v31 = vadd.f32 %v3298_v37, %v2518_v61 }
 0xcd0   :  { %v3300_v60 = vpop.eup %3299 }
 0xcd1   :  { %v2523_v24 = vsel %vm2522_vm0, %v3298_v37, %v2519_v31  ;;  %v2531_v34 = vmul.f32 %v3300_v60, %v2514_v11  ;;  %vm2536_vm4 = vweird.f32 %v3300_v60 }
 0xcd2   :  { %v2528_v58 = vsel %vm2525_vm1, %v2527_v4, %v2523_v24  ;;  %vm2537_vm8 = vmor %vm2535_vm7, %vm2536_vm4 }
 0xcd3   :  { %v2553_v39 = vmul.f32 %v2548_v32, %v2528_v58  ;;  %v2532_v48 = vsub.f32 1.0, %v2531_v34  ;;  %v2567_v53 = vsub.f32 1.0, %v2528_v58 }
 0xcd5   :  { %2557 = vrot.lane.b32.xlu1 %v2553_v39, %s3509_s11  ;;  %v2533_v8 = vmul.f32 %v3300_v60, %v2532_v48 }
 0xcd7   :  { %v2657_v28 = vpop.permute.xlu2 %2656  ;;  %v2534_v12 = vadd.f32 %v3300_v60, %v2533_v8 }
 0xcd8   :  { %v6074_v63 = vmul.f32 %v2657_v28, %v6054_v6  ;;  %v2579_v6 = vmul.f32 %v2528_v58, %v5674_v0 }
 0xcd9   :  { %v2538_v35 = vsel %vm2537_vm8, %v3300_v60, %v2534_v12 }
 0xcda   :  { %2661 = vrot.lane.b32.xlu2 %v6074_v63, %s3510_s0  ;;  %v2543_v45 = vsel %vm2540_vm9, %v2542_v10, %v2538_v35 }
 0xcdb   :  { %v2554_v14 = vmul.f32 %v2550_v2, %v2543_v45  ;;  %v2568_v1 = vsub.f32 1.0, %v2543_v45  ;;  %v2580_v44 = vmul.f32 %v2543_v45, %v5669_v46  ;;  %v6097_v46 = vld [vmem:[%s6220_s4] sm:$0x3] }
 0xcdc   :  { %vm2695_vm10 = vcmp.gt.f32.partialorder %v6097_v46, 0.5  ;;  %v3012_v46 = vld [vmem:[%s6221_s20 + $0x38] sm:$0xff] }
 0xcdd   :  { %2559 = vrot.lane.b32.xlu0 %v2554_v14, %s3509_s11  ;;  %3028 = vmatpush.msrb.mxu3 %v3012_v46 }
 0xd34   :  { %v2662_v0 = vpop.permute.xlu2 %2661 }
 0xd47   :  { %v2558_v30 = vpop.permute.xlu1 %2557 }
 0xd48   :  { %v2563_v29 = vadd.f32 %v2558_v30, %v2473_v21 }
 0xd4a   :  { %3301 = vtanh.f32 %v2563_v29 }
 0xd4f   :  { %v2560_v36 = vpop.permute.xlu0 %2559 }
 0xd50   :  { %v3302_v22 = vpop.eup %3301  ;;  %v2564_v33 = vadd.f32 %v2560_v36, %v2476_v20 }
 0xd51   :  { %2571 = vrot.lane.b32.xlu1 %v3302_v22, %s3511_s26 }
 0xd52   :  { %3303 = vtanh.f32 %v2564_v33 }
 0xd58   :  { %v3304_v18 = vpop.eup %3303 }
 0xd59   :  { %2573 = vrot.lane.b32.xlu0 %v3304_v18, %s3511_s26 }
 0xdc3   :  { %v2572_v5 = vpop.permute.xlu1 %2571 }
 0xdc4   :  { %v2577_v41 = vmul.f32 %v2572_v5, %v2567_v53 }
 0xdc6   :  { %v2581_v54 = vadd.f32 %v2579_v6, %v2577_v41 }
 0xdc8   :  { %2665 = vrot.lane.b32.xlu1 %v2581_v54, %s3511_s26 }
 0xdcb   :  { %v2574_v42 = vpop.permute.xlu0 %2573 }
 0xdcc   :  { %v2578_v56 = vmul.f32 %v2574_v42, %v2568_v1 }
 0xdce   :  { %v2582_v9 = vadd.f32 %v2580_v44, %v2578_v56 }
 0xdd0   :  { %2667 = vrot.lane.b32.xlu0 %v2582_v9, %s3511_s26 }
 0xe3a   :  { %v2666_v7 = vpop.permute.xlu1 %2665 }
 0xe42   :  { %v2668_v15 = vpop.permute.xlu0 %2667 }
 0xe43   :  { %3225 = vmatpush.xpose.msk.msrb.mxu0 %vm347_vm2, %v2668_v15  ;;  %3228 = vmatpush.msk.msrb.mxu1 %vm579_vm3, %v2668_v15 }
 0xe45   :  { %2731 = vmatpush.msrb.mxu1 %v2666_v7 }
 0xe47   :  { %3235 = vmatpush.msk.msra.mxu1 %vm579_vm3, %v2668_v15  ;;  %3226 = vmatpush.xpose.msk.msrb.mxu0 %vm347_vm2, %v2666_v7 }
 0xe49   :  { %2863 = vmatpush.msra.mxu1 %v2666_v7 }
 0xe4a   :  { %3227 = vmatmul.msk.f32.vlgmr.msrb.gmra.mxu0 %vm347_vm2, %v2662_v0 }
 0xe4b   :  { %3232 = vmatpush.xpose.msk.msra.mxu0 %vm347_vm2, %v2668_v15 }
 0xe4f   :  { %3233 = vmatpush.xpose.msk.msra.mxu0 %vm347_vm2, %v2666_v7 }
 0xe53   :  { %3239 = vmatpush.xpose.msk.msrb.mxu0 %vm347_vm2, %v2668_v15 }
 0xe57   :  { %3240 = vmatpush.xpose.msk.msrb.mxu0 %vm347_vm2, %v2666_v7 }
 0xec7   :  { %v2692_v51 = vpop.f32.mrf.mxu0 }
 0xec8   :  { %v2696_v47 = vsel %vm2695_vm10, %v2692_v51, -1e+30 }
 0xec9   :  { %v2698_v16 = vsel %vm2697_vm6, %v2696_v47, -inf }
 0xeca   :  { %2699 = vmax.xlane.f32.xlu0 %v2698_v16 }
 0xf3d   :  { %v2700_v59 = vpop.xlane.xlu0 %2699 }
 0xf3e   :  { %v2701_v13 = vsub.f32 %v2696_v47, %v2700_v59 }
 0xf40   :  { %v2702_v21 = vmul.f32 1.442695, %v2701_v13 }
 0xf42   :  { %3305 = vpow2.f32 %v2702_v21 }
 0xf48   :  { %v3306_v50 = vpop.eup %3305 }
 0xf49   :  { %v2704_v55 = vsel %vm2697_vm6, %v3306_v50, 0.0 }
 0xf4a   :  { %2705 = vadd.xlane.f32.xlu1 %v2704_v55 }
 0xfbd   :  { %v2706_v23 = vpop.xlane.xlu1 %2705 }
 0xfbe   :  { %v2707_v20 = vmax.f32 %v2706_v23, 1e-20 }
 0xfc0   :  { %3307 = vrcp.f32 %v2707_v20 }
 0xfc6   :  { %v3308_v49 = vpop.eup %3307 }
 0xfc7   :  { %v2709_v25 = vmul.f32 %v3308_v49, %v3306_v50 }
 0xfc9   :  { %3229 = vmatmul.msk.f32.vlgmr.msrb.gmra.mxu1 %vm618_vm5, %v2709_v25 }
 0xfca   :  { %3242 = vmatpush.msk.msrb.mxu1 %vm579_vm3, %v2668_v15 }
 0xfcc   :  { %2994 = vmatpush.msrb.mxu1 %v2666_v7 }
0x1046   :  { %v2733_v62 = vpop.f32.mrf.mxu1 }
0x1047   :  { %2738 = vrot.lane.b32.xlu2 %v2733_v62, %s3510_s0 }
0x104f   :  { %2742 = vrot.lane.b32.xlu2 %v6074_v63, %s3511_s26 }
0x10a1   :  { %v2739_v52 = vpop.permute.xlu2 %2738 }
0x10a2   :  { %v2741_v26 = vsel %vm347_vm2, %v2662_v0, %v2739_v52 }
0x10a9   :  { %v2743_v37 = vpop.permute.xlu2 %2742 }
0x10aa   :  { %v2746_v11 = vsel %vm2745_vm11, %v2741_v26, %v2743_v37 }
0x10ab   :  { %3230 = vmatmul.msk.f32.vlgmr.msra.gmra.mxu3 %vm2599_vm12, %v2746_v11 }
0x112e   :  { %v2767_v43 = vpop.f32.mrf.mxu3 }
0x112f   :  { %v2768_v3 = vadd.f32 %v6022_v19, %v2767_v43 }
0x1131   :  { %3309 = vtanh.f32 %v2768_v3  ;;  %v3231_v61 = vmul.f32 -1.442695, %v2768_v3 }
0x1133   :  { %3311 = vpow2.f32 %v3231_v61 }
0x1137   :  { %v3310_v57 = vpop.eup %3309 }
0x1138   :  { %2792 = vrot.lane.b32.xlu2 %v3310_v57, %s3509_s11 }
0x1139   :  { %v3312_v27 = vpop.eup %3311 }
0x113a   :  { %v2773_v31 = vadd.f32 1.0, %v3312_v27 }
0x113c   :  { %3313 = vrcp.f32 %v2773_v31  ;;  %v2785_v58 = vand.u32 2147483648, %v2773_v31  ;;  %vm2779_vm13 = vweird.f32 %v2773_v31  ;;  %v2783_v39 = vand.u32 2147483647, %v2773_v31 }
0x113e   :  { %v2786_v38 = vor.u32 1.1754944e-38, %v2785_v58  ;;  %vm2784_vm15 = vcmp.eq.f32.partialorder %v2783_v39, 8.507059e+37 }
0x1142   :  { %v3314_v60 = vpop.eup %3313 }
0x1143   :  { %v2775_v4 = vmul.f32 %v3314_v60, %v2773_v31  ;;  %vm2780_vm3 = vweird.f32 %v3314_v60 }
0x1144   :  { %vm2781_vm14 = vmor %vm2779_vm13, %vm2780_vm3 }
0x1145   :  { %v2776_v24 = vsub.f32 1.0, %v2775_v4 }
0x1147   :  { %v2777_v34 = vmul.f32 %v3314_v60, %v2776_v24 }
0x1149   :  { %v2778_v32 = vadd.f32 %v3314_v60, %v2777_v34 }
0x114b   :  { %v2782_v48 = vsel %vm2781_vm14, %v3314_v60, %v2778_v32 }
0x114c   :  { %v2787_v40 = vsel %vm2784_vm15, %v2786_v38, %v2782_v48 }
0x114d   :  { %v2790_v12 = vmul.f32 %v2787_v40, %v6064_v17 }
0x1192   :  { %v2793_v8 = vpop.permute.xlu2 %2792 }
0x1193   :  { %v2795_v28 = vmul.f32 %v2793_v8, %v2787_v40 }
0x1195   :  { %2797 = vrot.lane.b32.xlu2 %v2795_v28, %s3510_s0  ;;  %v3010_v28 = vld [vmem:[%s6221_s20 + $0x28] sm:$0xff] }
0x11ef   :  { %v2798_v63 = vpop.permute.xlu2 %2797 }
0x11f0   :  { %v2800_v10 = vadd.f32 %v2798_v63, %v2790_v12  ;;  %v3009_v12 = vld [vmem:[%s6221_s20 + $0x20] sm:$0xff]  ;;  %v3008_v63 = vld [vmem:[%s6221_s20 + $0x18] sm:$0xff] }
0x11f2   :  { %3315 = vtanh.f32 %v2800_v10 }
0x11f8   :  { %v3316_v35 = vpop.eup %3315 }
0x11f9   :  { %2803 = vrot.lane.b32.xlu2 %v3316_v35, %s3509_s11  ;;  %v3006_v35 = vld [vmem:[%s6221_s20 + $0x8] sm:$0xff] }
0x1253   :  { %v2804_v2 = vpop.permute.xlu2 %2803 }
0x1254   :  { %v2806_v45 = vmul.f32 %v2804_v2, %v2787_v40  ;;  %v3011_v40 = vld [vmem:[%s6221_s20 + $0x30] sm:$0xff] }
0x1255   :  { %3029 = vmatpush.msrb.mxu3 %v3011_v40 }
0x1256   :  { %2808 = vrot.lane.b32.xlu2 %v2806_v45, %s3510_s0 }
0x1257   :  { %3030 = vmatpush.msrb.mxu3 %v3010_v28 }
0x1259   :  { %3031 = vmatpush.msrb.mxu3 %v3009_v12 }
0x125b   :  { %3032 = vmatpush.msrb.mxu3 %v3008_v63 }
0x12b0   :  { %v2809_v14 = vpop.permute.xlu2 %2808 }
0x12b1   :  { %3234 = vmatmul.msk.f32.vlgmr.msra.gmra.mxu0 %vm347_vm2, %v2809_v14 }
0x132e   :  { %v2829_v30 = vpop.f32.mrf.mxu0 }
0x132f   :  { %v2832_v29 = vsel %vm2695_vm10, %v2829_v30, -1e+30  ;;  %v3047_v30 = vld [vmem:[%s6223_s22 + $0x30] sm:$0xff] }
0x1330   :  { %v2833_v36 = vsel %vm2697_vm6, %v2832_v29, -inf }
0x1331   :  { %2834 = vmax.xlane.f32.xlu0 %v2833_v36  ;;  %v3045_v36 = vld [vmem:[%s6223_s22 + $0x20] sm:$0xff] }
0x1345   :  { %2874 = vrot.lane.b32.xlu0 %v2806_v45, %s3511_s26  ;;  %v3005_v45 = vld [vmem:[%s6221_s20] sm:$0xff] }
0x13a4   :  { %v2835_v17 = vpop.xlane.xlu0 %2834 }
0x13a5   :  { %v2836_v22 = vsub.f32 %v2832_v29, %v2835_v17  ;;  %v3046_v29 = vld [vmem:[%s6223_s22 + $0x28] sm:$0xff]  ;;  %v3044_v17 = vld [vmem:[%s6223_s22 + $0x18] sm:$0xff] }
0x13a7   :  { %v2837_v33 = vmul.f32 1.442695, %v2836_v22 }
0x13a9   :  { %3317 = vpow2.f32 %v2837_v33 }
0x13af   :  { %v3318_v18 = vpop.eup %3317 }
0x13b0   :  { %v2839_v53 = vsel %vm2697_vm6, %v3318_v18, 0.0 }
0x13b1   :  { %2840 = vadd.xlane.f32.xlu1 %v2839_v53  ;;  %v3042_v53 = vld [vmem:[%s6223_s22 + $0x8] sm:$0xff] }
0x13b7   :  { %v2875_v44 = vpop.permute.xlu0 %2874 }
0x1424   :  { %v2841_v5 = vpop.xlane.xlu1 %2840 }
0x1425   :  { %v2842_v6 = vmax.f32 %v2841_v5, 1e-20  ;;  %v3041_v5 = vld [vmem:[%s6223_s22] sm:$0xff] }
0x1427   :  { %3319 = vrcp.f32 %v2842_v6  ;;  %v29_v6 = vstv %s6224_s23 }
0x1428   :  { %30 = vst [vmem:[#allocation2] sm:$0x1] %v29_v6 }
0x142d   :  { %v3320_v41 = vpop.eup %3319 }
0x142e   :  { %v2844_v54 = vmul.f32 %v3320_v41, %v3318_v18  ;;  %v3043_v18 = vld [vmem:[%s6223_s22 + $0x10] sm:$0xff]  ;;  %v3259_v41 = vld [vmem:[%s6222_s21] ss:$0 sm:$0xff] }
0x1430   :  { %3236 = vmatmul.msk.f32.vlgmr.msra.gmra.mxu1 %vm618_vm5, %v2844_v54 }
0x14ad   :  { %v2865_v1 = vpop.f32.mrf.mxu1 }
0x14ae   :  { %2870 = vrot.lane.b32.xlu2 %v2865_v1, %s3510_s0 }
0x1508   :  { %v2871_v42 = vpop.permute.xlu2 %2870 }
0x1509   :  { %v2873_v56 = vsel %vm347_vm2, %v2809_v14, %v2871_v42  ;;  %v3048_v14 = vld [vmem:[%s6223_s22 + $0x38] sm:$0xff] }
0x150a   :  { %v2877_v9 = vsel %vm2745_vm11, %v2873_v56, %v2875_v44  ;;  %3064 = vmatpush.msra.mxu0 %v3048_v14  ;;  %v3260_v44 = vld [vmem:[#allocation2] ss:$0 sm:$0xff] }
0x150b   :  { %3237 = vmatmul.msk.f32.vlgmr.msra.gmra.mxu2 %vm2599_vm12, %v2877_v9 }
0x150c   :  { %3065 = vmatpush.msra.mxu0 %v3047_v30 }
0x150e   :  { %3066 = vmatpush.msra.mxu0 %v3046_v29 }
0x1510   :  { %3067 = vmatpush.msra.mxu0 %v3045_v36 }
0x1512   :  { %3068 = vmatpush.msra.mxu0 %v3044_v17 }
0x1514   :  { %3069 = vmatpush.msra.mxu0 %v3043_v18 }
0x1516   :  { %3070 = vmatpush.msra.mxu0 %v3042_v53 }
0x1518   :  { %3071 = vmatpush.msra.mxu0 %v3041_v5 }
0x158e   :  { %v2898_v15 = vpop.f32.mrf.mxu2 }
0x158f   :  { %v2899_v7 = vadd.f32 %v6022_v19, %v2898_v15 }
0x1591   :  { %3321 = vtanh.f32 %v2899_v7  ;;  %v3238_v51 = vmul.f32 -1.442695, %v2899_v7 }
0x1593   :  { %3323 = vpow2.f32 %v3238_v51 }
0x1597   :  { %v3322_v0 = vpop.eup %3321 }
0x1598   :  { %2923 = vrot.lane.b32.xlu1 %v3322_v0, %s3509_s11 }
0x1599   :  { %v3324_v47 = vpop.eup %3323 }
0x159a   :  { %v2904_v16 = vadd.f32 1.0, %v3324_v47 }
0x159c   :  { %3325 = vrcp.f32 %v2904_v16  ;;  %v2916_v23 = vand.u32 2147483648, %v2904_v16  ;;  %vm2910_vm1 = vweird.f32 %v2904_v16  ;;  %v2914_v20 = vand.u32 2147483647, %v2904_v16 }
0x159e   :  { %v2917_v49 = vor.u32 1.1754944e-38, %v2916_v23  ;;  %vm2915_vm7 = vcmp.eq.f32.partialorder %v2914_v20, 8.507059e+37 }
0x15a2   :  { %v3326_v59 = vpop.eup %3325 }
0x15a3   :  { %v2906_v13 = vmul.f32 %v3326_v59, %v2904_v16  ;;  %vm2911_vm0 = vweird.f32 %v3326_v59 }
0x15a4   :  { %vm2912_vm4 = vmor %vm2910_vm1, %vm2911_vm0 }
0x15a5   :  { %v2907_v21 = vsub.f32 1.0, %v2906_v13 }
0x15a7   :  { %v2908_v50 = vmul.f32 %v3326_v59, %v2907_v21 }
0x15a9   :  { %v2909_v55 = vadd.f32 %v3326_v59, %v2908_v50 }
0x15ab   :  { %v2913_v19 = vsel %vm2912_vm4, %v3326_v59, %v2909_v55 }
0x15ac   :  { %v2918_v62 = vsel %vm2915_vm7, %v2917_v49, %v2913_v19 }
0x15ad   :  { %v2921_v26 = vmul.f32 %v2918_v62, %v2800_v10  ;;  %v3007_v10 = vld [vmem:[%s6221_s20 + $0x10] sm:$0xff] }
0x15ae   :  { %3033 = vmatpush.msrb.mxu3 %v3007_v10 }
0x15b0   :  { %3034 = vmatpush.msrb.mxu3 %v3006_v35 }
0x15b2   :  { %3035 = vmatpush.msrb.mxu3 %v3005_v45 }
0x160a   :  { %v2924_v25 = vpop.permute.xlu1 %2923 }
0x160b   :  { %v2926_v52 = vmul.f32 %v2924_v25, %v2918_v62 }
0x160d   :  { %2928 = vrot.lane.b32.xlu2 %v2926_v52, %s3510_s0 }
0x1667   :  { %v2929_v37 = vpop.permute.xlu2 %2928 }
0x1668   :  { %v2931_v11 = vadd.f32 %v2929_v37, %v2921_v26 }
0x166a   :  { %3327 = vtanh.f32 %v2931_v11 }
0x1670   :  { %v3328_v43 = vpop.eup %3327 }
0x1671   :  { %2934 = vrot.lane.b32.xlu2 %v3328_v43, %s3509_s11 }
0x16cb   :  { %v2935_v3 = vpop.permute.xlu2 %2934 }
0x16cc   :  { %v2937_v57 = vmul.f32 %v2935_v3, %v2918_v62 }
0x16ce   :  { %2939 = vrot.lane.b32.xlu0 %v2937_v57, %s3510_s0 }
0x1740   :  { %v2940_v61 = vpop.permute.xlu0 %2939 }
0x1741   :  { %3241 = vmatmul.msk.f32.vlgmr.msrb.gmra.mxu0 %vm347_vm2, %v2940_v61 }
0x17be   :  { %v2960_v27 = vpop.f32.mrf.mxu0 }
0x17bf   :  { %v2963_v31 = vsel %vm2695_vm10, %v2960_v27, -1e+30 }
0x17c0   :  { %v2964_v60 = vsel %vm2697_vm6, %v2963_v31, -inf }
0x17c1   :  { %2965 = vmax.xlane.f32.xlu2 %v2964_v60 }
0x1834   :  { %v2966_v4 = vpop.xlane.xlu2 %2965 }
0x1835   :  { %v2967_v24 = vsub.f32 %v2963_v31, %v2966_v4 }
0x1837   :  { %v2968_v34 = vmul.f32 1.442695, %v2967_v24 }
0x1839   :  { %3329 = vpow2.f32 %v2968_v34 }
0x183f   :  { %v3330_v32 = vpop.eup %3329 }
0x1840   :  { %v2970_v58 = vsel %vm2697_vm6, %v3330_v32, 0.0 }
0x1841   :  { %2971 = vadd.xlane.f32.xlu1 %v2970_v58 }
0x18b4   :  { %v2972_v39 = vpop.xlane.xlu1 %2971 }
0x18b5   :  { %v2973_v48 = vmax.f32 %v2972_v39, 1e-20 }
0x18b7   :  { %3331 = vrcp.f32 %v2973_v48 }
0x18bd   :  { %v3332_v38 = vpop.eup %3331 }
0x18be   :  { %v2975_v8 = vmul.f32 %v3332_v38, %v3330_v32 }
0x18c0   :  { %3243 = vmatmul.msk.f32.vlgmr.msrb.gmra.mxu1 %vm618_vm5, %v2975_v8 }
0x193d   :  { %v2996_v2 = vpop.f32.mrf.mxu1 }
0x193e   :  { %3001 = vrot.lane.b32.xlu0 %v2996_v2, %s3510_s0 }
0x19b0   :  { %v3002_v22 = vpop.permute.xlu0 %3001 }
0x19b1   :  { %v3004_v33 = vsel %vm347_vm2, %v2940_v61, %v3002_v22  ;;  %vm3076_vm2 = vcmask 1024  }
0x19b2   :  { %3244 = vmatmul.msk.f32.vlgmr.msrb.gmra.mxu3 %vm2745_vm11, %v3004_v33 }
0x1a35   :  { %v3037_v54 = vpop.f32.mrf.mxu3 }
0x1a36   :  { %v3038_v1 = vadd.f32 %v3259_v41, %v3037_v54 }
0x1a38   :  { %v3040_v42 = vmax.f32 %v3038_v1, 0.0 }
0x1a3a   :  { %3245 = vmatmul.msk.f32.vlgmr.msra.gmra.mxu0 %vm2745_vm11, %v3040_v42 }
0x1ab7   :  { %v3073_v56 = vpop.f32.mrf.mxu0 }
0x1ab8   :  { %v3074_v9 = vadd.f32 %v3260_v44, %v3073_v56 }
0x1aba   :  { %3077 = vst.msk [vmem:[%s6225_s24] sm:$0x3] %vm3076_vm2, %v3074_v9 }

</bundles_post_ra>
